<compile_context>
chip_gen: v6e
topology: v6e:2x2x1
jax: 0.10.0
libtpu: 0.0.40
codegen_flags: <defaults>
</compile_context>

<pallas_src>
import math
import jax
import jax.numpy as jnp
from jax.experimental import pallas as pl
from jax.experimental.pallas import tpu as pltpu

EPS = 1e-5


def _make_kernel(Q):
    """conv(3x3) as one MXU matmul + batch-stat BN + ReLU + vectorized 2x2 maxpool.

    The im2col rows arrive as 4 contiguous blocks of Q rows each (one block per
    (h%2, w%2) pool parity), so the 2x2 / stride-2 maxpool is a max over the 4 blocks.
    """
    P = 4 * Q
    inv_p = 1.0 / P

    def kernel(p_ref, w_ref, g_ref, b_ref, o_ref):
        # conv: (P, 9*Cin) bf16 @ (9*Cin, TN) bf16 -> f32 accumulate (single MXU pass)
        y = jnp.dot(p_ref[...], w_ref[...], preferred_element_type=jnp.float32)
        # batch norm (training mode): biased batch stats over all P rows, per channel,
        # computed in one pass (sum and sum-of-squares).
        s1 = jnp.sum(y, axis=0, keepdims=True)
        s2 = jnp.sum(y * y, axis=0, keepdims=True)
        mean = s1 * inv_p
        var = jnp.maximum(s2 * inv_p - mean * mean, 0.0)
        y = (y - mean) * jax.lax.rsqrt(var + EPS)
        y = y * g_ref[...] + b_ref[...]
        # relu
        y = jnp.maximum(y, 0.0)
        # 2x2 maxpool, stride 2: max over the 4 parity blocks, one lane-dense store.
        o_ref[...] = jnp.maximum(jnp.maximum(y[0:Q], y[Q:2 * Q]),
                                 jnp.maximum(y[2 * Q:3 * Q], y[3 * Q:4 * Q]))

    return kernel


def _im2col_3x3_pool_order(x_nhwc):
    """3x3 im2col (padding=1), columns in (dy, dx, cin) order, rows reordered to
    (h%2, w%2, n, h//2, w//2) so the in-kernel 2x2 maxpool is block-contiguous."""
    N, H, W, C = x_nhwc.shape
    Ho, Wo = H // 2, W // 2
    xp = jnp.pad(x_nhwc, ((0, 0), (1, 1), (1, 1), (0, 0)))
    cols = [xp[:, dy:dy + H, dx:dx + W, :] for dy in range(3) for dx in range(3)]
    patches = jnp.concatenate(cols, axis=-1)                 # (N, H, W, 9C)
    patches = patches.reshape(N, Ho, 2, Wo, 2, 9 * C)
    patches = jnp.transpose(patches, (2, 4, 0, 1, 3, 5))     # (ph, pw, N, Ho, Wo, 9C)
    return patches.reshape(4 * N * Ho * Wo, 9 * C).astype(jnp.bfloat16)


def conv_bn_relu_pool(x_nhwc, w_hwio, gamma, beta, tn=128):
    N, H, W, Cin = x_nhwc.shape
    Cout = w_hwio.shape[-1]
    Ho, Wo = H // 2, W // 2
    K = 9 * Cin
    Q = N * Ho * Wo            # pooled (output) rows
    P = 4 * Q                  # conv rows = N * H * W

    patches = _im2col_3x3_pool_order(x_nhwc)                     # (P, K)    bf16
    w2d = w_hwio.reshape(K, Cout).astype(jnp.bfloat16)           # (K, Cout) bf16

    out2d = pl.pallas_call(
        _make_kernel(Q),
        out_shape=jax.ShapeDtypeStruct((Q, Cout), jnp.float32),
        grid=(Cout // tn,),
        in_specs=[
            pl.BlockSpec((P, K), lambda j: (0, 0)),      # patches: stays VMEM-resident
            pl.BlockSpec((K, tn), lambda j: (0, j)),     # weight column slab (pipelined)
            pl.BlockSpec((1, tn), lambda j: (0, j)),     # gamma slab
            pl.BlockSpec((1, tn), lambda j: (0, j)),     # beta slab
        ],
        out_specs=pl.BlockSpec((Q, tn), lambda j: (0, j)),
        compiler_params=pltpu.CompilerParams(dimension_semantics=("parallel",)),
    )(patches, w2d, gamma, beta)
    return out2d.reshape(N, Ho, Wo, Cout)


@jax.jit
def shallow_cnn_forward(x_nchw, params):
    x = jnp.transpose(x_nchw, (0, 2, 3, 1))        # NCHW -> NHWC
    x = conv_bn_relu_pool(x, params["w1"], params["g1"], params["b1"])
    x = conv_bn_relu_pool(x, params["w2"], params["g2"], params["b2"])
    return jnp.transpose(x, (0, 3, 1, 2))          # NHWC -> NCHW


def ref_forward(x_nchw, params):
    """Pure-JAX reference at the same (bf16-input, f32-accumulate) conv precision."""
    def stage(x, w_hwio, g, b):
        w = jnp.transpose(w_hwio, (3, 2, 0, 1)).astype(jnp.bfloat16)   # HWIO -> OIHW
        y = jax.lax.conv_general_dilated(
            x.astype(jnp.bfloat16), w, window_strides=(1, 1), padding=((1, 1), (1, 1)),
            dimension_numbers=("NCHW", "OIHW", "NCHW"),
            preferred_element_type=jnp.float32)
        mean = jnp.mean(y, axis=(0, 2, 3), keepdims=True)
        var = jnp.mean((y - mean) ** 2, axis=(0, 2, 3), keepdims=True)
        y = (y - mean) * jax.lax.rsqrt(var + EPS)
        y = y * g.reshape(1, -1, 1, 1) + b.reshape(1, -1, 1, 1)
        y = jnp.maximum(y, 0.0)
        return jax.lax.reduce_window(y, -jnp.inf, jax.lax.max,
                                     (1, 1, 2, 2), (1, 1, 2, 2), "VALID")
    x = stage(x_nchw, params["w1"], params["g1"], params["b1"])
    x = stage(x, params["w2"], params["g2"], params["b2"])
    return x


if __name__ == "__main__":
    key = jax.random.PRNGKey(0)
    kx, k1, k2 = jax.random.split(key, 3)
    # ShallowCNN's conv1 expects 1 input channel: small NCHW input (2, 1, 16, 16).
    x = jax.random.normal(kx, (2, 1, 16, 16), jnp.float32)
    # Conv weights stored HWIO; BatchNorm gamma=1 / beta=0 match nn.BatchNorm2d defaults.
    w1 = jax.random.normal(k1, (3, 3, 1, 256), jnp.float32) * (1.0 / math.sqrt(9 * 1))
    w2 = jax.random.normal(k2, (3, 3, 256, 512), jnp.float32) * (1.0 / math.sqrt(9 * 256))
    params = dict(
        w1=w1, g1=jnp.ones((1, 256), jnp.float32), b1=jnp.zeros((1, 256), jnp.float32),
        w2=w2, g2=jnp.ones((1, 512), jnp.float32), b2=jnp.zeros((1, 512), jnp.float32),
    )

    out = jax.block_until_ready(shallow_cnn_forward(x, params))
    assert out.shape == (2, 512, 4, 4), out.shape

    ref = jax.block_until_ready(ref_forward(x, params))
    err = float(jnp.max(jnp.abs(out - ref)))
    assert err < 5e-3, f"max abs error {err}"
    print("KERNEL_OK")
</pallas_src>

<mosaic_0001>
module attributes {stable_mosaic.version = 11 : i64} {
  func.func @kernel(%arg0: i32, %arg1: memref<512x9xbf16, #tpu.memory_space<vmem>>, %arg2: memref<9x128xbf16, #tpu.memory_space<vmem>>, %arg3: memref<1x128xf32, #tpu.memory_space<vmem>>, %arg4: memref<1x128xf32, #tpu.memory_space<vmem>>, %arg5: memref<128x128xf32, #tpu.memory_space<vmem>>) attributes {dimension_semantics = [#tpu.dimension_semantics<parallel>], iteration_bounds = array<i64: 2>, scalar_prefetch = 0 : i64, scratch_operands = 0 : i64, tpu.core_type = #tpu.core_type<tc>, window_params = [{pipeline_mode = #tpu.pipeline_mode<synchronous>, transform_indices = @transform_0, window_bounds = array<i64: 512, 9>}, {transform_indices = @transform_1, window_bounds = array<i64: 9, 128>}, {transform_indices = @transform_2, window_bounds = array<i64: 1, 128>}, {transform_indices = @transform_3, window_bounds = array<i64: 1, 128>}, {transform_indices = @transform_4, window_bounds = array<i64: 128, 128>}]} {
    %c0 = arith.constant 0 : index
    %c0_0 = arith.constant 0 : index
    %0 = vector.load %arg1[%c0, %c0_0] : memref<512x9xbf16, #tpu.memory_space<vmem>>, vector<512x9xbf16>
    %c0_1 = arith.constant 0 : index
    %c0_2 = arith.constant 0 : index
    %1 = vector.load %arg2[%c0_1, %c0_2] : memref<9x128xbf16, #tpu.memory_space<vmem>>, vector<9x128xbf16>
    %cst = arith.constant dense<0.000000e+00> : vector<512x128xf32>
    %2 = tpu.matmul %0, %1, %cst {dimension_numbers = #tpu.dot_dimension_numbers<[1], [0], [0], [1], [0, 0, 1, 1], [], []>} : vector<512x9xbf16>, vector<9x128xbf16>, vector<512x128xf32> -> vector<512x128xf32>
    %cst_3 = arith.constant dense<0.000000e+00> : vector<128xf32>
    %3 = vector.multi_reduction <add>, %2, %cst_3 [0] : vector<512x128xf32> to vector<128xf32>
    %4 = vector.shape_cast %3 : vector<128xf32> to vector<1x128xf32>
    %5 = arith.mulf %2, %2 : vector<512x128xf32>
    %cst_4 = arith.constant dense<0.000000e+00> : vector<128xf32>
    %6 = vector.multi_reduction <add>, %5, %cst_4 [0] : vector<512x128xf32> to vector<128xf32>
    %7 = vector.shape_cast %6 : vector<128xf32> to vector<1x128xf32>
    %cst_5 = arith.constant 0.001953125 : f32
    %8 = vector.broadcast %cst_5 : f32 to vector<1x128xf32>
    %9 = arith.mulf %4, %8 : vector<1x128xf32>
    %cst_6 = arith.constant 0.001953125 : f32
    %10 = vector.broadcast %cst_6 : f32 to vector<1x128xf32>
    %11 = arith.mulf %7, %10 : vector<1x128xf32>
    %12 = arith.mulf %9, %9 : vector<1x128xf32>
    %13 = arith.subf %11, %12 : vector<1x128xf32>
    %cst_7 = arith.constant 0.000000e+00 : f32
    %14 = vector.broadcast %cst_7 : f32 to vector<1x128xf32>
    %15 = arith.maximumf %13, %14 : vector<1x128xf32>
    %16 = vector.broadcast %9 : vector<1x128xf32> to vector<512x128xf32>
    %17 = arith.subf %2, %16 : vector<512x128xf32>
    %cst_8 = arith.constant 9.99999974E-6 : f32
    %18 = vector.broadcast %cst_8 : f32 to vector<1x128xf32>
    %19 = arith.addf %15, %18 : vector<1x128xf32>
    %20 = math.rsqrt %19 : vector<1x128xf32>
    %21 = vector.broadcast %20 : vector<1x128xf32> to vector<512x128xf32>
    %22 = arith.mulf %17, %21 : vector<512x128xf32>
    %c0_9 = arith.constant 0 : index
    %c0_10 = arith.constant 0 : index
    %23 = vector.load %arg3[%c0_9, %c0_10] : memref<1x128xf32, #tpu.memory_space<vmem>>, vector<1x128xf32>
    %24 = vector.broadcast %23 : vector<1x128xf32> to vector<512x128xf32>
    %25 = arith.mulf %22, %24 : vector<512x128xf32>
    %c0_11 = arith.constant 0 : index
    %c0_12 = arith.constant 0 : index
    %26 = vector.load %arg4[%c0_11, %c0_12] : memref<1x128xf32, #tpu.memory_space<vmem>>, vector<1x128xf32>
    %27 = vector.broadcast %26 : vector<1x128xf32> to vector<512x128xf32>
    %28 = arith.addf %25, %27 : vector<512x128xf32>
    %cst_13 = arith.constant 0.000000e+00 : f32
    %29 = vector.broadcast %cst_13 : f32 to vector<512x128xf32>
    %30 = arith.maximumf %28, %29 : vector<512x128xf32>
    %31 = vector.extract_strided_slice %30 {offsets = [0, 0], sizes = [128, 128], strides = [1, 1]} : vector<512x128xf32> to vector<128x128xf32>
    %32 = vector.extract_strided_slice %30 {offsets = [128, 0], sizes = [128, 128], strides = [1, 1]} : vector<512x128xf32> to vector<128x128xf32>
    %33 = arith.maximumf %31, %32 : vector<128x128xf32>
    %34 = vector.extract_strided_slice %30 {offsets = [256, 0], sizes = [128, 128], strides = [1, 1]} : vector<512x128xf32> to vector<128x128xf32>
    %35 = vector.extract_strided_slice %30 {offsets = [384, 0], sizes = [128, 128], strides = [1, 1]} : vector<512x128xf32> to vector<128x128xf32>
    %36 = arith.maximumf %34, %35 : vector<128x128xf32>
    %37 = arith.maximumf %33, %36 : vector<128x128xf32>
    %c0_14 = arith.constant 0 : index
    %c0_15 = arith.constant 0 : index
    %38 = vector.load %arg5[%c0_14, %c0_15] : memref<128x128xf32, #tpu.memory_space<vmem>>, vector<128x128xf32>
    tpu.vector_store %arg5[%c0_14, %c0_15], %37 {strides = array<i32>} : memref<128x128xf32, #tpu.memory_space<vmem>>, vector<128x128xf32>,
    return
  }
  func.func @transform_0(%arg0: i32) -> (i32, i32) {
    %c0_i32 = arith.constant 0 : i32
    %c0_i32_0 = arith.constant 0 : i32
    %c0_i32_1 = arith.constant 0 : i32
    return %c0_i32, %c0_i32_0 : i32, i32
  }
  func.func @transform_1(%arg0: i32) -> (i32, i32) {
    %c0_i32 = arith.constant 0 : i32
    %c0_i32_0 = arith.constant 0 : i32
    return %c0_i32, %arg0 : i32, i32
  }
  func.func @transform_2(%arg0: i32) -> (i32, i32) {
    %c0_i32 = arith.constant 0 : i32
    %c0_i32_0 = arith.constant 0 : i32
    return %c0_i32, %arg0 : i32, i32
  }
  func.func @transform_3(%arg0: i32) -> (i32, i32) {
    %c0_i32 = arith.constant 0 : i32
    %c0_i32_0 = arith.constant 0 : i32
    return %c0_i32, %arg0 : i32, i32
  }
  func.func @transform_4(%arg0: i32) -> (i32, i32) {
    %c0_i32 = arith.constant 0 : i32
    %c0_i32_0 = arith.constant 0 : i32
    return %c0_i32, %arg0 : i32, i32
  }
}

module attributes {stable_mosaic.version = 11 : i64} {
  func.func @kernel(%arg0: i32, %arg1: memref<128x2304xbf16, #tpu.memory_space<vmem>>, %arg2: memref<2304x128xbf16, #tpu.memory_space<vmem>>, %arg3: memref<1x128xf32, #tpu.memory_space<vmem>>, %arg4: memref<1x128xf32, #tpu.memory_space<vmem>>, %arg5: memref<32x128xf32, #tpu.memory_space<vmem>>) attributes {dimension_semantics = [#tpu.dimension_semantics<parallel>], iteration_bounds = array<i64: 4>, scalar_prefetch = 0 : i64, scratch_operands = 0 : i64, tpu.core_type = #tpu.core_type<tc>, window_params = [{pipeline_mode = #tpu.pipeline_mode<synchronous>, transform_indices = @transform_0, window_bounds = array<i64: 128, 2304>}, {transform_indices = @transform_1, window_bounds = array<i64: 2304, 128>}, {transform_indices = @transform_2, window_bounds = array<i64: 1, 128>}, {transform_indices = @transform_3, window_bounds = array<i64: 1, 128>}, {transform_indices = @transform_4, window_bounds = array<i64: 32, 128>}]} {
    %c0 = arith.constant 0 : index
    %c0_0 = arith.constant 0 : index
    %0 = vector.load %arg1[%c0, %c0_0] : memref<128x2304xbf16, #tpu.memory_space<vmem>>, vector<128x2304xbf16>
    %c0_1 = arith.constant 0 : index
    %c0_2 = arith.constant 0 : index
    %1 = vector.load %arg2[%c0_1, %c0_2] : memref<2304x128xbf16, #tpu.memory_space<vmem>>, vector<2304x128xbf16>
    %cst = arith.constant dense<0.000000e+00> : vector<128x128xf32>
    %2 = tpu.matmul %0, %1, %cst {dimension_numbers = #tpu.dot_dimension_numbers<[1], [0], [0], [1], [0, 0, 1, 1], [], []>} : vector<128x2304xbf16>, vector<2304x128xbf16>, vector<128x128xf32> -> vector<128x128xf32>
    %cst_3 = arith.constant dense<0.000000e+00> : vector<128xf32>
    %3 = vector.multi_reduction <add>, %2, %cst_3 [0] : vector<128x128xf32> to vector<128xf32>
    %4 = vector.shape_cast %3 : vector<128xf32> to vector<1x128xf32>
    %5 = arith.mulf %2, %2 : vector<128x128xf32>
    %cst_4 = arith.constant dense<0.000000e+00> : vector<128xf32>
    %6 = vector.multi_reduction <add>, %5, %cst_4 [0] : vector<128x128xf32> to vector<128xf32>
    %7 = vector.shape_cast %6 : vector<128xf32> to vector<1x128xf32>
    %cst_5 = arith.constant 7.812500e-03 : f32
    %8 = vector.broadcast %cst_5 : f32 to vector<1x128xf32>
    %9 = arith.mulf %4, %8 : vector<1x128xf32>
    %cst_6 = arith.constant 7.812500e-03 : f32
    %10 = vector.broadcast %cst_6 : f32 to vector<1x128xf32>
    %11 = arith.mulf %7, %10 : vector<1x128xf32>
    %12 = arith.mulf %9, %9 : vector<1x128xf32>
    %13 = arith.subf %11, %12 : vector<1x128xf32>
    %cst_7 = arith.constant 0.000000e+00 : f32
    %14 = vector.broadcast %cst_7 : f32 to vector<1x128xf32>
    %15 = arith.maximumf %13, %14 : vector<1x128xf32>
    %16 = vector.broadcast %9 : vector<1x128xf32> to vector<128x128xf32>
    %17 = arith.subf %2, %16 : vector<128x128xf32>
    %cst_8 = arith.constant 9.99999974E-6 : f32
    %18 = vector.broadcast %cst_8 : f32 to vector<1x128xf32>
    %19 = arith.addf %15, %18 : vector<1x128xf32>
    %20 = math.rsqrt %19 : vector<1x128xf32>
    %21 = vector.broadcast %20 : vector<1x128xf32> to vector<128x128xf32>
    %22 = arith.mulf %17, %21 : vector<128x128xf32>
    %c0_9 = arith.constant 0 : index
    %c0_10 = arith.constant 0 : index
    %23 = vector.load %arg3[%c0_9, %c0_10] : memref<1x128xf32, #tpu.memory_space<vmem>>, vector<1x128xf32>
    %24 = vector.broadcast %23 : vector<1x128xf32> to vector<128x128xf32>
    %25 = arith.mulf %22, %24 : vector<128x128xf32>
    %c0_11 = arith.constant 0 : index
    %c0_12 = arith.constant 0 : index
    %26 = vector.load %arg4[%c0_11, %c0_12] : memref<1x128xf32, #tpu.memory_space<vmem>>, vector<1x128xf32>
    %27 = vector.broadcast %26 : vector<1x128xf32> to vector<128x128xf32>
    %28 = arith.addf %25, %27 : vector<128x128xf32>
    %cst_13 = arith.constant 0.000000e+00 : f32
    %29 = vector.broadcast %cst_13 : f32 to vector<128x128xf32>
    %30 = arith.maximumf %28, %29 : vector<128x128xf32>
    %31 = vector.extract_strided_slice %30 {offsets = [0, 0], sizes = [32, 128], strides = [1, 1]} : vector<128x128xf32> to vector<32x128xf32>
    %32 = vector.extract_strided_slice %30 {offsets = [32, 0], sizes = [32, 128], strides = [1, 1]} : vector<128x128xf32> to vector<32x128xf32>
    %33 = arith.maximumf %31, %32 : vector<32x128xf32>
    %34 = vector.extract_strided_slice %30 {offsets = [64, 0], sizes = [32, 128], strides = [1, 1]} : vector<128x128xf32> to vector<32x128xf32>
    %35 = vector.extract_strided_slice %30 {offsets = [96, 0], sizes = [32, 128], strides = [1, 1]} : vector<128x128xf32> to vector<32x128xf32>
    %36 = arith.maximumf %34, %35 : vector<32x128xf32>
    %37 = arith.maximumf %33, %36 : vector<32x128xf32>
    %c0_14 = arith.constant 0 : index
    %c0_15 = arith.constant 0 : index
    %38 = vector.load %arg5[%c0_14, %c0_15] : memref<32x128xf32, #tpu.memory_space<vmem>>, vector<32x128xf32>
    tpu.vector_store %arg5[%c0_14, %c0_15], %37 {strides = array<i32>} : memref<32x128xf32, #tpu.memory_space<vmem>>, vector<32x128xf32>,
    return
  }
  func.func @transform_0(%arg0: i32) -> (i32, i32) {
    %c0_i32 = arith.constant 0 : i32
    %c0_i32_0 = arith.constant 0 : i32
    %c0_i32_1 = arith.constant 0 : i32
    return %c0_i32, %c0_i32_0 : i32, i32
  }
  func.func @transform_1(%arg0: i32) -> (i32, i32) {
    %c0_i32 = arith.constant 0 : i32
    %c0_i32_0 = arith.constant 0 : i32
    return %c0_i32, %arg0 : i32, i32
  }
  func.func @transform_2(%arg0: i32) -> (i32, i32) {
    %c0_i32 = arith.constant 0 : i32
    %c0_i32_0 = arith.constant 0 : i32
    return %c0_i32, %arg0 : i32, i32
  }
  func.func @transform_3(%arg0: i32) -> (i32, i32) {
    %c0_i32 = arith.constant 0 : i32
    %c0_i32_0 = arith.constant 0 : i32
    return %c0_i32, %arg0 : i32, i32
  }
  func.func @transform_4(%arg0: i32) -> (i32, i32) {
    %c0_i32 = arith.constant 0 : i32
    %c0_i32_0 = arith.constant 0 : i32
    return %c0_i32, %arg0 : i32, i32
  }
}

</mosaic_0001>

<bundles_post_ra>
// kernel: shallow_cnn_forward.2
= control target key start
LH: loop header
LB: loop body
LE: loop exit
PB: predicated region body
PF: predicated region fallthrough
CT: control target
= control target key end

     0   :  { %9 = vsyncpa [#allocation4], 0  ;;  %s3876_s0 = inlined_call_operand.vmem [shape: bf16[512,9], index: 0, kind: input, shape index: {}]   ;;  %s3877_s1 = inlined_call_operand.vmem [shape: bf16[9,256], index: 1, kind: input, shape index: {}]   ;;  %s3878_s2 = inlined_call_operand.hbm [shape: f32[1,256], index: 2, kind: input, shape index: {}]   ;;  %s3879_s3 = inlined_call_operand.hbm [shape: f32[1,256], index: 3, kind: input, shape index: {}]   ;;  %s3880_s4 = inlined_call_operand.vmem [shape: f32[128,256], index: 4, kind: output, shape index: {}]  }
   0x1   :  { %11 = vsyncpa [#allocation4 + $0x1], 0 }
   0x2   :  { %12 = vsyncpa [#allocation6], 0 }
   0x3   :  { %14 = vsyncpa [#allocation6 + $0x1], 0  ;;  %s2112_s15 = smov 0   ;;  %s2114_s16 = smov 0  }
   0x4   :  { %s2116_s17 = smov 0   ;;  %s2118_s18 = smov 0  }
   0x5 LB: > { %s2131_s19 = sadd.s32 4294967295, %s2082_s18   ;;  %s2134_s20 = sadd.s32 1, %s2082_s18   ;;  %s2082_s18 = sphi %s2118_s18, %s4159_s18   ;;  %s2078_s17 = sphi %s2116_s17, %s4158_s17   ;;  %s2074_s16 = sphi %s2114_s16, %s4157_s16   ;;  %s2070_s15 = sphi %s2112_s15, %s4156_s15  }
   0x6   : > { %s45_s21 = ssub.s32 %s2082_s18, %s2134_s20  ;;  %s48_s22 = sadd.s32 1, %s2078_s17 }
   0x7   : > { %p46_p0 = scmp.eq.s32.totalorder %s45_s21, 0  ;;  %p55_p1 = scmp.ne.s32.totalorder %s2078_s17, %s2074_s16 }
   0x8   : > { %p56_p2 = scmp.eq.s32.totalorder %s2082_s18, 0  ;;  %p87_p3 = scmp.ne.s32.totalorder %s2074_s16, %s2070_s15 }
   0x9   : > { %s2144_s23 = scalar_select %p46_p0, %s2078_s17, %s48_s22  }
   0xa   : > { %p2146_p4 = por %p56_p2, %p55_p1  ;;  %p88_p5 = scmp.eq.s32.totalorder %s2131_s19, 0 }
   0xb   : > { %p137_p6 = scmp.eq.s32.totalorder %s2131_s19, 1  ;;  %p1740_p9 = scmp.ge.s32.totalorder %s2082_s18, 2 }
   0xc   : > { %p2152_p7 = por %p88_p5, %p87_p3 }
   0xd   : > { %p2156_p8 = por %p137_p6, %p55_p1  ;;  %162 = sbr.rel (%p1740_p9) target bundleno = 70 (0x46), region = 20 }
   0xf   : > { %s3940_s26 = scalar_select %p2156_p8, 1, 0 }
  0x12   : > { %165 = sbr.rel (!%p2146_p4) target bundleno = 23 (0x17), region = 24  ;;  %s167_s27 = sand.u32 (%p2146_p4), 1, %s2078_s17  }
  0x13   : > { %s1742_s28 = sshll.u32 (%p2146_p4), %s2082_s18, 2  ;;  %s1741_s29 = sshll.u32 (%p2146_p4), %s167_s27, 3 }
  0x14   : > { %s171_s6 = scalar_lea.vmem (%p2146_p4), %s3877_s1, %s1742_s28  ;;  %s169_s7 = scalar_lea.vmem (%p2146_p4), [#allocation2], %s1741_s29 }
  0x15   : > { %v188_v0 = vld [vmem:[%s171_s6] sm:$0xf] (%p2146_p4)  ;;  %v190_v1 = vld [vmem:[%s171_s6 + $0x8] sm:$0xf] (%p2146_p4) }
  0x16   : > { %189 = vst [vmem:[%s169_s7] sm:$0xf] (%p2146_p4), %v188_v0  ;;  %191 = vst [vmem:[%s169_s7 + $0x4] sm:$0xf] (%p2146_p4), %v190_v1 }
  0x17 PF: > { %s2169_s8 = sand.u32 1, %s2078_s17   ;;  %s1743_s9 = sshll.u32 %s2082_s18, 4 }
  0x18   : > { %s2177_s12 = scalar_lea.hbm %s3878_s2, %s1743_s9  ;;  %s223_s13 = scalar_lea.vmem [#allocation3], %s2169_s8 }
  0x19   : > { %s230_s14 = sshll.u32 %s223_s13, 4  ;;  %s221_s15 = scalar_lea.sflag [#allocation4], %s2169_s8  ;;  %s231_s14 = int_to_ptr.vmem [resolvable:$true] %s230_s14 }
  0x1a   : > { %s1992_s21 = scalar_lea.hbm %s2177_s12, 16  ;;  %s1996_s28 = scalar_lea.hbm %s3878_s2, 32 }
  0x1b   : > { %p1993_p10 = scmp.ne.s32.totalorder %s2177_s12, %s1992_s21  ;;  %p1997_p13 = scmp.lt.s32.totalorder %s2177_s12, %s3878_s2 }
  0x1c   : > { %p1998_p0 = scmp.lt.s32.totalorder %s1996_s28, %s1992_s21 }
  0x1d   : > { %p1994_p11 = pnand %p1993_p10, %p2146_p4 }
  0x1e   : > { %p1999_p1 = por %p1998_p0, %p1997_p13 }
  0x1f   : > { %p1995_p12 = pneg %p1994_p11 }
  0x21   : > { %p2000_p2 = pnand %p1999_p1, %p1995_p12 }
  0x23   : > { %2003 = shalt.err (!%p2000_p2)
}
  0x24   : > { %s2004_s5 = scalar_lea.vmem %s231_s14, 16  ;;  %s2084_s6 = smov [#allocation3]  }
  0x25   : > { %p2005_p3 = scmp.ne.s32.totalorder %s231_s14, %s2004_s5  ;;  %s2008_s7 = sshll.u32 %s2084_s6, 4  ;;  %s2009_s7 = int_to_ptr.vmem [resolvable:$false] %s2008_s7 }
  0x26   : > { %s2010_s10 = scalar_lea.vmem %s2009_s7, 32  ;;  %p2011_p9 = scmp.lt.s32.totalorder %s231_s14, %s2009_s7 }
  0x27   : > { %p2006_p5 = pnand %p2005_p3, %p2146_p4  ;;  %p2012_p10 = scmp.lt.s32.totalorder %s2010_s10, %s2004_s5 }
  0x29   : > { %p2007_p6 = pneg %p2006_p5  ;;  %p2013_p11 = por %p2012_p10, %p2011_p9 }
  0x2b   : > { %p2014_p8 = pnand %p2013_p11, %p2007_p6 }
  0x2d   : > { %2017 = shalt.err (!%p2014_p8)
}
  0x2e   : > { %1920 = dma.hbm_to_vmem [thread:$0]  (%p2146_p4), %s2177_s12, 16, %s231_s14, %s221_s15  }
  0x2f   : > { %s2202_s21 = scalar_lea.hbm %s3879_s3, %s1743_s9  ;;  %s240_s22 = scalar_lea.vmem [#allocation5], %s2169_s8 }
  0x30   : > { %s247_s27 = sshll.u32 %s240_s22, 4  ;;  %s238_s28 = scalar_lea.sflag [#allocation6], %s2169_s8  ;;  %s248_s27 = int_to_ptr.vmem [resolvable:$true] %s247_s27 }
  0x31   : > { %s2018_s29 = scalar_lea.hbm %s2202_s21, 16  ;;  %s2022_s14 = scalar_lea.hbm %s3879_s3, 32 }
  0x32   : > { %p2019_p8 = scmp.ne.s32.totalorder %s2202_s21, %s2018_s29  ;;  %p2023_p0 = scmp.lt.s32.totalorder %s2202_s21, %s3879_s3 }
  0x33   : > { %p2024_p1 = scmp.lt.s32.totalorder %s2022_s14, %s2018_s29 }
  0x34   : > { %p2020_p12 = pnand %p2019_p8, %p2146_p4 }
  0x35   : > { %p2025_p2 = por %p2024_p1, %p2023_p0 }
  0x36   : > { %p2021_p13 = pneg %p2020_p12 }
  0x38   : > { %p2026_p3 = pnand %p2025_p2, %p2021_p13 }
  0x3a   : > { %2029 = shalt.err (!%p2026_p3)
}
  0x3b   : > { %s2030_s9 = scalar_lea.vmem %s248_s27, 16  ;;  %s2085_s8 = smov [#allocation5]  }
  0x3c   : > { %p2031_p5 = scmp.ne.s32.totalorder %s248_s27, %s2030_s9  ;;  %s2034_s6 = sshll.u32 %s2085_s8, 4  ;;  %s2035_s6 = int_to_ptr.vmem [resolvable:$false] %s2034_s6 }
  0x3d   : > { %s2036_s7 = scalar_lea.vmem %s2035_s6, 32  ;;  %p2037_p10 = scmp.lt.s32.totalorder %s248_s27, %s2035_s6 }
  0x3e   : > { %p2032_p6 = pnand %p2031_p5, %p2146_p4  ;;  %p2038_p11 = scmp.lt.s32.totalorder %s2036_s7, %s2030_s9 }
  0x40   : > { %p2033_p9 = pneg %p2032_p6  ;;  %p2039_p8 = por %p2038_p11, %p2037_p10 }
  0x42   : > { %p2040_p12 = pnand %p2039_p8, %p2033_p9 }
  0x44   : > { %2043 = shalt.err (!%p2040_p12)
}
  0x45   : > { %1921 = dma.hbm_to_vmem [thread:$0]  (%p2146_p4), %s2202_s21, 16, %s248_s27, %s238_s28  }
  0x46 PF: > { %p1745_p13 = scmp.ge.s32.totalorder %s2082_s18, 1  ;;  %p252_p0 = scmp.lt.s32.totalorder %s2082_s18, 3 }
  0x48   : > { %p253_p1 = pnand %p1745_p13, %p252_p0 }
  0x4a   : > { %256 = sbr.rel (%p253_p1) target bundleno = 580 (0x244), region = 73 }
  0x4f   : > { %s2225_s10 = sand.u32 1, %s2074_s16  }
  0x50   : > { %s1746_s11 = sshll.u32 %s2225_s10, 3  ;;  %s266_s22 = scalar_lea.sflag [#allocation4], %s2225_s10 }
  0x51   : > { %s261_s13 = scalar_lea.vmem [#allocation2], %s1746_s11  ;;  %s268_s24 = scalar_lea.vmem [#allocation3], %s2225_s10 }
  0x52   : > { %2061 = dma.done.wait (%p2152_p7), %s266_s22, 16  }
  0x53   : > { %2063 = vsyncadd (%p2152_p7), %s266_s22, 4294967280  ;;  %s274_s18 = scalar_lea.sflag [#allocation6], %s2225_s10  ;;  %s276_s21 = scalar_lea.vmem [#allocation5], %s2225_s10 }
  0x54   : > { %2065 = dma.done.wait (%p2152_p7), %s274_s18, 16  }
  0x55   : > { %2067 = vsyncadd (%p2152_p7), %s274_s18, 4294967280  ;;  %vm636_vm0 = vcmask 1043456   ;;  %vm637_vm1 = vcmask 1044480   ;;  %v2086_v2 = vmov 65535   ;;  %vm539_vm2 = vcmask 72704   ;;  %v1958_v6 = vld [vmem:[%s3876_s0] sm:$0xff]  }
  0x56   : > { %v638_v3 = vsel %vm636_vm0, 4294967295, %v2086_v2  ;;  %v1957_v5 = vld [vmem:[%s261_s13] sm:$0x1f]   ;;  %1854 = vmatprep.mubr.msk.bf16.mxu0 %vm539_vm2, %v1958_v6  ;;  %v1960_v9 = vld [vmem:[%s3876_s0 + $0x10] sm:$0xff]   ;;  %v1961_v10 = vld [vmem:[%s3876_s0 + $0x18] sm:$0xff]   ;;  %p4155_p4 = scmp.ne.s32.totalorder %s3940_s26, 0 }
  0x57   : > { %v639_v4 = vsel %vm637_vm1, %v638_v3, 0  ;;  %v1959_v8 = vld [vmem:[%s3876_s0 + $0x8] sm:$0xff]   ;;  %v1962_v11 = vld [vmem:[%s3876_s0 + $0x20] sm:$0xff]   ;;  %v1976_v14 = vld [vmem:[%s3876_s0 + $0x90] sm:$0xff]  }
  0x58   : > { %v641_v7 = vand.u32 %v1957_v5, %v639_v4  ;;  %v1974_v12 = vld [vmem:[%s3876_s0 + $0x80] sm:$0xff]   ;;  %v1975_v13 = vld [vmem:[%s3876_s0 + $0x88] sm:$0xff]   ;;  %v1964_v16 = vld [vmem:[%s3876_s0 + $0x30] sm:$0xff]  }
  0x59   : > { %1886 = vmatprep.mubr.msk.bf16.mxu1 %vm539_vm2, %v1974_v12  ;;  %v1963_v15 = vld [vmem:[%s3876_s0 + $0x28] sm:$0xff]   ;;  %v1977_v17 = vld [vmem:[%s3876_s0 + $0x98] sm:$0xff]   ;;  %v1978_v18 = vld [vmem:[%s3876_s0 + $0xa0] sm:$0xff]  }
  0x5a   : > { %1852 = vmatprep.subr.bf16.mxu0 %v641_v7  ;;  %1918 = vmatprep.subr.bf16.mxu1 %v641_v7  ;;  %v1965_v19 = vld [vmem:[%s3876_s0 + $0x38] sm:$0xff]   ;;  %v1966_v20 = vld [vmem:[%s3876_s0 + $0x40] sm:$0xff]   ;;  %v1979_v21 = vld [vmem:[%s3876_s0 + $0xa8] sm:$0xff]  }
  0x5b   : > { %1853 = vmatpush3.bf16.msra.mxu0 %v641_v7  ;;  %1919 = vmatpush3.bf16.msra.mxu1 %v641_v7  ;;  %v1980_v22 = vld [vmem:[%s3876_s0 + $0xb0] sm:$0xff]   ;;  %v1967_v23 = vld [vmem:[%s3876_s0 + $0x48] sm:$0xff]   ;;  %v1981_v25 = vld [vmem:[%s3876_s0 + $0xb8] sm:$0xff]  }
  0x5c   : > { %v1968_v24 = vld [vmem:[%s3876_s0 + $0x50] sm:$0xff]   ;;  %v1982_v26 = vld [vmem:[%s3876_s0 + $0xc0] sm:$0xff]   ;;  %v1969_v27 = vld [vmem:[%s3876_s0 + $0x58] sm:$0xff]  }
  0x5d   : > { %v1970_v28 = vld [vmem:[%s3876_s0 + $0x60] sm:$0xff]   ;;  %v1983_v29 = vld [vmem:[%s3876_s0 + $0xc8] sm:$0xff]   ;;  %v1984_v30 = vld [vmem:[%s3876_s0 + $0xd0] sm:$0xff]  }
  0x5e   : > { %1855 = vmatmul.mubr.msk.bf16.vlgmr.msra.gmra.mxu0 %vm539_vm2, %v1959_v8  ;;  %1887 = vmatmul.mubr.msk.bf16.vlgmr.msra.gmra.mxu1 %vm539_vm2, %v1975_v13  ;;  %v1971_v31 = vld [vmem:[%s3876_s0 + $0x68] sm:$0xff]   ;;  %v1972_v32 = vld [vmem:[%s3876_s0 + $0x70] sm:$0xff]   ;;  %v1985_v33 = vld [vmem:[%s3876_s0 + $0xd8] sm:$0xff]  }
  0x5f   : > { %1858 = vmatprep.mubr.msk.bf16.mxu0 %vm539_vm2, %v1960_v9  ;;  %1890 = vmatprep.mubr.msk.bf16.mxu1 %vm539_vm2, %v1976_v14  ;;  %v1986_v34 = vld [vmem:[%s3876_s0 + $0xe0] sm:$0xff]   ;;  %v1973_v35 = vld [vmem:[%s3876_s0 + $0x78] sm:$0xff]   ;;  %v1987_v36 = vld [vmem:[%s3876_s0 + $0xe8] sm:$0xff]  }
  0x60   : > { %v1988_v37 = vld [vmem:[%s3876_s0 + $0xf0] sm:$0xff]   ;;  %v1989_v38 = vld [vmem:[%s3876_s0 + $0xf8] sm:$0xff]  }
  0x66   : > { %1859 = vmatmul.mubr.msk.bf16.gmra.mxu0 %vm539_vm2, %v1961_v10  ;;  %1891 = vmatmul.mubr.msk.bf16.gmra.mxu1 %vm539_vm2, %v1977_v17 }
  0x67   : > { %1862 = vmatprep.mubr.msk.bf16.mxu0 %vm539_vm2, %v1962_v11  ;;  %1894 = vmatprep.mubr.msk.bf16.mxu1 %vm539_vm2, %v1978_v18 }
  0x6e   : > { %1863 = vmatmul.mubr.msk.bf16.gmra.mxu0 %vm539_vm2, %v1963_v15  ;;  %1895 = vmatmul.mubr.msk.bf16.gmra.mxu1 %vm539_vm2, %v1979_v21 }
  0x6f   : > { %1866 = vmatprep.mubr.msk.bf16.mxu0 %vm539_vm2, %v1964_v16  ;;  %1898 = vmatprep.mubr.msk.bf16.mxu1 %vm539_vm2, %v1980_v22 }
  0x76   : > { %1867 = vmatmul.mubr.msk.bf16.gmra.mxu0 %vm539_vm2, %v1965_v19  ;;  %1899 = vmatmul.mubr.msk.bf16.gmra.mxu1 %vm539_vm2, %v1981_v25 }
  0x77   : > { %1870 = vmatprep.mubr.msk.bf16.mxu0 %vm539_vm2, %v1966_v20  ;;  %1902 = vmatprep.mubr.msk.bf16.mxu1 %vm539_vm2, %v1982_v26 }
  0x7e   : > { %1871 = vmatmul.mubr.msk.bf16.gmra.mxu0 %vm539_vm2, %v1967_v23  ;;  %1903 = vmatmul.mubr.msk.bf16.gmra.mxu1 %vm539_vm2, %v1983_v29 }
  0x7f   : > { %1874 = vmatprep.mubr.msk.bf16.mxu0 %vm539_vm2, %v1968_v24  ;;  %1906 = vmatprep.mubr.msk.bf16.mxu1 %vm539_vm2, %v1984_v30 }
  0x86   : > { %1875 = vmatmul.mubr.msk.bf16.gmra.mxu0 %vm539_vm2, %v1969_v27  ;;  %1907 = vmatmul.mubr.msk.bf16.gmra.mxu1 %vm539_vm2, %v1985_v33 }
  0x87   : > { %1878 = vmatprep.mubr.msk.bf16.mxu0 %vm539_vm2, %v1970_v28  ;;  %1910 = vmatprep.mubr.msk.bf16.mxu1 %vm539_vm2, %v1986_v34 }
  0x8e   : > { %1879 = vmatmul.mubr.msk.bf16.gmra.mxu0 %vm539_vm2, %v1971_v31  ;;  %1911 = vmatmul.mubr.msk.bf16.gmra.mxu1 %vm539_vm2, %v1987_v36 }
  0x8f   : > { %1882 = vmatprep.mubr.msk.bf16.mxu0 %vm539_vm2, %v1972_v32  ;;  %1914 = vmatprep.mubr.msk.bf16.mxu1 %vm539_vm2, %v1988_v37 }
  0x96   : > { %1883 = vmatmul.mubr.msk.bf16.gmra.mxu0 %vm539_vm2, %v1973_v35  ;;  %1915 = vmatmul.mubr.msk.bf16.gmra.mxu1 %vm539_vm2, %v1989_v38 }
 0x11e   : > { %v2368_v39 = vpop.f32.mrf.mxu0  ;;  %v2394_v55 = vpop.f32.mrf.mxu1 }
 0x11f   : > { %v1003_v47 = vmul.f32 %v2368_v39, %v2368_v39 }
 0x120   : > { %v2370_v40 = vpop.f32.mrf.mxu0  ;;  %v2401_v60 = vpop.f32.mrf.mxu1 }
 0x121   : > { %v1001_v43 = vmul.f32 %v2370_v40, %v2370_v40  ;;  %3941 = vst [vmem:[#allocation10_spill] sm:$0xff] %v2401_v60 }
 0x122   : > { %v2372_v41 = vpop.f32.mrf.mxu0  ;;  %v2408_v1 = vpop.f32.mrf.mxu1 }
 0x123   : > { %v1004_v51 = vmul.f32 %v2372_v41, %v2372_v41 }
 0x124   : > { %v2374_v42 = vpop.f32.mrf.mxu0  ;;  %v2415_v6 = vpop.f32.mrf.mxu1 }
 0x125   : > { %v932_v44 = vadd.f32 %v2374_v42, %v2370_v40  ;;  %v1002_v45 = vmul.f32 %v2374_v42, %v2374_v42  ;;  %3942 = vst [vmem:[#allocation11_spill] sm:$0xff] %v2415_v6 }
 0x126   : > { %v2382_v46 = vpop.f32.mrf.mxu0  ;;  %v2422_v11 = vpop.f32.mrf.mxu1 }
 0x127   : > { %v933_v48 = vadd.f32 %v2368_v39, %v932_v44  ;;  %v1065_v49 = vadd.f32 %v1002_v45, %v1001_v43  ;;  %v1007_v2 = vmul.f32 %v2382_v46, %v2382_v46 }
 0x128   : > { %v2387_v50 = vpop.f32.mrf.mxu0  ;;  %v2429_v16 = vpop.f32.mrf.mxu1 }
 0x129   : > { %v1066_v52 = vadd.f32 %v1065_v49, %v1003_v47  ;;  %v934_v53 = vadd.f32 %v2372_v41, %v933_v48  ;;  %v1005_v57 = vmul.f32 %v2387_v50, %v2387_v50  ;;  %3943 = vst [vmem:[#allocation12_spill] sm:$0xff] %v2429_v16 }
 0x12a   : > { %v2392_v54 = vpop.f32.mrf.mxu0  ;;  %v2436_v21 = vpop.f32.mrf.mxu1 }
 0x12b   : > { %v935_v56 = vadd.f32 %v934_v53, %v2387_v50  ;;  %v1067_v58 = vadd.f32 %v1066_v52, %v1004_v51  ;;  %v1008_v7 = vmul.f32 %v2392_v54, %v2392_v54 }
 0x12c   : > { %v2399_v59 = vpop.f32.mrf.mxu0  ;;  %v2448_v30 = vpop.f32.mrf.mxu1 }
 0x12d   : > { %v1068_v61 = vadd.f32 %v1067_v58, %v1005_v57  ;;  %v936_v62 = vadd.f32 %v935_v56, %v2399_v59  ;;  %v1006_v63 = vmul.f32 %v2399_v59, %v2399_v59  ;;  %3944 = vst [vmem:[#allocation13_spill] sm:$0xff] %v2448_v30 }
 0x12e   : > { %v2406_v0 = vpop.f32.mrf.mxu0  ;;  %v2460_v43 = vpop.f32.mrf.mxu1 }
 0x12f   : > { %v937_v3 = vadd.f32 %v2382_v46, %v936_v62  ;;  %v1069_v4 = vadd.f32 %v1068_v61, %v1006_v63  ;;  %v1011_v22 = vmul.f32 %v2406_v0, %v2406_v0 }
 0x130   : > { %v2413_v5 = vpop.f32.mrf.mxu0  ;;  %v2472_v56 = vpop.f32.mrf.mxu1 }
 0x131   : > { %v1070_v8 = vadd.f32 %v1069_v4, %v1007_v2  ;;  %v938_v9 = vadd.f32 %v2392_v54, %v937_v3  ;;  %v1009_v13 = vmul.f32 %v2413_v5, %v2413_v5  ;;  %3945 = vst [vmem:[#allocation14_spill] sm:$0xff] %v2472_v56 }
 0x132   : > { %v2420_v10 = vpop.f32.mrf.mxu0 }
 0x133   : > { %v939_v12 = vadd.f32 %v938_v9, %v2413_v5  ;;  %v1071_v14 = vadd.f32 %v1070_v8, %v1008_v7  ;;  %v1012_v26 = vmul.f32 %v2420_v10, %v2420_v10  ;;  %v2484_v7 = vpop.f32.mrf.mxu1 }
 0x134   : > { %v2427_v15 = vpop.f32.mrf.mxu0 }
 0x135   : > { %v1072_v17 = vadd.f32 %v1071_v14, %v1009_v13  ;;  %v940_v18 = vadd.f32 %v939_v12, %v2427_v15  ;;  %v1010_v19 = vmul.f32 %v2427_v15, %v2427_v15 }
 0x136   : > { %v2434_v20 = vpop.f32.mrf.mxu0 }
 0x137   : > { %v941_v23 = vadd.f32 %v2406_v0, %v940_v18  ;;  %v1073_v24 = vadd.f32 %v1072_v17, %v1010_v19  ;;  %v1015_v44 = vmul.f32 %v2434_v20, %v2434_v20 }
 0x138   : > { %v2441_v25 = vpop.f32.mrf.mxu0 }
 0x139   : > { %v1074_v27 = vadd.f32 %v1073_v24, %v1011_v22  ;;  %v942_v28 = vadd.f32 %v2420_v10, %v941_v23  ;;  %v1013_v32 = vmul.f32 %v2441_v25, %v2441_v25  ;;  %v2496_v22 = vpop.f32.mrf.mxu1 }
 0x13a   : > { %v2446_v29 = vpop.f32.mrf.mxu0  ;;  %3946 = vst [vmem:[#allocation15_spill] sm:$0xff] %v2496_v22 }
 0x13b   : > { %v943_v31 = vadd.f32 %v942_v28, %v2441_v25  ;;  %v1075_v33 = vadd.f32 %v1074_v27, %v1012_v26  ;;  %v1016_v49 = vmul.f32 %v2446_v29, %v2446_v29 }
 0x13c   : > { %v2453_v34 = vpop.f32.mrf.mxu0 }
 0x13d   : > { %v1076_v35 = vadd.f32 %v1075_v33, %v1013_v32  ;;  %v944_v36 = vadd.f32 %v943_v31, %v2453_v34  ;;  %v1014_v37 = vmul.f32 %v2453_v34, %v2453_v34 }
 0x13e   : > { %v2458_v38 = vpop.f32.mrf.mxu0 }
 0x13f   : > { %v945_v45 = vadd.f32 %v2434_v20, %v944_v36  ;;  %v1077_v47 = vadd.f32 %v1076_v35, %v1014_v37  ;;  %v1019_v8 = vmul.f32 %v2458_v38, %v2458_v38  ;;  %v2508_v35 = vpop.f32.mrf.mxu1 }
 0x140   : > { %v2465_v48 = vpop.f32.mrf.mxu0  ;;  %3947 = vst [vmem:[#allocation16_spill] sm:$0xff] %v2508_v35 }
 0x141   : > { %v1078_v51 = vadd.f32 %v1077_v47, %v1015_v44  ;;  %v946_v52 = vadd.f32 %v2446_v29, %v945_v45  ;;  %v1017_v58 = vmul.f32 %v2465_v48, %v2465_v48 }
 0x142   : > { %v2470_v53 = vpop.f32.mrf.mxu0 }
 0x143   : > { %v947_v57 = vadd.f32 %v946_v52, %v2465_v48  ;;  %v1079_v61 = vadd.f32 %v1078_v51, %v1016_v49  ;;  %v1020_v14 = vmul.f32 %v2470_v53, %v2470_v53 }
 0x144   : > { %v2477_v62 = vpop.f32.mrf.mxu0 }
 0x145   : > { %v1080_v63 = vadd.f32 %v1079_v61, %v1017_v58  ;;  %v948_v2 = vadd.f32 %v947_v57, %v2477_v62  ;;  %v1018_v3 = vmul.f32 %v2477_v62, %v2477_v62  ;;  %v2520_v57 = vpop.f32.mrf.mxu1 }
 0x146   : > { %v2482_v4 = vpop.f32.mrf.mxu0  ;;  %3948 = vst [vmem:[#allocation17_spill] sm:$0xff] %v2520_v57 }
 0x147   : > { %v949_v9 = vadd.f32 %v2458_v38, %v948_v2  ;;  %v1081_v12 = vadd.f32 %v1080_v63, %v1018_v3  ;;  %v1023_v36 = vmul.f32 %v2482_v4, %v2482_v4 }
 0x148   : > { %v2489_v13 = vpop.f32.mrf.mxu0 }
 0x149   : > { %v1082_v17 = vadd.f32 %v1081_v12, %v1019_v8  ;;  %v950_v18 = vadd.f32 %v2470_v53, %v949_v9  ;;  %v1021_v24 = vmul.f32 %v2489_v13, %v2489_v13 }
 0x14a   : > { %v2494_v19 = vpop.f32.mrf.mxu0 }
 0x14b   : > { %v951_v23 = vadd.f32 %v950_v18, %v2489_v13  ;;  %v1083_v26 = vadd.f32 %v1082_v17, %v1020_v14  ;;  %v1024_v47 = vmul.f32 %v2494_v19, %v2494_v19  ;;  %v2532_v14 = vpop.f32.mrf.mxu1 }
 0x14c   : > { %v2501_v27 = vpop.f32.mrf.mxu0  ;;  %3949 = vst [vmem:[#allocation18_spill] sm:$0xff] %v2532_v14 }
 0x14d   : > { %v1084_v28 = vadd.f32 %v1083_v26, %v1021_v24  ;;  %v952_v31 = vadd.f32 %v951_v23, %v2501_v27  ;;  %v1022_v32 = vmul.f32 %v2501_v27, %v2501_v27 }
 0x14e   : > { %v2506_v33 = vpop.f32.mrf.mxu0 }
 0x14f   : > { %v953_v37 = vadd.f32 %v2482_v4, %v952_v31  ;;  %v1085_v44 = vadd.f32 %v1084_v28, %v1022_v32  ;;  %v1027_v17 = vmul.f32 %v2506_v33, %v2506_v33 }
 0x150   : > { %v2513_v45 = vpop.f32.mrf.mxu0 }
 0x151   : > { %v1086_v49 = vadd.f32 %v1085_v44, %v1023_v36  ;;  %v954_v51 = vadd.f32 %v2494_v19, %v953_v37  ;;  %v1025_v61 = vmul.f32 %v2513_v45, %v2513_v45  ;;  %v2544_v36 = vpop.f32.mrf.mxu1 }
 0x152   : > { %v2518_v52 = vpop.f32.mrf.mxu0  ;;  %3950 = vst [vmem:[#allocation19_spill] sm:$0xff] %v2544_v36 }
 0x153   : > { %v955_v58 = vadd.f32 %v954_v51, %v2513_v45  ;;  %v1087_v63 = vadd.f32 %v1086_v49, %v1024_v47  ;;  %v1028_v26 = vmul.f32 %v2518_v52, %v2518_v52 }
 0x154   : > { %v2525_v2 = vpop.f32.mrf.mxu0 }
 0x155   : > { %v1088_v3 = vadd.f32 %v1087_v63, %v1025_v61  ;;  %v956_v8 = vadd.f32 %v955_v58, %v2525_v2  ;;  %v1026_v9 = vmul.f32 %v2525_v2, %v2525_v2  ;;  %v2554_v63 = vpop.f32.mrf.mxu1 }
 0x156   : > { %v2530_v12 = vpop.f32.mrf.mxu0  ;;  %3951 = vst [vmem:[#allocation20_spill] sm:$0xff] %v2554_v63 }
 0x157   : > { %v957_v18 = vadd.f32 %v2506_v33, %v956_v8  ;;  %v1089_v23 = vadd.f32 %v1088_v3, %v1026_v9  ;;  %v1031_v3 = vmul.f32 %v2530_v12, %v2530_v12 }
 0x158   : > { %v2537_v24 = vpop.f32.mrf.mxu0 }
 0x159   : > { %v1090_v28 = vadd.f32 %v1089_v23, %v1027_v17  ;;  %v958_v31 = vadd.f32 %v2518_v52, %v957_v18  ;;  %v1029_v44 = vmul.f32 %v2537_v24, %v2537_v24 }
 0x15a   : > { %v2542_v32 = vpop.f32.mrf.mxu0 }
 0x15b   : > { %v959_v37 = vadd.f32 %v958_v31, %v2537_v24  ;;  %v1091_v47 = vadd.f32 %v1090_v28, %v1028_v26  ;;  %v1032_v17 = vmul.f32 %v2542_v32, %v2542_v32  ;;  %v2562_v26 = vpop.f32.mrf.mxu1  ;;  %v1033_v28 = vmul.f32 %v2401_v60, %v2401_v60 }
 0x15c   : > { %v2549_v49 = vpop.f32.mrf.mxu0  ;;  %3952 = vst [vmem:[#allocation21_spill] sm:$0xff] %v2562_v26 }
 0x15d   : > { %v1092_v51 = vadd.f32 %v1091_v47, %v1029_v44  ;;  %v960_v58 = vadd.f32 %v959_v37, %v2549_v49  ;;  %v1030_v61 = vmul.f32 %v2549_v49, %v2549_v49  ;;  %v1034_v47 = vmul.f32 %v2415_v6, %v2415_v6 }
 0x15f   : > { %v961_v8 = vadd.f32 %v2530_v12, %v960_v58  ;;  %v1093_v9 = vadd.f32 %v1092_v51, %v1030_v61  ;;  %v2570_v58 = vpop.f32.mrf.mxu1  ;;  %v1035_v61 = vmul.f32 %v2394_v55, %v2394_v55 }
 0x160   : > { %3953 = vst [vmem:[#allocation22_spill] sm:$0xff] %v2570_v58 }
 0x161   : > { %v962_v18 = vadd.f32 %v2542_v32, %v961_v8  ;;  %v1094_v23 = vadd.f32 %v1093_v9, %v1031_v3  ;;  %v1036_v9 = vmul.f32 %v2408_v1, %v2408_v1 }
 0x163   : > { %v1095_v31 = vadd.f32 %v1094_v23, %v1032_v17  ;;  %v963_v37 = vadd.f32 %v962_v18, %v2401_v60  ;;  %v2578_v23 = vpop.f32.mrf.mxu1 }
 0x164   : > { %3954 = vst [vmem:[#allocation23_spill] sm:$0xff] %v2578_v23 }
 0x165   : > { %v964_v44 = vadd.f32 %v963_v37, %v2415_v6  ;;  %v1096_v51 = vadd.f32 %v1095_v31, %v1033_v28  ;;  %v1037_v28 = vmul.f32 %v2429_v16, %v2429_v16 }
 0x167   : > { %v965_v3 = vadd.f32 %v2394_v55, %v964_v44  ;;  %v1097_v8 = vadd.f32 %v1096_v51, %v1034_v47  ;;  %v1038_v44 = vmul.f32 %v2448_v30, %v2448_v30  ;;  %v2586_v47 = vpop.f32.mrf.mxu1  ;;  %v1039_v51 = vmul.f32 %v2422_v11, %v2422_v11 }
 0x168   : > { %3955 = vst [vmem:[#allocation24_spill] sm:$0xff] %v2586_v47 }
 0x169   : > { %v1098_v17 = vadd.f32 %v1097_v8, %v1035_v61  ;;  %v966_v18 = vadd.f32 %v2408_v1, %v965_v3  ;;  %v1040_v8 = vmul.f32 %v2436_v21, %v2436_v21 }
 0x16b   : > { %v967_v37 = vadd.f32 %v966_v18, %v2429_v16  ;;  %v1099_v31 = vadd.f32 %v1098_v17, %v1036_v9  ;;  %v2594_v17 = vpop.f32.mrf.mxu1 }
 0x16c   : > { %3956 = vst [vmem:[#allocation25_spill] sm:$0xff] %v2594_v17 }
 0x16d   : > { %v1100_v6 = vadd.f32 %v1099_v31, %v1037_v28  ;;  %v968_v60 = vadd.f32 %v967_v37, %v2448_v30  ;;  %v1041_v28 = vmul.f32 %v2472_v56, %v2472_v56 }
 0x16f   : > { %v969_v61 = vadd.f32 %v2422_v11, %v968_v60  ;;  %v1101_v3 = vadd.f32 %v1100_v6, %v1038_v44  ;;  %v1042_v60 = vmul.f32 %v2496_v22, %v2496_v22  ;;  %v2602_v6 = vpop.f32.mrf.mxu1  ;;  %v1043_v44 = vmul.f32 %v2460_v43, %v2460_v43 }
 0x170   : > { %3957 = vst [vmem:[#allocation26_spill] sm:$0xff] %v2602_v6 }
 0x171   : > { %v1102_v18 = vadd.f32 %v1101_v3, %v1039_v51  ;;  %v970_v9 = vadd.f32 %v2436_v21, %v969_v61  ;;  %v1044_v3 = vmul.f32 %v2484_v7, %v2484_v7 }
 0x173   : > { %v971_v37 = vadd.f32 %v970_v9, %v2472_v56  ;;  %v1103_v31 = vadd.f32 %v1102_v18, %v1040_v8  ;;  %v2610_v18 = vpop.f32.mrf.mxu1 }
 0x174   : > { %3958 = vst [vmem:[#allocation27_spill] sm:$0xff] %v2610_v18 }
 0x175   : > { %v1104_v30 = vadd.f32 %v1103_v31, %v1041_v28  ;;  %v972_v16 = vadd.f32 %v971_v37, %v2496_v22  ;;  %v1045_v28 = vmul.f32 %v2520_v57, %v2520_v57 }
 0x177   : > { %v973_v51 = vadd.f32 %v2460_v43, %v972_v16  ;;  %v1105_v61 = vadd.f32 %v1104_v30, %v1042_v60  ;;  %v1046_v16 = vmul.f32 %v2544_v36, %v2544_v36  ;;  %v2618_v30 = vpop.f32.mrf.mxu1  ;;  %v1047_v60 = vmul.f32 %v2508_v35, %v2508_v35 }
 0x178   : > { %3959 = vst [vmem:[#allocation28_spill] sm:$0xff] %v2618_v30 }
 0x179   : > { %v1106_v9 = vadd.f32 %v1105_v61, %v1043_v44  ;;  %v974_v8 = vadd.f32 %v2484_v7, %v973_v51  ;;  %v1048_v61 = vmul.f32 %v2532_v14, %v2532_v14 }
 0x17b   : > { %v975_v37 = vadd.f32 %v974_v8, %v2520_v57  ;;  %v1107_v31 = vadd.f32 %v1106_v9, %v1044_v3  ;;  %v2626_v9 = vpop.f32.mrf.mxu1 }
 0x17c   : > { %3960 = vst [vmem:[#allocation29_spill] sm:$0xff] %v2626_v9 }
 0x17d   : > { %v1108_v22 = vadd.f32 %v1107_v31, %v1045_v28  ;;  %v976_v56 = vadd.f32 %v975_v37, %v2544_v36  ;;  %v1049_v28 = vmul.f32 %v2562_v26, %v2562_v26 }
 0x17f   : > { %v977_v44 = vadd.f32 %v2508_v35, %v976_v56  ;;  %v1109_v51 = vadd.f32 %v1108_v22, %v1046_v16  ;;  %v1050_v56 = vmul.f32 %v2578_v23, %v2578_v23  ;;  %v2634_v22 = vpop.f32.mrf.mxu1  ;;  %v1051_v16 = vmul.f32 %v2554_v63, %v2554_v63 }
 0x180   : > { %3961 = vst [vmem:[#allocation30_spill] sm:$0xff] %v2634_v22 }
 0x181   : > { %v1110_v8 = vadd.f32 %v1109_v51, %v1047_v60  ;;  %v978_v3 = vadd.f32 %v2532_v14, %v977_v44  ;;  %v1052_v51 = vmul.f32 %v2570_v58, %v2570_v58 }
 0x183   : > { %v979_v37 = vadd.f32 %v978_v3, %v2562_v26  ;;  %v1111_v31 = vadd.f32 %v1110_v8, %v1048_v61  ;;  %v2642_v8 = vpop.f32.mrf.mxu1 }
 0x184   : > { %3962 = vst [vmem:[#allocation31_spill] sm:$0xff] %v2642_v8 }
 0x185   : > { %v1112_v36 = vadd.f32 %v1111_v31, %v1049_v28  ;;  %v980_v57 = vadd.f32 %v979_v37, %v2578_v23  ;;  %v1053_v28 = vmul.f32 %v2594_v17, %v2594_v17 }
 0x187   : > { %v981_v60 = vadd.f32 %v2554_v63, %v980_v57  ;;  %v1113_v44 = vadd.f32 %v1112_v36, %v1050_v56  ;;  %v1054_v57 = vmul.f32 %v2610_v18, %v2610_v18  ;;  %v2650_v36 = vpop.f32.mrf.mxu1  ;;  %v1055_v56 = vmul.f32 %v2586_v47, %v2586_v47 }
 0x189   : > { %v1114_v3 = vadd.f32 %v1113_v44, %v1051_v16  ;;  %v982_v61 = vadd.f32 %v2570_v58, %v981_v60  ;;  %v1056_v44 = vmul.f32 %v2602_v6, %v2602_v6 }
 0x18b   : > { %v983_v37 = vadd.f32 %v982_v61, %v2594_v17  ;;  %v1115_v31 = vadd.f32 %v1114_v3, %v1052_v51  ;;  %v2658_v3 = vpop.f32.mrf.mxu1 }
 0x18c   : > { %3963 = vst [vmem:[#allocation32_spill] sm:$0xff] %v2658_v3 }
 0x18d   : > { %v1116_v23 = vadd.f32 %v1115_v31, %v1053_v28  ;;  %v984_v26 = vadd.f32 %v983_v37, %v2610_v18  ;;  %v1057_v28 = vmul.f32 %v2626_v9, %v2626_v9 }
 0x18f   : > { %v985_v16 = vadd.f32 %v2586_v47, %v984_v26  ;;  %v1117_v60 = vadd.f32 %v1116_v23, %v1054_v57  ;;  %v1058_v26 = vmul.f32 %v2642_v8, %v2642_v8  ;;  %v2666_v23 = vpop.f32.mrf.mxu1  ;;  %v1059_v57 = vmul.f32 %v2618_v30, %v2618_v30 }
 0x191   : > { %v1118_v61 = vadd.f32 %v1117_v60, %v1055_v56  ;;  %v986_v51 = vadd.f32 %v2602_v6, %v985_v16  ;;  %v1060_v60 = vmul.f32 %v2634_v22, %v2634_v22 }
 0x193   : > { %v987_v37 = vadd.f32 %v986_v51, %v2626_v9  ;;  %v1119_v31 = vadd.f32 %v1118_v61, %v1056_v44  ;;  %v2674_v61 = vpop.f32.mrf.mxu1 }
 0x194   : > { %3964 = vst [vmem:[#allocation33_spill] sm:$0xff] %v2674_v61 }
 0x195   : > { %v1120_v18 = vadd.f32 %v1119_v31, %v1057_v28  ;;  %v988_v17 = vadd.f32 %v987_v37, %v2642_v8  ;;  %v1061_v28 = vmul.f32 %v2658_v3, %v2658_v3 }
 0x197   : > { %v989_v56 = vadd.f32 %v2618_v30, %v988_v17  ;;  %v1121_v16 = vadd.f32 %v1120_v18, %v1058_v26  ;;  %v1062_v17 = vmul.f32 %v2674_v61, %v2674_v61  ;;  %v1063_v18 = vmul.f32 %v2650_v36, %v2650_v36 }
 0x199   : > { %v1122_v51 = vadd.f32 %v1121_v16, %v1059_v57  ;;  %v990_v44 = vadd.f32 %v2634_v22, %v989_v56  ;;  %v1064_v56 = vmul.f32 %v2666_v23, %v2666_v23 }
 0x19b   : > { %v991_v37 = vadd.f32 %v990_v44, %v2658_v3  ;;  %v1123_v31 = vadd.f32 %v1122_v51, %v1060_v60 }
 0x19d   : > { %v1124_v8 = vadd.f32 %v1123_v31, %v1061_v28  ;;  %v992_v9 = vadd.f32 %v991_v37, %v2674_v61 }
 0x19f   : > { %v993_v26 = vadd.f32 %v2650_v36, %v992_v9  ;;  %v1125_v57 = vadd.f32 %v1124_v8, %v1062_v17 }
 0x1a1   : > { %v994_v16 = vadd.f32 %v2666_v23, %v993_v26  ;;  %v1126_v44 = vadd.f32 %v1125_v57, %v1063_v18 }
 0x1a3   : > { %v995_v3 = vrot.slane %v994_v16, 4  ;;  %v1127_v60 = vadd.f32 %v1126_v44, %v1064_v56  ;;  %v3983_v56 = vld [vmem:[#allocation30_spill] sm:$0xff]  ;;  %v3985_v44 = vld [vmem:[#allocation33_spill] sm:$0xff] }
 0x1a5   : > { %v996_v51 = vadd.f32 %v995_v3, %v994_v16  ;;  %v1128_v28 = vrot.slane %v1127_v60, 4  ;;  %v3984_v3 = vld [vmem:[#allocation32_spill] sm:$0xff] }
 0x1a7   : > { %v997_v37 = vrot.slane %v996_v51, 2  ;;  %v1129_v31 = vadd.f32 %v1128_v28, %v1127_v60  ;;  %v3969_v28 = vld [vmem:[#allocation14_spill] sm:$0xff]  ;;  %v3971_v60 = vld [vmem:[#allocation17_spill] sm:$0xff] }
 0x1a9   : > { %v998_v22 = vadd.f32 %v997_v37, %v996_v51  ;;  %v1130_v61 = vrot.slane %v1129_v31, 2  ;;  %v3977_v37 = vld [vmem:[#allocation27_spill] sm:$0xff] }
 0x1aa   : > { %v3981_v51 = vld [vmem:[#allocation31_spill] sm:$0xff] }
 0x1ab   : > { %v999_v30 = vrot.slane %v998_v22, 1  ;;  %v1131_v6 = vadd.f32 %v1130_v61, %v1129_v31  ;;  %v3970_v31 = vld [vmem:[#allocation15_spill] sm:$0xff] }
 0x1ad   : > { %v1000_v47 = vadd.f32 %v999_v30, %v998_v22  ;;  %v1132_v58 = vrot.slane %v1131_v6, 1 }
 0x1af   : > { %v1133_v9 = vadd.f32 %v1132_v58, %v1131_v6  ;;  %v2688_v8 = vmul.f32 0.001953125, %v1000_v47  ;;  %v3979_v47 = vld [vmem:[#allocation26_spill] sm:$0xff]  ;;  %v3980_v58 = vld [vmem:[#allocation29_spill] sm:$0xff] }
 0x1b1   : > { %v1135_v17 = vmul.f32 0.001953125, %v1133_v9  ;;  %v1136_v26 = vmul.f32 %v2688_v8, %v2688_v8  ;;  %v3986_v22 = vsub.f32 %v2370_v40, %v2688_v8  ;;  %v3987_v30 = vsub.f32 %v2374_v42, %v2688_v8 }
 0x1b2   : > { %v3988_v16 = vsub.f32 %v2368_v39, %v2688_v8  ;;  %v3989_v63 = vsub.f32 %v2372_v41, %v2688_v8 }
 0x1b3   : > { %v1137_v18 = vsub.f32 %v1135_v17, %v1136_v26  ;;  %v3967_v17 = vld [vmem:[#allocation12_spill] sm:$0xff]  ;;  %v3968_v26 = vld [vmem:[#allocation13_spill] sm:$0xff] }
 0x1b5   : > { %v1138_v57 = vmax.f32 %v1137_v18, 0.0  ;;  %v3972_v18 = vld [vmem:[#allocation19_spill] sm:$0xff] }
 0x1b7   : > { %v1203_v6 = vadd.f32 1e-05, %v1138_v57  ;;  %v3965_v57 = vld [vmem:[#allocation10_spill] sm:$0xff] }
 0x1b9   : > { %1990 = vrsqrt.f32 %v1203_v6  ;;  %v3966_v6 = vld [vmem:[#allocation11_spill] sm:$0xff] }
 0x1c6   : > { %v2812_v35 = vpop.eup %1990 }
 0x1c7   : > { %v2826_v61 = vmul.f32 %v2812_v35, %v3986_v22  ;;  %v2832_v14 = vmul.f32 %v2812_v35, %v3987_v30  ;;  %v2838_v9 = vmul.f32 %v2812_v35, %v3988_v16  ;;  %v2844_v40 = vmul.f32 %v2812_v35, %v3989_v63 }
 0x1c8   : > { %v3990_v22 = vsub.f32 %v2387_v50, %v2688_v8  ;;  %v3991_v30 = vsub.f32 %v2399_v59, %v2688_v8  ;;  %v3992_v16 = vsub.f32 %v2382_v46, %v2688_v8  ;;  %v3993_v63 = vsub.f32 %v2392_v54, %v2688_v8 }
 0x1ca   : > { %v2850_v42 = vmul.f32 %v2812_v35, %v3990_v22  ;;  %v2856_v39 = vmul.f32 %v2812_v35, %v3991_v30  ;;  %v2862_v41 = vmul.f32 %v2812_v35, %v3992_v16  ;;  %v2868_v50 = vmul.f32 %v2812_v35, %v3993_v63 }
 0x1cb   : > { %v3994_v22 = vsub.f32 %v2413_v5, %v2688_v8  ;;  %v3995_v30 = vsub.f32 %v2427_v15, %v2688_v8  ;;  %v3996_v16 = vsub.f32 %v2406_v0, %v2688_v8  ;;  %v3997_v63 = vsub.f32 %v2420_v10, %v2688_v8 }
 0x1cd   : > { %v2874_v59 = vmul.f32 %v2812_v35, %v3994_v22  ;;  %v2880_v46 = vmul.f32 %v2812_v35, %v3995_v30  ;;  %v2886_v54 = vmul.f32 %v2812_v35, %v3996_v16  ;;  %v2892_v5 = vmul.f32 %v2812_v35, %v3997_v63 }
 0x1ce   : > { %v3998_v22 = vsub.f32 %v2441_v25, %v2688_v8  ;;  %v3999_v30 = vsub.f32 %v2453_v34, %v2688_v8  ;;  %v4000_v16 = vsub.f32 %v2434_v20, %v2688_v8  ;;  %v4001_v63 = vsub.f32 %v2446_v29, %v2688_v8 }
 0x1d0   : > { %v2898_v15 = vmul.f32 %v2812_v35, %v3998_v22  ;;  %v2904_v0 = vmul.f32 %v2812_v35, %v3999_v30  ;;  %v2910_v10 = vmul.f32 %v2812_v35, %v4000_v16  ;;  %v2916_v25 = vmul.f32 %v2812_v35, %v4001_v63 }
 0x1d1   : > { %v4002_v22 = vsub.f32 %v2465_v48, %v2688_v8  ;;  %v4003_v30 = vsub.f32 %v2477_v62, %v2688_v8  ;;  %v4004_v16 = vsub.f32 %v2458_v38, %v2688_v8  ;;  %v4005_v63 = vsub.f32 %v2470_v53, %v2688_v8 }
 0x1d3   : > { %v2922_v34 = vmul.f32 %v2812_v35, %v4002_v22  ;;  %v2928_v20 = vmul.f32 %v2812_v35, %v4003_v30  ;;  %v2934_v29 = vmul.f32 %v2812_v35, %v4004_v16  ;;  %v2940_v48 = vmul.f32 %v2812_v35, %v4005_v63 }
 0x1d4   : > { %v4006_v22 = vsub.f32 %v2489_v13, %v2688_v8  ;;  %v4007_v30 = vsub.f32 %v2501_v27, %v2688_v8  ;;  %v4008_v16 = vsub.f32 %v2482_v4, %v2688_v8  ;;  %v4009_v63 = vsub.f32 %v2494_v19, %v2688_v8 }
 0x1d6   : > { %v2946_v62 = vmul.f32 %v2812_v35, %v4006_v22  ;;  %v2952_v38 = vmul.f32 %v2812_v35, %v4007_v30  ;;  %v2958_v53 = vmul.f32 %v2812_v35, %v4008_v16  ;;  %v2964_v13 = vmul.f32 %v2812_v35, %v4009_v63 }
 0x1d7   : > { %v4010_v22 = vsub.f32 %v2513_v45, %v2688_v8  ;;  %v4011_v30 = vsub.f32 %v2525_v2, %v2688_v8  ;;  %v4012_v16 = vsub.f32 %v2506_v33, %v2688_v8  ;;  %v4013_v63 = vsub.f32 %v2518_v52, %v2688_v8 }
 0x1d9   : > { %v2970_v27 = vmul.f32 %v2812_v35, %v4010_v22  ;;  %v2976_v4 = vmul.f32 %v2812_v35, %v4011_v30  ;;  %v2982_v19 = vmul.f32 %v2812_v35, %v4012_v16  ;;  %v2988_v45 = vmul.f32 %v2812_v35, %v4013_v63 }
 0x1da   : > { %v4014_v22 = vsub.f32 %v2537_v24, %v2688_v8  ;;  %v4015_v30 = vsub.f32 %v2549_v49, %v2688_v8  ;;  %v4016_v16 = vsub.f32 %v2530_v12, %v2688_v8  ;;  %v4017_v63 = vsub.f32 %v2542_v32, %v2688_v8 }
 0x1dc   : > { %v2994_v2 = vmul.f32 %v2812_v35, %v4014_v22  ;;  %v3000_v33 = vmul.f32 %v2812_v35, %v4015_v30  ;;  %v3006_v52 = vmul.f32 %v2812_v35, %v4016_v16  ;;  %v3012_v24 = vmul.f32 %v2812_v35, %v4017_v63 }
 0x1dd   : > { %v4018_v22 = vsub.f32 %v3965_v57, %v2688_v8  ;;  %v4019_v30 = vsub.f32 %v3966_v6, %v2688_v8  ;;  %v4020_v16 = vsub.f32 %v2394_v55, %v2688_v8  ;;  %v4021_v63 = vsub.f32 %v2408_v1, %v2688_v8 }
 0x1df   : > { %v3018_v49 = vmul.f32 %v2812_v35, %v4018_v22  ;;  %v3024_v12 = vmul.f32 %v2812_v35, %v4019_v30  ;;  %v3030_v32 = vmul.f32 %v2812_v35, %v4020_v16  ;;  %v3036_v57 = vmul.f32 %v2812_v35, %v4021_v63 }
 0x1e0   : > { %v4022_v22 = vsub.f32 %v3967_v17, %v2688_v8  ;;  %v4023_v30 = vsub.f32 %v3968_v26, %v2688_v8  ;;  %v4024_v16 = vsub.f32 %v2422_v11, %v2688_v8  ;;  %v4025_v63 = vsub.f32 %v2436_v21, %v2688_v8 }
 0x1e2   : > { %v3042_v6 = vmul.f32 %v2812_v35, %v4022_v22  ;;  %v3048_v55 = vmul.f32 %v2812_v35, %v4023_v30  ;;  %v3054_v1 = vmul.f32 %v2812_v35, %v4024_v16  ;;  %v3060_v17 = vmul.f32 %v2812_v35, %v4025_v63 }
 0x1e3   : > { %v4026_v22 = vsub.f32 %v3969_v28, %v2688_v8  ;;  %v4027_v30 = vsub.f32 %v3970_v31, %v2688_v8  ;;  %v4028_v16 = vsub.f32 %v2460_v43, %v2688_v8  ;;  %v4030_v63 = vsub.f32 %v2484_v7, %v2688_v8 }
 0x1e5   : > { %v3066_v26 = vmul.f32 %v2812_v35, %v4026_v22  ;;  %v3072_v11 = vmul.f32 %v2812_v35, %v4027_v30  ;;  %v3078_v21 = vmul.f32 %v2812_v35, %v4028_v16  ;;  %v3084_v28 = vmul.f32 %v2812_v35, %v4030_v63  ;;  %v4036_v16 = vld [vmem:[#allocation16_spill] sm:$0xff]  ;;  %v4039_v63 = vld [vmem:[#allocation18_spill] sm:$0xff] }
 0x1e6   : > { %v4032_v22 = vsub.f32 %v3971_v60, %v2688_v8  ;;  %v4034_v30 = vsub.f32 %v3972_v18, %v2688_v8 }
 0x1e7   : > { %4029 = vst [vmem:[#allocation10_spill] sm:$0xff] %v3078_v21  ;;  %4031 = vst [vmem:[#allocation11_spill] sm:$0xff] %v3084_v28  ;;  %v4037_v21 = vsub.f32 %v4036_v16, %v2688_v8  ;;  %v4040_v28 = vsub.f32 %v4039_v63, %v2688_v8 }
 0x1e8   : > { %v3090_v31 = vmul.f32 %v2812_v35, %v4032_v22  ;;  %v3096_v43 = vmul.f32 %v2812_v35, %v4034_v30  ;;  %v4042_v22 = vld [vmem:[#allocation21_spill] sm:$0xff]  ;;  %v4045_v30 = vld [vmem:[#allocation23_spill] sm:$0xff] }
 0x1e9   : > { %v3102_v7 = vmul.f32 %v2812_v35, %v4037_v21  ;;  %v3108_v60 = vmul.f32 %v2812_v35, %v4040_v28  ;;  %v4047_v21 = vld [vmem:[#allocation20_spill] sm:$0xff]  ;;  %v4050_v28 = vld [vmem:[#allocation22_spill] sm:$0xff] }
 0x1ea   : > { %4033 = vst [vmem:[#allocation12_spill] sm:$0xff] %v3090_v31  ;;  %4035 = vst [vmem:[#allocation13_spill] sm:$0xff] %v3096_v43  ;;  %v4043_v31 = vsub.f32 %v4042_v22, %v2688_v8  ;;  %v4046_v43 = vsub.f32 %v4045_v30, %v2688_v8 }
 0x1eb   : > { %4038 = vst [vmem:[#allocation14_spill] sm:$0xff] %v3102_v7  ;;  %4041 = vst [vmem:[#allocation15_spill] sm:$0xff] %v3108_v60  ;;  %v4048_v7 = vsub.f32 %v4047_v21, %v2688_v8  ;;  %v4051_v60 = vsub.f32 %v4050_v28, %v2688_v8 }
 0x1ec   : > { %v3114_v18 = vmul.f32 %v2812_v35, %v4043_v31  ;;  %v3120_v16 = vmul.f32 %v2812_v35, %v4046_v43  ;;  %v4052_v31 = vld [vmem:[#allocation25_spill] sm:$0xff]  ;;  %v4054_v43 = vsub.f32 %v3977_v37, %v2688_v8  ;;  %v4060_v37 = vsub.f32 %v3980_v58, %v2688_v8 }
 0x1ed   : > { %v3126_v63 = vmul.f32 %v2812_v35, %v4048_v7  ;;  %v3132_v22 = vmul.f32 %v2812_v35, %v4051_v60  ;;  %v4055_v7 = vld [vmem:[#allocation24_spill] sm:$0xff]  ;;  %v4058_v60 = vsub.f32 %v3979_v47, %v2688_v8 }
 0x1ee   : > { %4044 = vst [vmem:[#allocation17_spill] sm:$0xff] %v3114_v18  ;;  %v4053_v18 = vsub.f32 %v4052_v31, %v2688_v8  ;;  %v3144_v21 = vmul.f32 %v2812_v35, %v4054_v43  ;;  %v3166_v43 = vmul.f32 %v2812_v35, %v4060_v37  ;;  %v4065_v37 = vsub.f32 %v3984_v3, %v2688_v8 }
 0x1ef   : > { %4049 = vst [vmem:[#allocation19_spill] sm:$0xff] %v3126_v63  ;;  %v4056_v63 = vsub.f32 %v4055_v7, %v2688_v8  ;;  %v3156_v31 = vmul.f32 %v2812_v35, %v4058_v60  ;;  %v4061_v7 = vsub.f32 %v3981_v51, %v2688_v8 }
 0x1f0   : > { %v3138_v30 = vmul.f32 %v2812_v35, %v4053_v18  ;;  %v3160_v18 = vld [vmem:[%s268_s24] ss:$0 sm:$0xff]  ;;  %v3190_v51 = vmul.f32 %v2812_v35, %v4065_v37  ;;  %s1747_s24 = sshll.u32 %s2225_s10, 7 }
 0x1f1   : > { %v3150_v28 = vmul.f32 %v2812_v35, %v4056_v63  ;;  %4059 = vst [vmem:[#allocation26_spill] sm:$0xff] %v3156_v31  ;;  %v3172_v63 = vmul.f32 %v2812_v35, %v4061_v7  ;;  %v4064_v31 = vsub.f32 %v3983_v56, %v2688_v8  ;;  %v4066_v7 = vsub.f32 %v3985_v44, %v2688_v8  ;;  %s3823_s10 = scalar_lea.vmem [#allocation7], %s1747_s24 }
 0x1f2   : > { %v3212_v37 = vmul.f32 %v3160_v18, %v2826_v61  ;;  %v3216_v44 = vmul.f32 %v3160_v18, %v2832_v14  ;;  %v3236_v14 = vmul.f32 %v3160_v18, %v2862_v41  ;;  %v3244_v61 = vmul.f32 %v3160_v18, %v2874_v59 }
 0x1f3   : > { %4057 = vst [vmem:[#allocation27_spill] sm:$0xff] %v3150_v28  ;;  %v4062_v28 = vld [vmem:[#allocation28_spill] sm:$0xff]  ;;  %v3184_v58 = vmul.f32 %v2812_v35, %v4064_v31  ;;  %v4068_v31 = vsub.f32 %v2666_v23, %v2688_v8  ;;  %v3232_v23 = vmul.f32 %v3160_v18, %v2856_v39  ;;  %v3260_v39 = vmul.f32 %v3160_v18, %v2898_v15 }
 0x1f4   : > { %v4063_v47 = vsub.f32 %v4062_v28, %v2688_v8  ;;  %v3196_v28 = vmul.f32 %v2812_v35, %v4066_v7  ;;  %v3224_v7 = vmul.f32 %v3160_v18, %v2844_v40  ;;  %v3252_v40 = vmul.f32 %v3160_v18, %v2886_v54 }
 0x1f5   : > { %v3208_v3 = vmul.f32 %v2812_v35, %v4068_v31  ;;  %v3264_v41 = vmul.f32 %v3160_v18, %v2904_v0  ;;  %v3272_v59 = vmul.f32 %v3160_v18, %v2916_v25  ;;  %v3280_v54 = vmul.f32 %v3160_v18, %v2928_v20  ;;  %v4076_v31 = vld [vmem:[#allocation13_spill] sm:$0xff] }
 0x1f6   : > { %v3178_v60 = vmul.f32 %v2812_v35, %v4063_v47  ;;  %v4067_v47 = vsub.f32 %v2650_v36, %v2688_v8  ;;  %v3220_v36 = vmul.f32 %v3160_v18, %v2838_v9  ;;  %v3240_v8 = vmul.f32 %v3160_v18, %v2868_v50 }
 0x1f7   : > { %v3248_v9 = vmul.f32 %v3160_v18, %v2880_v46  ;;  %v3268_v50 = vmul.f32 %v3160_v18, %v2910_v10  ;;  %v3276_v46 = vmul.f32 %v3160_v18, %v2922_v34  ;;  %v3288_v15 = vmul.f32 %v3160_v18, %v2940_v48 }
 0x1f8   : > { %v3202_v56 = vmul.f32 %v2812_v35, %v4067_v47  ;;  %v3228_v35 = vmul.f32 %v3160_v18, %v2850_v42  ;;  %v3256_v42 = vmul.f32 %v3160_v18, %v2892_v5  ;;  %v3284_v5 = vmul.f32 %v3160_v18, %v2934_v29  ;;  %v4074_v47 = vld [vmem:[#allocation12_spill] sm:$0xff] }
 0x1f9   : > { %v3292_v0 = vmul.f32 %v3160_v18, %v2946_v62  ;;  %v3296_v10 = vmul.f32 %v3160_v18, %v2952_v38  ;;  %v3300_v25 = vmul.f32 %v3160_v18, %v2958_v53  ;;  %v3304_v34 = vmul.f32 %v3160_v18, %v2964_v13 }
 0x1fa   : > { %v3308_v20 = vmul.f32 %v3160_v18, %v2970_v27  ;;  %v3312_v29 = vmul.f32 %v3160_v18, %v2976_v4  ;;  %v3316_v48 = vmul.f32 %v3160_v18, %v2982_v19  ;;  %v3320_v62 = vmul.f32 %v3160_v18, %v2988_v45 }
 0x1fb   : > { %v3324_v38 = vmul.f32 %v3160_v18, %v2994_v2  ;;  %v3328_v53 = vmul.f32 %v3160_v18, %v3000_v33  ;;  %v3332_v13 = vmul.f32 %v3160_v18, %v3006_v52  ;;  %v3336_v27 = vmul.f32 %v3160_v18, %v3012_v24 }
 0x1fc   : > { %v3340_v4 = vmul.f32 %v3160_v18, %v3018_v49  ;;  %v3344_v19 = vmul.f32 %v3160_v18, %v3024_v12  ;;  %v3348_v45 = vmul.f32 %v3160_v18, %v3030_v32  ;;  %v3352_v2 = vmul.f32 %v3160_v18, %v3036_v57  ;;  %v4071_v57 = vld [vmem:[#allocation10_spill] sm:$0xff] }
 0x1fd   : > { %v3356_v33 = vmul.f32 %v3160_v18, %v3042_v6  ;;  %v3360_v52 = vmul.f32 %v3160_v18, %v3048_v55  ;;  %v3364_v24 = vmul.f32 %v3160_v18, %v3054_v1  ;;  %v3368_v49 = vmul.f32 %v3160_v18, %v3060_v17  ;;  %v4073_v55 = vld [vmem:[#allocation11_spill] sm:$0xff] }
 0x1fe   : > { %v3372_v12 = vmul.f32 %v3160_v18, %v3066_v26  ;;  %v3376_v32 = vmul.f32 %v3160_v18, %v3072_v11  ;;  %v3380_v6 = vmul.f32 %v3160_v18, %v4071_v57  ;;  %v3384_v1 = vmul.f32 %v3160_v18, %v4073_v55 }
 0x1ff   : > { %v3388_v17 = vmul.f32 %v3160_v18, %v4074_v47  ;;  %v3392_v26 = vmul.f32 %v3160_v18, %v4076_v31  ;;  %v3408_v47 = vmul.f32 %v3160_v18, %v3120_v16 }
 0x200   : > { %4069 = vst [vmem:[#allocation29_spill] sm:$0xff] %v3372_v12  ;;  %4070 = vst [vmem:[#allocation31_spill] sm:$0xff] %v3376_v32  ;;  %v4077_v12 = vld [vmem:[#allocation14_spill] sm:$0xff]  ;;  %v4078_v32 = vld [vmem:[#allocation15_spill] sm:$0xff] }
 0x201   : > { %4072 = vst [vmem:[#allocation30_spill] sm:$0xff] %v3380_v6  ;;  %4075 = vst [vmem:[#allocation32_spill] sm:$0xff] %v3388_v17  ;;  %v3396_v11 = vmul.f32 %v3160_v18, %v4077_v12  ;;  %v3400_v57 = vmul.f32 %v3160_v18, %v4078_v32  ;;  %v4079_v6 = vld [vmem:[#allocation17_spill] sm:$0xff]  ;;  %v4082_v17 = vld [vmem:[#allocation19_spill] sm:$0xff]  ;;  %v3416_v12 = vmul.f32 %v3160_v18, %v3132_v22 }
 0x202   : > { %v3404_v55 = vmul.f32 %v3160_v18, %v4079_v6  ;;  %4081 = vst [vmem:[#allocation16_spill] sm:$0xff] %v3408_v47  ;;  %v3412_v31 = vmul.f32 %v3160_v18, %v4082_v17  ;;  %v3420_v32 = vmul.f32 %v3160_v18, %v3138_v30  ;;  %v3424_v6 = vmul.f32 %v3160_v18, %v3144_v21  ;;  %v4085_v47 = vld [vmem:[#allocation26_spill] sm:$0xff] }
 0x203   : > { %v3432_v17 = vmul.f32 %v3160_v18, %v4085_v47  ;;  %v3440_v22 = vmul.f32 %v3160_v18, %v3166_v43  ;;  %v3444_v30 = vmul.f32 %v3160_v18, %v3172_v63  ;;  %v3448_v21 = vmul.f32 %v3160_v18, %v3178_v60 }
 0x204   : > { %4080 = vst [vmem:[#allocation33_spill] sm:$0xff] %v3404_v55  ;;  %4083 = vst [vmem:[#allocation18_spill] sm:$0xff] %v3412_v31  ;;  %v4084_v55 = vld [vmem:[#allocation27_spill] sm:$0xff]  ;;  %v3456_v47 = vmul.f32 %v3160_v18, %v3190_v51  ;;  %v3460_v43 = vmul.f32 %v3160_v18, %v3196_v28  ;;  %v3464_v63 = vmul.f32 %v3160_v18, %v3202_v56 }
 0x205   : > { %v3428_v16 = vmul.f32 %v3160_v18, %v4084_v55  ;;  %v3436_v31 = vld [vmem:[%s276_s21] ss:$0 sm:$0xff]  ;;  %v3452_v55 = vmul.f32 %v3160_v18, %v3184_v58  ;;  %v3468_v60 = vmul.f32 %v3160_v18, %v3208_v3  ;;  %s1816_s21 = sshll.u32 (%p4155_p4), %s2131_s19, 3 }
 0x206   : > { %v3472_v58 = vadd.f32 %v3436_v31, %v3212_v37  ;;  %v3476_v51 = vadd.f32 %v3436_v31, %v3216_v44  ;;  %v3480_v28 = vadd.f32 %v3436_v31, %v3220_v36  ;;  %v3484_v56 = vadd.f32 %v3436_v31, %v3224_v7  ;;  %s1547_s22 = scalar_lea.vmem (%p4155_p4), %s3880_s4, %s1816_s21 }
 0x207   : > { %v3488_v18 = vadd.f32 %v3436_v31, %v3228_v35  ;;  %v3492_v3 = vadd.f32 %v3436_v31, %v3232_v23  ;;  %v3496_v37 = vadd.f32 %v3436_v31, %v3236_v14  ;;  %v3500_v44 = vadd.f32 %v3436_v31, %v3240_v8 }
 0x208   : > { %v3504_v36 = vadd.f32 %v3436_v31, %v3244_v61  ;;  %v3508_v7 = vadd.f32 %v3436_v31, %v3248_v9  ;;  %v3512_v35 = vadd.f32 %v3436_v31, %v3252_v40  ;;  %v3516_v23 = vadd.f32 %v3436_v31, %v3256_v42 }
 0x209   : > { %4086 = vst [vmem:[#allocation21_spill] sm:$0xff] %v3488_v18  ;;  %4087 = vst [vmem:[#allocation23_spill] sm:$0xff] %v3492_v3  ;;  %v3520_v14 = vadd.f32 %v3436_v31, %v3260_v39  ;;  %v3524_v8 = vadd.f32 %v3436_v31, %v3264_v41  ;;  %v3528_v61 = vadd.f32 %v3436_v31, %v3268_v50 }
 0x20a   : > { %4088 = vst [vmem:[#allocation20_spill] sm:$0xff] %v3496_v37  ;;  %4089 = vst [vmem:[#allocation22_spill] sm:$0xff] %v3500_v44  ;;  %v3532_v9 = vadd.f32 %v3436_v31, %v3272_v59  ;;  %v3536_v40 = vadd.f32 %v3436_v31, %v3276_v46  ;;  %v3540_v42 = vadd.f32 %v3436_v31, %v3280_v54 }
 0x20b   : > { %4090 = vst [vmem:[#allocation25_spill] sm:$0xff] %v3504_v36  ;;  %4091 = vst [vmem:[#allocation24_spill] sm:$0xff] %v3508_v7  ;;  %v3544_v39 = vadd.f32 %v3436_v31, %v3284_v5  ;;  %v3548_v41 = vadd.f32 %v3436_v31, %v3288_v15  ;;  %v3552_v50 = vadd.f32 %v3436_v31, %v3292_v0 }
 0x20c   : > { %4092 = vst [vmem:[#allocation28_spill] sm:$0xff] %v3512_v35  ;;  %4093 = vst [vmem:[#allocation10_spill] sm:$0xff] %v3516_v23  ;;  %v3556_v59 = vadd.f32 %v3436_v31, %v3296_v10  ;;  %v3560_v46 = vadd.f32 %v3436_v31, %v3300_v25  ;;  %v3564_v54 = vadd.f32 %v3436_v31, %v3304_v34 }
 0x20d   : > { %4094 = vst [vmem:[#allocation11_spill] sm:$0xff] %v3520_v14  ;;  %4095 = vst [vmem:[#allocation12_spill] sm:$0xff] %v3524_v8  ;;  %v3568_v5 = vadd.f32 %v3436_v31, %v3308_v20  ;;  %v3572_v15 = vadd.f32 %v3436_v31, %v3312_v29  ;;  %v3576_v0 = vadd.f32 %v3436_v31, %v3316_v48 }
 0x20e   : > { %4096 = vst [vmem:[#allocation13_spill] sm:$0xff] %v3528_v61  ;;  %4097 = vst [vmem:[#allocation14_spill] sm:$0xff] %v3532_v9  ;;  %v3580_v10 = vadd.f32 %v3436_v31, %v3320_v62  ;;  %v3584_v25 = vadd.f32 %v3436_v31, %v3324_v38  ;;  %v3588_v34 = vadd.f32 %v3436_v31, %v3328_v53 }
 0x20f   : > { %v3592_v20 = vadd.f32 %v3436_v31, %v3332_v13  ;;  %v3596_v29 = vadd.f32 %v3436_v31, %v3336_v27  ;;  %v3600_v48 = vadd.f32 %v3436_v31, %v3340_v4  ;;  %v3604_v62 = vadd.f32 %v3436_v31, %v3344_v19 }
 0x210   : > { %v3608_v38 = vadd.f32 %v3436_v31, %v3348_v45  ;;  %v3612_v53 = vadd.f32 %v3436_v31, %v3352_v2  ;;  %v3616_v13 = vadd.f32 %v3436_v31, %v3356_v33  ;;  %v3620_v27 = vadd.f32 %v3436_v31, %v3360_v52  ;;  %v4101_v45 = vld [vmem:[#allocation29_spill] sm:$0xff] }
 0x211   : > { %v3624_v4 = vadd.f32 %v3436_v31, %v3364_v24  ;;  %v3628_v19 = vadd.f32 %v3436_v31, %v3368_v49  ;;  %v3632_v2 = vadd.f32 %v3436_v31, %v4101_v45  ;;  %v3644_v24 = vadd.f32 %v3436_v31, %v3384_v1 }
 0x212   : > { %4098 = vst [vmem:[#allocation15_spill] sm:$0xff] %v3612_v53  ;;  %4099 = vst [vmem:[#allocation17_spill] sm:$0xff] %v3616_v13  ;;  %v4102_v53 = vld [vmem:[#allocation31_spill] sm:$0xff]  ;;  %v4103_v13 = vld [vmem:[#allocation30_spill] sm:$0xff]  ;;  %v3652_v45 = vadd.f32 %v3436_v31, %v3392_v26 }
 0x213   : > { %4100 = vst [vmem:[#allocation19_spill] sm:$0xff] %v3624_v4  ;;  %v3636_v33 = vadd.f32 %v3436_v31, %v4102_v53  ;;  %v3640_v52 = vadd.f32 %v3436_v31, %v4103_v13  ;;  %4105 = vst [vmem:[#allocation26_spill] sm:$0xff] %v3644_v24  ;;  %v4106_v4 = vld [vmem:[#allocation32_spill] sm:$0xff]  ;;  %v3656_v53 = vadd.f32 %v3436_v31, %v3396_v11 }
 0x214   : > { %v3648_v49 = vadd.f32 %v3436_v31, %v4106_v4  ;;  %v3660_v13 = vadd.f32 %v3436_v31, %v3400_v57  ;;  %v4109_v24 = vld [vmem:[#allocation16_spill] sm:$0xff]  ;;  %v3676_v11 = vadd.f32 %v3436_v31, %v3416_v12  ;;  %v3680_v57 = vadd.f32 %v3436_v31, %v3420_v32 }
 0x215   : > { %4104 = vst [vmem:[#allocation27_spill] sm:$0xff] %v3640_v52  ;;  %v4108_v52 = vld [vmem:[#allocation33_spill] sm:$0xff]  ;;  %v3668_v4 = vadd.f32 %v3436_v31, %v4109_v24  ;;  %v3688_v24 = vadd.f32 %v3436_v31, %v3428_v16  ;;  %v3696_v12 = vadd.f32 %v3436_v31, %v3440_v22  ;;  %v3700_v32 = vadd.f32 %v3436_v31, %v3444_v30 }
 0x216   : > { %4107 = vst [vmem:[#allocation29_spill] sm:$0xff] %v3648_v49  ;;  %v3664_v1 = vadd.f32 %v3436_v31, %v4108_v52  ;;  %v4110_v49 = vld [vmem:[#allocation18_spill] sm:$0xff]  ;;  %v3684_v52 = vadd.f32 %v3436_v31, %v3424_v6  ;;  %v3704_v6 = vadd.f32 %v3436_v31, %v3448_v21  ;;  %v3708_v16 = vadd.f32 %v3436_v31, %v3452_v55 }
 0x217   : > { %v3672_v26 = vadd.f32 %v3436_v31, %v4110_v49  ;;  %v3692_v49 = vadd.f32 %v3436_v31, %v3432_v17  ;;  %v3712_v17 = vadd.f32 %v3436_v31, %v3456_v47  ;;  %v3716_v22 = vadd.f32 %v3436_v31, %v3460_v43 }
 0x218   : > { %4111 = vst [vmem:[#allocation31_spill] sm:$0xff] %v3704_v6  ;;  %4112 = vst [vmem:[#allocation30_spill] sm:$0xff] %v3708_v16  ;;  %v3720_v30 = vadd.f32 %v3436_v31, %v3464_v63  ;;  %v3724_v21 = vadd.f32 %v3436_v31, %v3468_v60  ;;  %v1428_v63 = vmax.f32 %v3540_v42, 0.0  ;;  %v1430_v31 = vmax.f32 %v3548_v41, 0.0 }
 0x219   : > { %4113 = vst [vmem:[#allocation32_spill] sm:$0xff] %v3712_v17  ;;  %4114 = vst [vmem:[#allocation33_spill] sm:$0xff] %v3716_v22  ;;  %v1427_v22 = vmax.f32 %v3536_v40, 0.0  ;;  %v1431_v60 = vmax.f32 %v3552_v50, 0.0  ;;  %v1432_v55 = vmax.f32 %v3556_v59, 0.0  ;;  %v1433_v16 = vmax.f32 %v3560_v46, 0.0 }
 0x21a   : > { %4115 = vst [vmem:[#allocation16_spill] sm:$0xff] %v3720_v30  ;;  %v1429_v30 = vmax.f32 %v3544_v39, 0.0  ;;  %v1434_v47 = vmax.f32 %v3564_v54, 0.0  ;;  %v1435_v17 = vmax.f32 %v3568_v5, 0.0  ;;  %v1436_v43 = vmax.f32 %v3572_v15, 0.0  ;;  %v4116_v6 = vld [vmem:[#allocation15_spill] sm:$0xff] }
 0x21b   : > { %v1437_v40 = vmax.f32 %v3576_v0, 0.0  ;;  %v1438_v42 = vmax.f32 %v3580_v10, 0.0  ;;  %v1439_v39 = vmax.f32 %v3584_v25, 0.0  ;;  %v1440_v41 = vmax.f32 %v3588_v34, 0.0  ;;  %v4117_v9 = vld [vmem:[#allocation17_spill] sm:$0xff]  ;;  %v4118_v61 = vld [vmem:[#allocation19_spill] sm:$0xff] }
 0x21c   : > { %v1441_v50 = vmax.f32 %v3592_v20, 0.0  ;;  %v1442_v59 = vmax.f32 %v3596_v29, 0.0  ;;  %v1443_v46 = vmax.f32 %v3600_v48, 0.0  ;;  %v1444_v54 = vmax.f32 %v3604_v62, 0.0  ;;  %v4119_v8 = vld [vmem:[#allocation27_spill] sm:$0xff]  ;;  %v4120_v14 = vld [vmem:[#allocation26_spill] sm:$0xff] }
 0x21d   : > { %v1445_v5 = vmax.f32 %v3608_v38, 0.0  ;;  %v1446_v15 = vmax.f32 %v4116_v6, 0.0  ;;  %v1447_v0 = vmax.f32 %v4117_v9, 0.0  ;;  %v1448_v10 = vmax.f32 %v3620_v27, 0.0  ;;  %v4121_v23 = vld [vmem:[#allocation29_spill] sm:$0xff] }
 0x21e   : > { %v1449_v25 = vmax.f32 %v4118_v61, 0.0  ;;  %v1450_v34 = vmax.f32 %v3628_v19, 0.0  ;;  %v1451_v20 = vmax.f32 %v3632_v2, 0.0  ;;  %v1452_v29 = vmax.f32 %v3636_v33, 0.0 }
 0x21f   : > { %v1453_v48 = vmax.f32 %v4119_v8, 0.0  ;;  %v1454_v62 = vmax.f32 %v4120_v14, 0.0  ;;  %v1455_v38 = vmax.f32 %v4121_v23, 0.0  ;;  %v1456_v6 = vmax.f32 %v3652_v45, 0.0  ;;  %v4122_v35 = vld [vmem:[#allocation31_spill] sm:$0xff]  ;;  %v4123_v7 = vld [vmem:[#allocation30_spill] sm:$0xff] }
 0x220   : > { %v1457_v9 = vmax.f32 %v3656_v53, 0.0  ;;  %v1458_v27 = vmax.f32 %v3660_v13, 0.0  ;;  %v1459_v61 = vmax.f32 %v3664_v1, 0.0  ;;  %v1460_v19 = vmax.f32 %v3668_v4, 0.0  ;;  %v4124_v36 = vld [vmem:[#allocation32_spill] sm:$0xff]  ;;  %v4125_v44 = vld [vmem:[#allocation33_spill] sm:$0xff] }
 0x221   : > { %v1461_v2 = vmax.f32 %v3672_v26, 0.0  ;;  %v1462_v33 = vmax.f32 %v3676_v11, 0.0  ;;  %v1463_v8 = vmax.f32 %v3680_v57, 0.0  ;;  %v1464_v14 = vmax.f32 %v3684_v52, 0.0  ;;  %v4126_v37 = vld [vmem:[#allocation16_spill] sm:$0xff] }
 0x222   : > { %v1465_v23 = vmax.f32 %v3688_v24, 0.0  ;;  %v1466_v45 = vmax.f32 %v3692_v49, 0.0  ;;  %v1467_v53 = vmax.f32 %v3696_v12, 0.0  ;;  %v1468_v13 = vmax.f32 %v3700_v32, 0.0 }
 0x223   : > { %v1469_v1 = vmax.f32 %v4122_v35, 0.0  ;;  %v1470_v4 = vmax.f32 %v4123_v7, 0.0  ;;  %v1471_v26 = vmax.f32 %v4124_v36, 0.0  ;;  %v1472_v11 = vmax.f32 %v4125_v44, 0.0  ;;  %v4131_v36 = vld [vmem:[#allocation21_spill] sm:$0xff] }
 0x224   : > { %v1473_v57 = vmax.f32 %v4126_v37, 0.0  ;;  %v1474_v52 = vmax.f32 %v3724_v21, 0.0  ;;  %v4127_v24 = vmax.f32 %v3472_v58, 0.0  ;;  %v4128_v49 = vmax.f32 %v3476_v51, 0.0  ;;  %v4133_v21 = vld [vmem:[#allocation23_spill] sm:$0xff] }
 0x225   : > { %v4129_v32 = vmax.f32 %v3480_v28, 0.0  ;;  %v4130_v7 = vmax.f32 %v3484_v56, 0.0  ;;  %v4132_v44 = vmax.f32 %v4131_v36, 0.0  ;;  %v4134_v58 = vmax.f32 %v4133_v21, 0.0 }
 0x226   : > { %v1475_v3 = vmax.f32 %v4127_v24, %v1427_v22  ;;  %v1476_v12 = vmax.f32 %v4128_v49, %v1428_v63  ;;  %v4135_v24 = vld [vmem:[#allocation20_spill] sm:$0xff]  ;;  %v4137_v63 = vld [vmem:[#allocation22_spill] sm:$0xff] }
 0x227   : > { %v1477_v35 = vmax.f32 %v4129_v32, %v1429_v30  ;;  %v1478_v18 = vmax.f32 %v4130_v7, %v1430_v31  ;;  %v1479_v37 = vmax.f32 %v4132_v44, %v1431_v60  ;;  %v1480_v22 = vmax.f32 %v4134_v58, %v1432_v55  ;;  %v4139_v32 = vld [vmem:[#allocation25_spill] sm:$0xff]  ;;  %v4141_v31 = vld [vmem:[#allocation24_spill] sm:$0xff]  ;;  %v4145_v58 = vld [vmem:[#allocation10_spill] sm:$0xff] }
 0x228   : > { %v4136_v51 = vmax.f32 %v4135_v24, 0.0  ;;  %v4138_v28 = vmax.f32 %v4137_v63, 0.0  ;;  %v4140_v56 = vmax.f32 %v4139_v32, 0.0  ;;  %v4142_v36 = vmax.f32 %v4141_v31, 0.0  ;;  %v4143_v60 = vld [vmem:[#allocation28_spill] sm:$0xff] }
 0x229   : > { %v4144_v21 = vmax.f32 %v4143_v60, 0.0  ;;  %v4146_v24 = vmax.f32 %v4145_v58, 0.0  ;;  %v1492_v58 = vmax.f32 %v1444_v54, %v1460_v19 }
 0x22a   : > { %v1481_v49 = vmax.f32 %v4136_v51, %v1433_v16  ;;  %v1482_v30 = vmax.f32 %v4138_v28, %v1434_v47  ;;  %v1483_v7 = vmax.f32 %v4140_v56, %v1435_v17  ;;  %v1484_v44 = vmax.f32 %v4142_v36, %v1436_v43  ;;  %v4147_v51 = vld [vmem:[#allocation11_spill] sm:$0xff]  ;;  %v4149_v47 = vld [vmem:[#allocation12_spill] sm:$0xff]  ;;  %v4151_v56 = vld [vmem:[#allocation13_spill] sm:$0xff] }
 0x22b   : > { %v1485_v55 = vmax.f32 %v4144_v21, %v1437_v40  ;;  %v1486_v16 = vmax.f32 %v4146_v24, %v1438_v42  ;;  %v4148_v63 = vmax.f32 %v4147_v51, 0.0  ;;  %v4150_v32 = vmax.f32 %v4149_v47, 0.0  ;;  %v4153_v43 = vld [vmem:[#allocation14_spill] sm:$0xff] }
 0x22c   : > { %v4152_v31 = vmax.f32 %v4151_v56, 0.0  ;;  %v4154_v60 = vmax.f32 %v4153_v43, 0.0  ;;  %v1491_v40 = vmax.f32 %v1443_v46, %v1459_v61  ;;  %v1493_v24 = vmax.f32 %v1445_v5, %v1461_v2 }
 0x22d   : > { %v1487_v28 = vmax.f32 %v4148_v63, %v1439_v39  ;;  %v1488_v17 = vmax.f32 %v4150_v32, %v1440_v41  ;;  %v1494_v42 = vmax.f32 %v1446_v15, %v1462_v33  ;;  %v1495_v51 = vmax.f32 %v1447_v0, %v1463_v8 }
 0x22e   : > { %v1489_v36 = vmax.f32 %v4152_v31, %v1441_v50  ;;  %v1490_v21 = vmax.f32 %v4154_v60, %v1442_v59  ;;  %v1496_v39 = vmax.f32 %v1448_v10, %v1464_v14  ;;  %v1497_v63 = vmax.f32 %v1449_v25, %v1465_v23 }
 0x22f   : > { %v1498_v47 = vmax.f32 %v1450_v34, %v1466_v45  ;;  %v1499_v32 = vmax.f32 %v1451_v20, %v1467_v53  ;;  %v1500_v41 = vmax.f32 %v1452_v29, %v1468_v13  ;;  %v1501_v56 = vmax.f32 %v1453_v48, %v1469_v1 }
 0x230   : > { %v1502_v31 = vmax.f32 %v1454_v62, %v1470_v4  ;;  %v1503_v50 = vmax.f32 %v1455_v38, %v1471_v26  ;;  %v1504_v43 = vmax.f32 %v1456_v6, %v1472_v11  ;;  %v1505_v59 = vmax.f32 %v1457_v9, %v1473_v57 }
 0x231   : > { %v1506_v60 = vmax.f32 %v1458_v27, %v1474_v52  ;;  %v1507_v46 = vmax.f32 %v1475_v3, %v1491_v40  ;;  %v1508_v61 = vmax.f32 %v1476_v12, %v1492_v58  ;;  %v1509_v19 = vmax.f32 %v1477_v35, %v1493_v24 }
 0x232   : > { %v1510_v54 = vmax.f32 %v1478_v18, %v1494_v42  ;;  %v1511_v2 = vmax.f32 %v1479_v37, %v1495_v51  ;;  %v1512_v5 = vmax.f32 %v1480_v22, %v1496_v39  ;;  %v1513_v15 = vmax.f32 %v1481_v49, %v1497_v63 }
 0x233   : > { %v1514_v33 = vmax.f32 %v1482_v30, %v1498_v47  ;;  %v1515_v0 = vmax.f32 %v1483_v7, %v1499_v32  ;;  %v1516_v10 = vmax.f32 %v1484_v44, %v1500_v41  ;;  %v1517_v25 = vmax.f32 %v1485_v55, %v1501_v56  ;;  %1523 = vst [vmem:[%s3823_s10] sm:$0xff] %v1507_v46 }
 0x234   : > { %v1518_v34 = vmax.f32 %v1486_v16, %v1502_v31  ;;  %1524 = vst [vmem:[%s3823_s10 + $0x8] sm:$0xff] %v1508_v61  ;;  %1525 = vst [vmem:[%s3823_s10 + $0x10] sm:$0xff] %v1509_v19  ;;  %v1519_v18 = vmax.f32 %v1487_v28, %v1503_v50  ;;  %v1520_v3 = vmax.f32 %v1488_v17, %v1504_v43 }
 0x235   : > { %1526 = vst [vmem:[%s3823_s10 + $0x18] sm:$0xff] %v1510_v54  ;;  %v1521_v20 = vmax.f32 %v1489_v36, %v1505_v59  ;;  %v1522_v29 = vmax.f32 %v1490_v21, %v1506_v60  ;;  %1527 = vst [vmem:[%s3823_s10 + $0x20] sm:$0xff] %v1511_v2 }
 0x236   : > { %1528 = vst [vmem:[%s3823_s10 + $0x28] sm:$0xff] %v1512_v5  ;;  %1529 = vst [vmem:[%s3823_s10 + $0x30] sm:$0xff] %v1513_v15 }
 0x237   : > { %1530 = vst [vmem:[%s3823_s10 + $0x38] sm:$0xff] %v1514_v33  ;;  %1531 = vst [vmem:[%s3823_s10 + $0x40] sm:$0xff] %v1515_v0  ;;  %1545 = sbr.rel (!%p4155_p4) target bundleno = 580 (0x244), region = 89 }
 0x238   : > { %1532 = vst [vmem:[%s3823_s10 + $0x48] sm:$0xff] %v1516_v10  ;;  %1533 = vst [vmem:[%s3823_s10 + $0x50] sm:$0xff] %v1517_v25 }
 0x239   : > { %1534 = vst [vmem:[%s3823_s10 + $0x58] sm:$0xff] %v1518_v34  ;;  %1535 = vst [vmem:[%s3823_s10 + $0x60] sm:$0xff] %v1519_v18 }
 0x23a   : > { %1536 = vst [vmem:[%s3823_s10 + $0x68] sm:$0xff] %v1520_v3  ;;  %1537 = vst [vmem:[%s3823_s10 + $0x70] sm:$0xff] %v1521_v20  ;;  %v1606_v48 = vld [vmem:[%s3823_s10] sm:$0xff] (%p4155_p4) }
 0x23b   : > { %1538 = vst [vmem:[%s3823_s10 + $0x78] sm:$0xff] %v1522_v29  ;;  %v1608_v62 = vld [vmem:[%s3823_s10 + $0x8] sm:$0xff] (%p4155_p4)  ;;  %v1610_v38 = vld [vmem:[%s3823_s10 + $0x10] sm:$0xff] (%p4155_p4)  ;;  %1607 = vst [vmem:[%s1547_s22] sm:$0xff] (%p4155_p4), %v1606_v48 }
 0x23c   : > { %v1612_v6 = vld [vmem:[%s3823_s10 + $0x18] sm:$0xff]  ;;  %v1614_v9 = vld [vmem:[%s3823_s10 + $0x20] sm:$0xff]  ;;  %1609 = vst [vmem:[%s1547_s22 + $0x10] sm:$0xff] %v1608_v62  ;;  %1611 = vst [vmem:[%s1547_s22 + $0x20] sm:$0xff] %v1610_v38 }
 0x23d   : > { %v1616_v27 = vld [vmem:[%s3823_s10 + $0x28] sm:$0xff]  ;;  %1613 = vst [vmem:[%s1547_s22 + $0x30] sm:$0xff] %v1612_v6  ;;  %1615 = vst [vmem:[%s1547_s22 + $0x40] sm:$0xff] %v1614_v9  ;;  %v1618_v8 = vld [vmem:[%s3823_s10 + $0x30] sm:$0xff] }
 0x23e   : > { %1617 = vst [vmem:[%s1547_s22 + $0x50] sm:$0xff] %v1616_v27  ;;  %v1620_v14 = vld [vmem:[%s3823_s10 + $0x38] sm:$0xff]  ;;  %v1622_v23 = vld [vmem:[%s3823_s10 + $0x40] sm:$0xff]  ;;  %1619 = vst [vmem:[%s1547_s22 + $0x60] sm:$0xff] %v1618_v8 }
 0x23f   : > { %1621 = vst [vmem:[%s1547_s22 + $0x70] sm:$0xff] %v1620_v14  ;;  %1623 = vst [vmem:[%s1547_s22 + $0x80] sm:$0xff] %v1622_v23  ;;  %v1624_v45 = vld [vmem:[%s3823_s10 + $0x48] sm:$0xff]  ;;  %v1626_v53 = vld [vmem:[%s3823_s10 + $0x50] sm:$0xff] }
 0x240   : > { %v1628_v13 = vld [vmem:[%s3823_s10 + $0x58] sm:$0xff]  ;;  %1625 = vst [vmem:[%s1547_s22 + $0x90] sm:$0xff] %v1624_v45  ;;  %1627 = vst [vmem:[%s1547_s22 + $0xa0] sm:$0xff] %v1626_v53  ;;  %v1630_v1 = vld [vmem:[%s3823_s10 + $0x60] sm:$0xff] }
 0x241   : > { %1629 = vst [vmem:[%s1547_s22 + $0xb0] sm:$0xff] %v1628_v13  ;;  %v1632_v4 = vld [vmem:[%s3823_s10 + $0x68] sm:$0xff]  ;;  %v1634_v26 = vld [vmem:[%s3823_s10 + $0x70] sm:$0xff]  ;;  %1631 = vst [vmem:[%s1547_s22 + $0xc0] sm:$0xff] %v1630_v1 }
 0x242   : > { %1633 = vst [vmem:[%s1547_s22 + $0xd0] sm:$0xff] %v1632_v4  ;;  %1635 = vst [vmem:[%s1547_s22 + $0xe0] sm:$0xff] %v1634_v26  ;;  %v1636_v11 = vld [vmem:[%s3823_s10 + $0x78] sm:$0xff] }
 0x243   : > { %1637 = vst [vmem:[%s1547_s22 + $0xf0] sm:$0xff] %v1636_v11 }
 0x244 PF: > { %p17_p7 = scmp.ge.s32.totalorder %s2134_s20, 4   ;;  %s4156_s15 = smov %s2074_s16 }
 0x245   : > { %s4157_s16 = smov %s2078_s17  ;;  %s4158_s17 = smov %s2144_s23 }
 0x246   : > { %s4159_s18 = smov %s2134_s20  ;;  %19 = sbr.rel (!%p17_p7) target bundleno = 5 (0x5), region = 176 }
 0x24b   :  { %1653 = vsyncpa [#allocation4], 1 }
 0x24c   :  { %1655 = vsyncpa [#allocation4 + $0x1], 1 }
 0x24d   :  { %1656 = vsyncpa [#allocation6], 1 }
 0x24e   :  { %1658 = vsyncpa [#allocation6 + $0x1], 1 }

// kernel: shallow_cnn_forward.3
= control target key start
LH: loop header
LB: loop body
LE: loop exit
PB: predicated region body
PF: predicated region fallthrough
CT: control target
= control target key end

     0   :  { %s5934_s15 = smov 0   ;;  %s5936_s16 = smov 0   ;;  %s7459_s0 = inlined_call_operand.vmem [shape: bf16[128,2304], index: 0, kind: input, shape index: {}]   ;;  %s7460_s1 = inlined_call_operand.vmem [shape: bf16[2304,512], index: 1, kind: input, shape index: {}]   ;;  %s7461_s2 = inlined_call_operand.vmem [shape: f32[1,512], index: 2, kind: input, shape index: {}]   ;;  %s7462_s3 = inlined_call_operand.vmem [shape: f32[1,512], index: 3, kind: input, shape index: {}]   ;;  %s7463_s4 = inlined_call_operand.vmem [shape: f32[32,512], index: 4, kind: output, shape index: {}]  }
   0x1   :  { %s5938_s17 = smov 0  }
   0x2 LB: > { %s5950_s18 = sadd.s32 4294967295, %s5907_s17   ;;  %s5953_s19 = sadd.s32 1, %s5907_s17   ;;  %s5907_s17 = sphi %s5938_s17, %s7467_s17   ;;  %s5903_s16 = sphi %s5936_s16, %s7466_s16   ;;  %s5899_s15 = sphi %s5934_s15, %s7465_s15  }
   0x3   : > { %s39_s20 = ssub.s32 %s5907_s17, %s5953_s19  ;;  %s42_s21 = sadd.s32 1, %s5903_s16 }
   0x4   : > { %p40_p0 = scmp.eq.s32.totalorder %s39_s20, 0  ;;  %p49_p1 = scmp.ne.s32.totalorder %s5903_s16, %s5899_s15 }
   0x5   : > { %p50_p2 = scmp.eq.s32.totalorder %s5907_s17, 0  ;;  %p131_p3 = scmp.eq.s32.totalorder %s5950_s18, 3 }
   0x6   : > { %s5963_s22 = scalar_select %p40_p0, %s5903_s16, %s42_s21  }
   0x7   : > { %p51_p4 = por %p50_p2, %p49_p1  ;;  %p5965_p5 = por %p131_p3, %p49_p1 }
   0x8   : > { %p4607_p6 = scmp.ge.s32.totalorder %s5907_s17, 4 }
   0xa   : > { %156 = sbr.rel (%p4607_p6) target bundleno = 211 (0xd3), region = 20 }
   0xf   : > { %159 = sbr.rel (!%p51_p4) target bundleno = 211 (0xd3), region = 24  ;;  %s161_s24 = sand.u32 (%p51_p4), 1, %s5903_s16  }
  0x10   : > { %s4608_s25 = sshll.u32 (%p51_p4), %s5907_s17, 2  ;;  %s5497_s26 = smul.u32 (%p51_p4), 1152, %s161_s24 }
  0x11   : > { %s5975_s29 = scalar_lea.vmem (%p51_p4), %s7460_s1, %s4608_s25 }
  0x12   : > { %v182_v0 = vld [vmem:[%s5975_s29] sm:$0xf] (%p51_p4)  ;;  %v184_v1 = vld [vmem:[%s5975_s29 + $0x10] sm:$0xf] (%p51_p4)  ;;  %s5982_s30 = scalar_lea.vmem (%p51_p4), [#allocation2], %s5497_s26 }
  0x13   : > { %v186_v2 = vld [vmem:[%s5975_s29 + $0x20] sm:$0xf] (%p51_p4)  ;;  %v188_v3 = vld [vmem:[%s5975_s29 + $0x30] sm:$0xf] (%p51_p4)  ;;  %183 = vst [vmem:[%s5982_s30] sm:$0xf] (%p51_p4), %v182_v0 }
  0x14   : > { %v190_v4 = vld [vmem:[%s5975_s29 + $0x40] sm:$0xf]  ;;  %185 = vst [vmem:[%s5982_s30 + $0x4] sm:$0xf] %v184_v1  ;;  %187 = vst [vmem:[%s5982_s30 + $0x8] sm:$0xf] %v186_v2 }
  0x15   : > { %189 = vst [vmem:[%s5982_s30 + $0xc] sm:$0xf] %v188_v3  ;;  %191 = vst [vmem:[%s5982_s30 + $0x10] sm:$0xf] %v190_v4  ;;  %v192_v5 = vld [vmem:[%s5975_s29 + $0x50] sm:$0xf] }
  0x16   : > { %v194_v6 = vld [vmem:[%s5975_s29 + $0x60] sm:$0xf]  ;;  %v196_v7 = vld [vmem:[%s5975_s29 + $0x70] sm:$0xf]  ;;  %193 = vst [vmem:[%s5982_s30 + $0x14] sm:$0xf] %v192_v5 }
  0x17   : > { %195 = vst [vmem:[%s5982_s30 + $0x18] sm:$0xf] %v194_v6  ;;  %197 = vst [vmem:[%s5982_s30 + $0x1c] sm:$0xf] %v196_v7  ;;  %v198_v8 = vld [vmem:[%s5975_s29 + $0x80] sm:$0xf] }
  0x18   : > { %v200_v9 = vld [vmem:[%s5975_s29 + $0x90] sm:$0xf]  ;;  %v202_v10 = vld [vmem:[%s5975_s29 + $0xa0] sm:$0xf]  ;;  %199 = vst [vmem:[%s5982_s30 + $0x20] sm:$0xf] %v198_v8 }
  0x19   : > { %201 = vst [vmem:[%s5982_s30 + $0x24] sm:$0xf] %v200_v9  ;;  %203 = vst [vmem:[%s5982_s30 + $0x28] sm:$0xf] %v202_v10  ;;  %v204_v11 = vld [vmem:[%s5975_s29 + $0xb0] sm:$0xf] }
  0x1a   : > { %v206_v12 = vld [vmem:[%s5975_s29 + $0xc0] sm:$0xf]  ;;  %v208_v13 = vld [vmem:[%s5975_s29 + $0xd0] sm:$0xf]  ;;  %205 = vst [vmem:[%s5982_s30 + $0x2c] sm:$0xf] %v204_v11 }
  0x1b   : > { %207 = vst [vmem:[%s5982_s30 + $0x30] sm:$0xf] %v206_v12  ;;  %209 = vst [vmem:[%s5982_s30 + $0x34] sm:$0xf] %v208_v13  ;;  %v210_v14 = vld [vmem:[%s5975_s29 + $0xe0] sm:$0xf] }
  0x1c   : > { %v212_v15 = vld [vmem:[%s5975_s29 + $0xf0] sm:$0xf]  ;;  %v214_v16 = vld [vmem:[%s5975_s29 + $0x100] sm:$0xf]  ;;  %211 = vst [vmem:[%s5982_s30 + $0x38] sm:$0xf] %v210_v14 }
  0x1d   : > { %213 = vst [vmem:[%s5982_s30 + $0x3c] sm:$0xf] %v212_v15  ;;  %215 = vst [vmem:[%s5982_s30 + $0x40] sm:$0xf] %v214_v16  ;;  %v216_v17 = vld [vmem:[%s5975_s29 + $0x110] sm:$0xf] }
  0x1e   : > { %v218_v18 = vld [vmem:[%s5975_s29 + $0x120] sm:$0xf]  ;;  %v220_v19 = vld [vmem:[%s5975_s29 + $0x130] sm:$0xf]  ;;  %217 = vst [vmem:[%s5982_s30 + $0x44] sm:$0xf] %v216_v17 }
  0x1f   : > { %219 = vst [vmem:[%s5982_s30 + $0x48] sm:$0xf] %v218_v18  ;;  %221 = vst [vmem:[%s5982_s30 + $0x4c] sm:$0xf] %v220_v19  ;;  %v222_v20 = vld [vmem:[%s5975_s29 + $0x140] sm:$0xf] }
  0x20   : > { %v224_v21 = vld [vmem:[%s5975_s29 + $0x150] sm:$0xf]  ;;  %v226_v22 = vld [vmem:[%s5975_s29 + $0x160] sm:$0xf]  ;;  %223 = vst [vmem:[%s5982_s30 + $0x50] sm:$0xf] %v222_v20 }
  0x21   : > { %225 = vst [vmem:[%s5982_s30 + $0x54] sm:$0xf] %v224_v21  ;;  %227 = vst [vmem:[%s5982_s30 + $0x58] sm:$0xf] %v226_v22  ;;  %v228_v23 = vld [vmem:[%s5975_s29 + $0x170] sm:$0xf] }
  0x22   : > { %v230_v24 = vld [vmem:[%s5975_s29 + $0x180] sm:$0xf]  ;;  %v232_v25 = vld [vmem:[%s5975_s29 + $0x190] sm:$0xf]  ;;  %229 = vst [vmem:[%s5982_s30 + $0x5c] sm:$0xf] %v228_v23 }
  0x23   : > { %231 = vst [vmem:[%s5982_s30 + $0x60] sm:$0xf] %v230_v24  ;;  %233 = vst [vmem:[%s5982_s30 + $0x64] sm:$0xf] %v232_v25  ;;  %v234_v26 = vld [vmem:[%s5975_s29 + $0x1a0] sm:$0xf] }
  0x24   : > { %v236_v27 = vld [vmem:[%s5975_s29 + $0x1b0] sm:$0xf]  ;;  %v238_v28 = vld [vmem:[%s5975_s29 + $0x1c0] sm:$0xf]  ;;  %235 = vst [vmem:[%s5982_s30 + $0x68] sm:$0xf] %v234_v26 }
  0x25   : > { %237 = vst [vmem:[%s5982_s30 + $0x6c] sm:$0xf] %v236_v27  ;;  %239 = vst [vmem:[%s5982_s30 + $0x70] sm:$0xf] %v238_v28  ;;  %v240_v29 = vld [vmem:[%s5975_s29 + $0x1d0] sm:$0xf] }
  0x26   : > { %v242_v30 = vld [vmem:[%s5975_s29 + $0x1e0] sm:$0xf]  ;;  %v244_v31 = vld [vmem:[%s5975_s29 + $0x1f0] sm:$0xf]  ;;  %241 = vst [vmem:[%s5982_s30 + $0x74] sm:$0xf] %v240_v29 }
  0x27   : > { %243 = vst [vmem:[%s5982_s30 + $0x78] sm:$0xf] %v242_v30  ;;  %245 = vst [vmem:[%s5982_s30 + $0x7c] sm:$0xf] %v244_v31  ;;  %v246_v32 = vld [vmem:[%s5975_s29 + $0x200] sm:$0xf] }
  0x28   : > { %v248_v33 = vld [vmem:[%s5975_s29 + $0x210] sm:$0xf]  ;;  %v250_v34 = vld [vmem:[%s5975_s29 + $0x220] sm:$0xf]  ;;  %247 = vst [vmem:[%s5982_s30 + $0x80] sm:$0xf] %v246_v32 }
  0x29   : > { %249 = vst [vmem:[%s5982_s30 + $0x84] sm:$0xf] %v248_v33  ;;  %251 = vst [vmem:[%s5982_s30 + $0x88] sm:$0xf] %v250_v34  ;;  %v252_v35 = vld [vmem:[%s5975_s29 + $0x230] sm:$0xf] }
  0x2a   : > { %v254_v36 = vld [vmem:[%s5975_s29 + $0x240] sm:$0xf]  ;;  %v256_v37 = vld [vmem:[%s5975_s29 + $0x250] sm:$0xf]  ;;  %253 = vst [vmem:[%s5982_s30 + $0x8c] sm:$0xf] %v252_v35 }
  0x2b   : > { %255 = vst [vmem:[%s5982_s30 + $0x90] sm:$0xf] %v254_v36  ;;  %257 = vst [vmem:[%s5982_s30 + $0x94] sm:$0xf] %v256_v37  ;;  %v258_v38 = vld [vmem:[%s5975_s29 + $0x260] sm:$0xf] }
  0x2c   : > { %v260_v39 = vld [vmem:[%s5975_s29 + $0x270] sm:$0xf]  ;;  %v262_v40 = vld [vmem:[%s5975_s29 + $0x280] sm:$0xf]  ;;  %259 = vst [vmem:[%s5982_s30 + $0x98] sm:$0xf] %v258_v38 }
  0x2d   : > { %261 = vst [vmem:[%s5982_s30 + $0x9c] sm:$0xf] %v260_v39  ;;  %263 = vst [vmem:[%s5982_s30 + $0xa0] sm:$0xf] %v262_v40  ;;  %v264_v41 = vld [vmem:[%s5975_s29 + $0x290] sm:$0xf] }
  0x2e   : > { %v266_v42 = vld [vmem:[%s5975_s29 + $0x2a0] sm:$0xf]  ;;  %v268_v43 = vld [vmem:[%s5975_s29 + $0x2b0] sm:$0xf]  ;;  %265 = vst [vmem:[%s5982_s30 + $0xa4] sm:$0xf] %v264_v41 }
  0x2f   : > { %267 = vst [vmem:[%s5982_s30 + $0xa8] sm:$0xf] %v266_v42  ;;  %269 = vst [vmem:[%s5982_s30 + $0xac] sm:$0xf] %v268_v43  ;;  %v270_v44 = vld [vmem:[%s5975_s29 + $0x2c0] sm:$0xf] }
  0x30   : > { %v272_v45 = vld [vmem:[%s5975_s29 + $0x2d0] sm:$0xf]  ;;  %v274_v46 = vld [vmem:[%s5975_s29 + $0x2e0] sm:$0xf]  ;;  %271 = vst [vmem:[%s5982_s30 + $0xb0] sm:$0xf] %v270_v44 }
  0x31   : > { %273 = vst [vmem:[%s5982_s30 + $0xb4] sm:$0xf] %v272_v45  ;;  %275 = vst [vmem:[%s5982_s30 + $0xb8] sm:$0xf] %v274_v46  ;;  %v276_v47 = vld [vmem:[%s5975_s29 + $0x2f0] sm:$0xf] }
  0x32   : > { %v278_v48 = vld [vmem:[%s5975_s29 + $0x300] sm:$0xf]  ;;  %v280_v49 = vld [vmem:[%s5975_s29 + $0x310] sm:$0xf]  ;;  %277 = vst [vmem:[%s5982_s30 + $0xbc] sm:$0xf] %v276_v47 }
  0x33   : > { %279 = vst [vmem:[%s5982_s30 + $0xc0] sm:$0xf] %v278_v48  ;;  %281 = vst [vmem:[%s5982_s30 + $0xc4] sm:$0xf] %v280_v49  ;;  %v282_v50 = vld [vmem:[%s5975_s29 + $0x320] sm:$0xf] }
  0x34   : > { %v284_v51 = vld [vmem:[%s5975_s29 + $0x330] sm:$0xf]  ;;  %v286_v52 = vld [vmem:[%s5975_s29 + $0x340] sm:$0xf]  ;;  %283 = vst [vmem:[%s5982_s30 + $0xc8] sm:$0xf] %v282_v50 }
  0x35   : > { %285 = vst [vmem:[%s5982_s30 + $0xcc] sm:$0xf] %v284_v51  ;;  %287 = vst [vmem:[%s5982_s30 + $0xd0] sm:$0xf] %v286_v52  ;;  %v288_v53 = vld [vmem:[%s5975_s29 + $0x350] sm:$0xf] }
  0x36   : > { %v290_v54 = vld [vmem:[%s5975_s29 + $0x360] sm:$0xf]  ;;  %v292_v55 = vld [vmem:[%s5975_s29 + $0x370] sm:$0xf]  ;;  %289 = vst [vmem:[%s5982_s30 + $0xd4] sm:$0xf] %v288_v53 }
  0x37   : > { %291 = vst [vmem:[%s5982_s30 + $0xd8] sm:$0xf] %v290_v54  ;;  %293 = vst [vmem:[%s5982_s30 + $0xdc] sm:$0xf] %v292_v55  ;;  %v294_v56 = vld [vmem:[%s5975_s29 + $0x380] sm:$0xf] }
  0x38   : > { %v296_v57 = vld [vmem:[%s5975_s29 + $0x390] sm:$0xf]  ;;  %v298_v58 = vld [vmem:[%s5975_s29 + $0x3a0] sm:$0xf]  ;;  %295 = vst [vmem:[%s5982_s30 + $0xe0] sm:$0xf] %v294_v56 }
  0x39   : > { %297 = vst [vmem:[%s5982_s30 + $0xe4] sm:$0xf] %v296_v57  ;;  %299 = vst [vmem:[%s5982_s30 + $0xe8] sm:$0xf] %v298_v58  ;;  %v300_v59 = vld [vmem:[%s5975_s29 + $0x3b0] sm:$0xf] }
  0x3a   : > { %v302_v60 = vld [vmem:[%s5975_s29 + $0x3c0] sm:$0xf]  ;;  %v304_v61 = vld [vmem:[%s5975_s29 + $0x3d0] sm:$0xf]  ;;  %301 = vst [vmem:[%s5982_s30 + $0xec] sm:$0xf] %v300_v59 }
  0x3b   : > { %303 = vst [vmem:[%s5982_s30 + $0xf0] sm:$0xf] %v302_v60  ;;  %305 = vst [vmem:[%s5982_s30 + $0xf4] sm:$0xf] %v304_v61  ;;  %v306_v62 = vld [vmem:[%s5975_s29 + $0x3e0] sm:$0xf] }
  0x3c   : > { %v308_v63 = vld [vmem:[%s5975_s29 + $0x3f0] sm:$0xf]  ;;  %v310_v0 = vld [vmem:[%s5975_s29 + $0x400] sm:$0xf]  ;;  %307 = vst [vmem:[%s5982_s30 + $0xf8] sm:$0xf] %v306_v62 }
  0x3d   : > { %309 = vst [vmem:[%s5982_s30 + $0xfc] sm:$0xf] %v308_v63  ;;  %311 = vst [vmem:[%s5982_s30 + $0x100] sm:$0xf] %v310_v0  ;;  %v312_v1 = vld [vmem:[%s5975_s29 + $0x410] sm:$0xf] }
  0x3e   : > { %v314_v2 = vld [vmem:[%s5975_s29 + $0x420] sm:$0xf]  ;;  %v316_v3 = vld [vmem:[%s5975_s29 + $0x430] sm:$0xf]  ;;  %313 = vst [vmem:[%s5982_s30 + $0x104] sm:$0xf] %v312_v1 }
  0x3f   : > { %315 = vst [vmem:[%s5982_s30 + $0x108] sm:$0xf] %v314_v2  ;;  %317 = vst [vmem:[%s5982_s30 + $0x10c] sm:$0xf] %v316_v3  ;;  %v318_v4 = vld [vmem:[%s5975_s29 + $0x440] sm:$0xf] }
  0x40   : > { %v320_v5 = vld [vmem:[%s5975_s29 + $0x450] sm:$0xf]  ;;  %v322_v6 = vld [vmem:[%s5975_s29 + $0x460] sm:$0xf]  ;;  %319 = vst [vmem:[%s5982_s30 + $0x110] sm:$0xf] %v318_v4 }
  0x41   : > { %321 = vst [vmem:[%s5982_s30 + $0x114] sm:$0xf] %v320_v5  ;;  %323 = vst [vmem:[%s5982_s30 + $0x118] sm:$0xf] %v322_v6  ;;  %v324_v7 = vld [vmem:[%s5975_s29 + $0x470] sm:$0xf] }
  0x42   : > { %v326_v8 = vld [vmem:[%s5975_s29 + $0x480] sm:$0xf]  ;;  %v328_v9 = vld [vmem:[%s5975_s29 + $0x490] sm:$0xf]  ;;  %325 = vst [vmem:[%s5982_s30 + $0x11c] sm:$0xf] %v324_v7 }
  0x43   : > { %327 = vst [vmem:[%s5982_s30 + $0x120] sm:$0xf] %v326_v8  ;;  %329 = vst [vmem:[%s5982_s30 + $0x124] sm:$0xf] %v328_v9  ;;  %v330_v10 = vld [vmem:[%s5975_s29 + $0x4a0] sm:$0xf] }
  0x44   : > { %v332_v11 = vld [vmem:[%s5975_s29 + $0x4b0] sm:$0xf]  ;;  %v334_v12 = vld [vmem:[%s5975_s29 + $0x4c0] sm:$0xf]  ;;  %331 = vst [vmem:[%s5982_s30 + $0x128] sm:$0xf] %v330_v10 }
  0x45   : > { %333 = vst [vmem:[%s5982_s30 + $0x12c] sm:$0xf] %v332_v11  ;;  %335 = vst [vmem:[%s5982_s30 + $0x130] sm:$0xf] %v334_v12  ;;  %v336_v13 = vld [vmem:[%s5975_s29 + $0x4d0] sm:$0xf] }
  0x46   : > { %v338_v14 = vld [vmem:[%s5975_s29 + $0x4e0] sm:$0xf]  ;;  %v340_v15 = vld [vmem:[%s5975_s29 + $0x4f0] sm:$0xf]  ;;  %337 = vst [vmem:[%s5982_s30 + $0x134] sm:$0xf] %v336_v13 }
  0x47   : > { %339 = vst [vmem:[%s5982_s30 + $0x138] sm:$0xf] %v338_v14  ;;  %341 = vst [vmem:[%s5982_s30 + $0x13c] sm:$0xf] %v340_v15  ;;  %v342_v16 = vld [vmem:[%s5975_s29 + $0x500] sm:$0xf] }
  0x48   : > { %v344_v17 = vld [vmem:[%s5975_s29 + $0x510] sm:$0xf]  ;;  %v346_v18 = vld [vmem:[%s5975_s29 + $0x520] sm:$0xf]  ;;  %343 = vst [vmem:[%s5982_s30 + $0x140] sm:$0xf] %v342_v16 }
  0x49   : > { %345 = vst [vmem:[%s5982_s30 + $0x144] sm:$0xf] %v344_v17  ;;  %347 = vst [vmem:[%s5982_s30 + $0x148] sm:$0xf] %v346_v18  ;;  %v348_v19 = vld [vmem:[%s5975_s29 + $0x530] sm:$0xf] }
  0x4a   : > { %v350_v20 = vld [vmem:[%s5975_s29 + $0x540] sm:$0xf]  ;;  %v352_v21 = vld [vmem:[%s5975_s29 + $0x550] sm:$0xf]  ;;  %349 = vst [vmem:[%s5982_s30 + $0x14c] sm:$0xf] %v348_v19 }
  0x4b   : > { %351 = vst [vmem:[%s5982_s30 + $0x150] sm:$0xf] %v350_v20  ;;  %353 = vst [vmem:[%s5982_s30 + $0x154] sm:$0xf] %v352_v21  ;;  %v354_v22 = vld [vmem:[%s5975_s29 + $0x560] sm:$0xf] }
  0x4c   : > { %v356_v23 = vld [vmem:[%s5975_s29 + $0x570] sm:$0xf]  ;;  %v358_v24 = vld [vmem:[%s5975_s29 + $0x580] sm:$0xf]  ;;  %355 = vst [vmem:[%s5982_s30 + $0x158] sm:$0xf] %v354_v22 }
  0x4d   : > { %357 = vst [vmem:[%s5982_s30 + $0x15c] sm:$0xf] %v356_v23  ;;  %359 = vst [vmem:[%s5982_s30 + $0x160] sm:$0xf] %v358_v24  ;;  %v360_v25 = vld [vmem:[%s5975_s29 + $0x590] sm:$0xf] }
  0x4e   : > { %v362_v26 = vld [vmem:[%s5975_s29 + $0x5a0] sm:$0xf]  ;;  %v364_v27 = vld [vmem:[%s5975_s29 + $0x5b0] sm:$0xf]  ;;  %361 = vst [vmem:[%s5982_s30 + $0x164] sm:$0xf] %v360_v25 }
  0x4f   : > { %363 = vst [vmem:[%s5982_s30 + $0x168] sm:$0xf] %v362_v26  ;;  %365 = vst [vmem:[%s5982_s30 + $0x16c] sm:$0xf] %v364_v27  ;;  %v366_v28 = vld [vmem:[%s5975_s29 + $0x5c0] sm:$0xf] }
  0x50   : > { %v368_v29 = vld [vmem:[%s5975_s29 + $0x5d0] sm:$0xf]  ;;  %v370_v30 = vld [vmem:[%s5975_s29 + $0x5e0] sm:$0xf]  ;;  %367 = vst [vmem:[%s5982_s30 + $0x170] sm:$0xf] %v366_v28 }
  0x51   : > { %369 = vst [vmem:[%s5982_s30 + $0x174] sm:$0xf] %v368_v29  ;;  %371 = vst [vmem:[%s5982_s30 + $0x178] sm:$0xf] %v370_v30  ;;  %v372_v31 = vld [vmem:[%s5975_s29 + $0x5f0] sm:$0xf] }
  0x52   : > { %v374_v32 = vld [vmem:[%s5975_s29 + $0x600] sm:$0xf]  ;;  %v376_v33 = vld [vmem:[%s5975_s29 + $0x610] sm:$0xf]  ;;  %373 = vst [vmem:[%s5982_s30 + $0x17c] sm:$0xf] %v372_v31 }
  0x53   : > { %375 = vst [vmem:[%s5982_s30 + $0x180] sm:$0xf] %v374_v32  ;;  %377 = vst [vmem:[%s5982_s30 + $0x184] sm:$0xf] %v376_v33  ;;  %v378_v34 = vld [vmem:[%s5975_s29 + $0x620] sm:$0xf] }
  0x54   : > { %v380_v35 = vld [vmem:[%s5975_s29 + $0x630] sm:$0xf]  ;;  %v382_v36 = vld [vmem:[%s5975_s29 + $0x640] sm:$0xf]  ;;  %379 = vst [vmem:[%s5982_s30 + $0x188] sm:$0xf] %v378_v34 }
  0x55   : > { %381 = vst [vmem:[%s5982_s30 + $0x18c] sm:$0xf] %v380_v35  ;;  %383 = vst [vmem:[%s5982_s30 + $0x190] sm:$0xf] %v382_v36  ;;  %v384_v37 = vld [vmem:[%s5975_s29 + $0x650] sm:$0xf] }
  0x56   : > { %v386_v38 = vld [vmem:[%s5975_s29 + $0x660] sm:$0xf]  ;;  %v388_v39 = vld [vmem:[%s5975_s29 + $0x670] sm:$0xf]  ;;  %385 = vst [vmem:[%s5982_s30 + $0x194] sm:$0xf] %v384_v37 }
  0x57   : > { %387 = vst [vmem:[%s5982_s30 + $0x198] sm:$0xf] %v386_v38  ;;  %389 = vst [vmem:[%s5982_s30 + $0x19c] sm:$0xf] %v388_v39  ;;  %v390_v40 = vld [vmem:[%s5975_s29 + $0x680] sm:$0xf] }
  0x58   : > { %v392_v41 = vld [vmem:[%s5975_s29 + $0x690] sm:$0xf]  ;;  %v394_v42 = vld [vmem:[%s5975_s29 + $0x6a0] sm:$0xf]  ;;  %391 = vst [vmem:[%s5982_s30 + $0x1a0] sm:$0xf] %v390_v40 }
  0x59   : > { %393 = vst [vmem:[%s5982_s30 + $0x1a4] sm:$0xf] %v392_v41  ;;  %395 = vst [vmem:[%s5982_s30 + $0x1a8] sm:$0xf] %v394_v42  ;;  %v396_v43 = vld [vmem:[%s5975_s29 + $0x6b0] sm:$0xf] }
  0x5a   : > { %v398_v44 = vld [vmem:[%s5975_s29 + $0x6c0] sm:$0xf]  ;;  %v400_v45 = vld [vmem:[%s5975_s29 + $0x6d0] sm:$0xf]  ;;  %397 = vst [vmem:[%s5982_s30 + $0x1ac] sm:$0xf] %v396_v43 }
  0x5b   : > { %399 = vst [vmem:[%s5982_s30 + $0x1b0] sm:$0xf] %v398_v44  ;;  %401 = vst [vmem:[%s5982_s30 + $0x1b4] sm:$0xf] %v400_v45  ;;  %v402_v46 = vld [vmem:[%s5975_s29 + $0x6e0] sm:$0xf] }
  0x5c   : > { %v404_v47 = vld [vmem:[%s5975_s29 + $0x6f0] sm:$0xf]  ;;  %v406_v48 = vld [vmem:[%s5975_s29 + $0x700] sm:$0xf]  ;;  %403 = vst [vmem:[%s5982_s30 + $0x1b8] sm:$0xf] %v402_v46 }
  0x5d   : > { %405 = vst [vmem:[%s5982_s30 + $0x1bc] sm:$0xf] %v404_v47  ;;  %407 = vst [vmem:[%s5982_s30 + $0x1c0] sm:$0xf] %v406_v48  ;;  %v408_v49 = vld [vmem:[%s5975_s29 + $0x710] sm:$0xf] }
  0x5e   : > { %v410_v50 = vld [vmem:[%s5975_s29 + $0x720] sm:$0xf]  ;;  %v412_v51 = vld [vmem:[%s5975_s29 + $0x730] sm:$0xf]  ;;  %409 = vst [vmem:[%s5982_s30 + $0x1c4] sm:$0xf] %v408_v49 }
  0x5f   : > { %411 = vst [vmem:[%s5982_s30 + $0x1c8] sm:$0xf] %v410_v50  ;;  %413 = vst [vmem:[%s5982_s30 + $0x1cc] sm:$0xf] %v412_v51  ;;  %v414_v52 = vld [vmem:[%s5975_s29 + $0x740] sm:$0xf] }
  0x60   : > { %v416_v53 = vld [vmem:[%s5975_s29 + $0x750] sm:$0xf]  ;;  %v418_v54 = vld [vmem:[%s5975_s29 + $0x760] sm:$0xf]  ;;  %415 = vst [vmem:[%s5982_s30 + $0x1d0] sm:$0xf] %v414_v52 }
  0x61   : > { %417 = vst [vmem:[%s5982_s30 + $0x1d4] sm:$0xf] %v416_v53  ;;  %419 = vst [vmem:[%s5982_s30 + $0x1d8] sm:$0xf] %v418_v54  ;;  %v420_v55 = vld [vmem:[%s5975_s29 + $0x770] sm:$0xf] }
  0x62   : > { %v422_v56 = vld [vmem:[%s5975_s29 + $0x780] sm:$0xf]  ;;  %v424_v57 = vld [vmem:[%s5975_s29 + $0x790] sm:$0xf]  ;;  %421 = vst [vmem:[%s5982_s30 + $0x1dc] sm:$0xf] %v420_v55 }
  0x63   : > { %423 = vst [vmem:[%s5982_s30 + $0x1e0] sm:$0xf] %v422_v56  ;;  %425 = vst [vmem:[%s5982_s30 + $0x1e4] sm:$0xf] %v424_v57  ;;  %v426_v58 = vld [vmem:[%s5975_s29 + $0x7a0] sm:$0xf] }
  0x64   : > { %v428_v59 = vld [vmem:[%s5975_s29 + $0x7b0] sm:$0xf]  ;;  %v430_v60 = vld [vmem:[%s5975_s29 + $0x7c0] sm:$0xf]  ;;  %427 = vst [vmem:[%s5982_s30 + $0x1e8] sm:$0xf] %v426_v58 }
  0x65   : > { %429 = vst [vmem:[%s5982_s30 + $0x1ec] sm:$0xf] %v428_v59  ;;  %431 = vst [vmem:[%s5982_s30 + $0x1f0] sm:$0xf] %v430_v60  ;;  %v432_v61 = vld [vmem:[%s5975_s29 + $0x7d0] sm:$0xf] }
  0x66   : > { %v434_v62 = vld [vmem:[%s5975_s29 + $0x7e0] sm:$0xf]  ;;  %v436_v63 = vld [vmem:[%s5975_s29 + $0x7f0] sm:$0xf]  ;;  %433 = vst [vmem:[%s5982_s30 + $0x1f4] sm:$0xf] %v432_v61 }
  0x67   : > { %435 = vst [vmem:[%s5982_s30 + $0x1f8] sm:$0xf] %v434_v62  ;;  %437 = vst [vmem:[%s5982_s30 + $0x1fc] sm:$0xf] %v436_v63  ;;  %v438_v0 = vld [vmem:[%s5975_s29 + $0x800] sm:$0xf] }
  0x68   : > { %v440_v1 = vld [vmem:[%s5975_s29 + $0x810] sm:$0xf]  ;;  %v442_v2 = vld [vmem:[%s5975_s29 + $0x820] sm:$0xf]  ;;  %439 = vst [vmem:[%s5982_s30 + $0x200] sm:$0xf] %v438_v0 }
  0x69   : > { %441 = vst [vmem:[%s5982_s30 + $0x204] sm:$0xf] %v440_v1  ;;  %443 = vst [vmem:[%s5982_s30 + $0x208] sm:$0xf] %v442_v2  ;;  %v444_v3 = vld [vmem:[%s5975_s29 + $0x830] sm:$0xf] }
  0x6a   : > { %v446_v4 = vld [vmem:[%s5975_s29 + $0x840] sm:$0xf]  ;;  %v448_v5 = vld [vmem:[%s5975_s29 + $0x850] sm:$0xf]  ;;  %445 = vst [vmem:[%s5982_s30 + $0x20c] sm:$0xf] %v444_v3 }
  0x6b   : > { %447 = vst [vmem:[%s5982_s30 + $0x210] sm:$0xf] %v446_v4  ;;  %449 = vst [vmem:[%s5982_s30 + $0x214] sm:$0xf] %v448_v5  ;;  %v450_v6 = vld [vmem:[%s5975_s29 + $0x860] sm:$0xf] }
  0x6c   : > { %v452_v7 = vld [vmem:[%s5975_s29 + $0x870] sm:$0xf]  ;;  %v454_v8 = vld [vmem:[%s5975_s29 + $0x880] sm:$0xf]  ;;  %451 = vst [vmem:[%s5982_s30 + $0x218] sm:$0xf] %v450_v6 }
  0x6d   : > { %453 = vst [vmem:[%s5982_s30 + $0x21c] sm:$0xf] %v452_v7  ;;  %455 = vst [vmem:[%s5982_s30 + $0x220] sm:$0xf] %v454_v8  ;;  %v456_v9 = vld [vmem:[%s5975_s29 + $0x890] sm:$0xf] }
  0x6e   : > { %v458_v10 = vld [vmem:[%s5975_s29 + $0x8a0] sm:$0xf]  ;;  %v460_v11 = vld [vmem:[%s5975_s29 + $0x8b0] sm:$0xf]  ;;  %457 = vst [vmem:[%s5982_s30 + $0x224] sm:$0xf] %v456_v9 }
  0x6f   : > { %459 = vst [vmem:[%s5982_s30 + $0x228] sm:$0xf] %v458_v10  ;;  %461 = vst [vmem:[%s5982_s30 + $0x22c] sm:$0xf] %v460_v11  ;;  %v462_v12 = vld [vmem:[%s5975_s29 + $0x8c0] sm:$0xf] }
  0x70   : > { %v464_v13 = vld [vmem:[%s5975_s29 + $0x8d0] sm:$0xf]  ;;  %v466_v14 = vld [vmem:[%s5975_s29 + $0x8e0] sm:$0xf]  ;;  %463 = vst [vmem:[%s5982_s30 + $0x230] sm:$0xf] %v462_v12 }
  0x71   : > { %465 = vst [vmem:[%s5982_s30 + $0x234] sm:$0xf] %v464_v13  ;;  %467 = vst [vmem:[%s5982_s30 + $0x238] sm:$0xf] %v466_v14  ;;  %v468_v15 = vld [vmem:[%s5975_s29 + $0x8f0] sm:$0xf] }
  0x72   : > { %v470_v16 = vld [vmem:[%s5975_s29 + $0x900] sm:$0xf]  ;;  %v472_v17 = vld [vmem:[%s5975_s29 + $0x910] sm:$0xf]  ;;  %469 = vst [vmem:[%s5982_s30 + $0x23c] sm:$0xf] %v468_v15 }
  0x73   : > { %471 = vst [vmem:[%s5982_s30 + $0x240] sm:$0xf] %v470_v16  ;;  %473 = vst [vmem:[%s5982_s30 + $0x244] sm:$0xf] %v472_v17  ;;  %v474_v18 = vld [vmem:[%s5975_s29 + $0x920] sm:$0xf] }
  0x74   : > { %v476_v19 = vld [vmem:[%s5975_s29 + $0x930] sm:$0xf]  ;;  %v478_v20 = vld [vmem:[%s5975_s29 + $0x940] sm:$0xf]  ;;  %475 = vst [vmem:[%s5982_s30 + $0x248] sm:$0xf] %v474_v18 }
  0x75   : > { %477 = vst [vmem:[%s5982_s30 + $0x24c] sm:$0xf] %v476_v19  ;;  %479 = vst [vmem:[%s5982_s30 + $0x250] sm:$0xf] %v478_v20  ;;  %v480_v21 = vld [vmem:[%s5975_s29 + $0x950] sm:$0xf] }
  0x76   : > { %v482_v22 = vld [vmem:[%s5975_s29 + $0x960] sm:$0xf]  ;;  %v484_v23 = vld [vmem:[%s5975_s29 + $0x970] sm:$0xf]  ;;  %481 = vst [vmem:[%s5982_s30 + $0x254] sm:$0xf] %v480_v21 }
  0x77   : > { %483 = vst [vmem:[%s5982_s30 + $0x258] sm:$0xf] %v482_v22  ;;  %485 = vst [vmem:[%s5982_s30 + $0x25c] sm:$0xf] %v484_v23  ;;  %v486_v24 = vld [vmem:[%s5975_s29 + $0x980] sm:$0xf] }
  0x78   : > { %v488_v25 = vld [vmem:[%s5975_s29 + $0x990] sm:$0xf]  ;;  %v490_v26 = vld [vmem:[%s5975_s29 + $0x9a0] sm:$0xf]  ;;  %487 = vst [vmem:[%s5982_s30 + $0x260] sm:$0xf] %v486_v24 }
  0x79   : > { %489 = vst [vmem:[%s5982_s30 + $0x264] sm:$0xf] %v488_v25  ;;  %491 = vst [vmem:[%s5982_s30 + $0x268] sm:$0xf] %v490_v26  ;;  %v492_v27 = vld [vmem:[%s5975_s29 + $0x9b0] sm:$0xf] }
  0x7a   : > { %v494_v28 = vld [vmem:[%s5975_s29 + $0x9c0] sm:$0xf]  ;;  %v496_v29 = vld [vmem:[%s5975_s29 + $0x9d0] sm:$0xf]  ;;  %493 = vst [vmem:[%s5982_s30 + $0x26c] sm:$0xf] %v492_v27 }
  0x7b   : > { %495 = vst [vmem:[%s5982_s30 + $0x270] sm:$0xf] %v494_v28  ;;  %497 = vst [vmem:[%s5982_s30 + $0x274] sm:$0xf] %v496_v29  ;;  %v498_v30 = vld [vmem:[%s5975_s29 + $0x9e0] sm:$0xf] }
  0x7c   : > { %v500_v31 = vld [vmem:[%s5975_s29 + $0x9f0] sm:$0xf]  ;;  %v502_v32 = vld [vmem:[%s5975_s29 + $0xa00] sm:$0xf]  ;;  %499 = vst [vmem:[%s5982_s30 + $0x278] sm:$0xf] %v498_v30 }
  0x7d   : > { %501 = vst [vmem:[%s5982_s30 + $0x27c] sm:$0xf] %v500_v31  ;;  %503 = vst [vmem:[%s5982_s30 + $0x280] sm:$0xf] %v502_v32  ;;  %v504_v33 = vld [vmem:[%s5975_s29 + $0xa10] sm:$0xf] }
  0x7e   : > { %v506_v34 = vld [vmem:[%s5975_s29 + $0xa20] sm:$0xf]  ;;  %v508_v35 = vld [vmem:[%s5975_s29 + $0xa30] sm:$0xf]  ;;  %505 = vst [vmem:[%s5982_s30 + $0x284] sm:$0xf] %v504_v33 }
  0x7f   : > { %507 = vst [vmem:[%s5982_s30 + $0x288] sm:$0xf] %v506_v34  ;;  %509 = vst [vmem:[%s5982_s30 + $0x28c] sm:$0xf] %v508_v35  ;;  %v510_v36 = vld [vmem:[%s5975_s29 + $0xa40] sm:$0xf] }
  0x80   : > { %v512_v37 = vld [vmem:[%s5975_s29 + $0xa50] sm:$0xf]  ;;  %v514_v38 = vld [vmem:[%s5975_s29 + $0xa60] sm:$0xf]  ;;  %511 = vst [vmem:[%s5982_s30 + $0x290] sm:$0xf] %v510_v36 }
  0x81   : > { %513 = vst [vmem:[%s5982_s30 + $0x294] sm:$0xf] %v512_v37  ;;  %515 = vst [vmem:[%s5982_s30 + $0x298] sm:$0xf] %v514_v38  ;;  %v516_v39 = vld [vmem:[%s5975_s29 + $0xa70] sm:$0xf] }
  0x82   : > { %v518_v40 = vld [vmem:[%s5975_s29 + $0xa80] sm:$0xf]  ;;  %v520_v41 = vld [vmem:[%s5975_s29 + $0xa90] sm:$0xf]  ;;  %517 = vst [vmem:[%s5982_s30 + $0x29c] sm:$0xf] %v516_v39 }
  0x83   : > { %519 = vst [vmem:[%s5982_s30 + $0x2a0] sm:$0xf] %v518_v40  ;;  %521 = vst [vmem:[%s5982_s30 + $0x2a4] sm:$0xf] %v520_v41  ;;  %v522_v42 = vld [vmem:[%s5975_s29 + $0xaa0] sm:$0xf] }
  0x84   : > { %v524_v43 = vld [vmem:[%s5975_s29 + $0xab0] sm:$0xf]  ;;  %v526_v44 = vld [vmem:[%s5975_s29 + $0xac0] sm:$0xf]  ;;  %523 = vst [vmem:[%s5982_s30 + $0x2a8] sm:$0xf] %v522_v42 }
  0x85   : > { %525 = vst [vmem:[%s5982_s30 + $0x2ac] sm:$0xf] %v524_v43  ;;  %527 = vst [vmem:[%s5982_s30 + $0x2b0] sm:$0xf] %v526_v44  ;;  %v528_v45 = vld [vmem:[%s5975_s29 + $0xad0] sm:$0xf] }
  0x86   : > { %v530_v46 = vld [vmem:[%s5975_s29 + $0xae0] sm:$0xf]  ;;  %v532_v47 = vld [vmem:[%s5975_s29 + $0xaf0] sm:$0xf]  ;;  %529 = vst [vmem:[%s5982_s30 + $0x2b4] sm:$0xf] %v528_v45 }
  0x87   : > { %531 = vst [vmem:[%s5982_s30 + $0x2b8] sm:$0xf] %v530_v46  ;;  %533 = vst [vmem:[%s5982_s30 + $0x2bc] sm:$0xf] %v532_v47  ;;  %v534_v48 = vld [vmem:[%s5975_s29 + $0xb00] sm:$0xf] }
  0x88   : > { %v536_v49 = vld [vmem:[%s5975_s29 + $0xb10] sm:$0xf]  ;;  %v538_v50 = vld [vmem:[%s5975_s29 + $0xb20] sm:$0xf]  ;;  %535 = vst [vmem:[%s5982_s30 + $0x2c0] sm:$0xf] %v534_v48 }
  0x89   : > { %537 = vst [vmem:[%s5982_s30 + $0x2c4] sm:$0xf] %v536_v49  ;;  %539 = vst [vmem:[%s5982_s30 + $0x2c8] sm:$0xf] %v538_v50  ;;  %v540_v51 = vld [vmem:[%s5975_s29 + $0xb30] sm:$0xf] }
  0x8a   : > { %v542_v52 = vld [vmem:[%s5975_s29 + $0xb40] sm:$0xf]  ;;  %v544_v53 = vld [vmem:[%s5975_s29 + $0xb50] sm:$0xf]  ;;  %541 = vst [vmem:[%s5982_s30 + $0x2cc] sm:$0xf] %v540_v51 }
  0x8b   : > { %543 = vst [vmem:[%s5982_s30 + $0x2d0] sm:$0xf] %v542_v52  ;;  %545 = vst [vmem:[%s5982_s30 + $0x2d4] sm:$0xf] %v544_v53  ;;  %v546_v54 = vld [vmem:[%s5975_s29 + $0xb60] sm:$0xf] }
  0x8c   : > { %v548_v55 = vld [vmem:[%s5975_s29 + $0xb70] sm:$0xf]  ;;  %v550_v56 = vld [vmem:[%s5975_s29 + $0xb80] sm:$0xf]  ;;  %547 = vst [vmem:[%s5982_s30 + $0x2d8] sm:$0xf] %v546_v54 }
  0x8d   : > { %549 = vst [vmem:[%s5982_s30 + $0x2dc] sm:$0xf] %v548_v55  ;;  %551 = vst [vmem:[%s5982_s30 + $0x2e0] sm:$0xf] %v550_v56  ;;  %v552_v57 = vld [vmem:[%s5975_s29 + $0xb90] sm:$0xf] }
  0x8e   : > { %v554_v58 = vld [vmem:[%s5975_s29 + $0xba0] sm:$0xf]  ;;  %v556_v59 = vld [vmem:[%s5975_s29 + $0xbb0] sm:$0xf]  ;;  %553 = vst [vmem:[%s5982_s30 + $0x2e4] sm:$0xf] %v552_v57 }
  0x8f   : > { %555 = vst [vmem:[%s5982_s30 + $0x2e8] sm:$0xf] %v554_v58  ;;  %557 = vst [vmem:[%s5982_s30 + $0x2ec] sm:$0xf] %v556_v59  ;;  %v558_v60 = vld [vmem:[%s5975_s29 + $0xbc0] sm:$0xf] }
  0x90   : > { %v560_v61 = vld [vmem:[%s5975_s29 + $0xbd0] sm:$0xf]  ;;  %v562_v62 = vld [vmem:[%s5975_s29 + $0xbe0] sm:$0xf]  ;;  %559 = vst [vmem:[%s5982_s30 + $0x2f0] sm:$0xf] %v558_v60 }
  0x91   : > { %561 = vst [vmem:[%s5982_s30 + $0x2f4] sm:$0xf] %v560_v61  ;;  %563 = vst [vmem:[%s5982_s30 + $0x2f8] sm:$0xf] %v562_v62  ;;  %v564_v63 = vld [vmem:[%s5975_s29 + $0xbf0] sm:$0xf] }
  0x92   : > { %v566_v0 = vld [vmem:[%s5975_s29 + $0xc00] sm:$0xf]  ;;  %v568_v1 = vld [vmem:[%s5975_s29 + $0xc10] sm:$0xf]  ;;  %565 = vst [vmem:[%s5982_s30 + $0x2fc] sm:$0xf] %v564_v63 }
  0x93   : > { %567 = vst [vmem:[%s5982_s30 + $0x300] sm:$0xf] %v566_v0  ;;  %569 = vst [vmem:[%s5982_s30 + $0x304] sm:$0xf] %v568_v1  ;;  %v570_v2 = vld [vmem:[%s5975_s29 + $0xc20] sm:$0xf] }
  0x94   : > { %v572_v3 = vld [vmem:[%s5975_s29 + $0xc30] sm:$0xf]  ;;  %v574_v4 = vld [vmem:[%s5975_s29 + $0xc40] sm:$0xf]  ;;  %571 = vst [vmem:[%s5982_s30 + $0x308] sm:$0xf] %v570_v2 }
  0x95   : > { %573 = vst [vmem:[%s5982_s30 + $0x30c] sm:$0xf] %v572_v3  ;;  %575 = vst [vmem:[%s5982_s30 + $0x310] sm:$0xf] %v574_v4  ;;  %v576_v5 = vld [vmem:[%s5975_s29 + $0xc50] sm:$0xf] }
  0x96   : > { %v578_v6 = vld [vmem:[%s5975_s29 + $0xc60] sm:$0xf]  ;;  %v580_v7 = vld [vmem:[%s5975_s29 + $0xc70] sm:$0xf]  ;;  %577 = vst [vmem:[%s5982_s30 + $0x314] sm:$0xf] %v576_v5 }
  0x97   : > { %579 = vst [vmem:[%s5982_s30 + $0x318] sm:$0xf] %v578_v6  ;;  %581 = vst [vmem:[%s5982_s30 + $0x31c] sm:$0xf] %v580_v7  ;;  %v582_v8 = vld [vmem:[%s5975_s29 + $0xc80] sm:$0xf] }
  0x98   : > { %v584_v9 = vld [vmem:[%s5975_s29 + $0xc90] sm:$0xf]  ;;  %v586_v10 = vld [vmem:[%s5975_s29 + $0xca0] sm:$0xf]  ;;  %583 = vst [vmem:[%s5982_s30 + $0x320] sm:$0xf] %v582_v8 }
  0x99   : > { %585 = vst [vmem:[%s5982_s30 + $0x324] sm:$0xf] %v584_v9  ;;  %587 = vst [vmem:[%s5982_s30 + $0x328] sm:$0xf] %v586_v10  ;;  %v588_v11 = vld [vmem:[%s5975_s29 + $0xcb0] sm:$0xf] }
  0x9a   : > { %v590_v12 = vld [vmem:[%s5975_s29 + $0xcc0] sm:$0xf]  ;;  %v592_v13 = vld [vmem:[%s5975_s29 + $0xcd0] sm:$0xf]  ;;  %589 = vst [vmem:[%s5982_s30 + $0x32c] sm:$0xf] %v588_v11 }
  0x9b   : > { %591 = vst [vmem:[%s5982_s30 + $0x330] sm:$0xf] %v590_v12  ;;  %593 = vst [vmem:[%s5982_s30 + $0x334] sm:$0xf] %v592_v13  ;;  %v594_v14 = vld [vmem:[%s5975_s29 + $0xce0] sm:$0xf] }
  0x9c   : > { %v596_v15 = vld [vmem:[%s5975_s29 + $0xcf0] sm:$0xf]  ;;  %v598_v16 = vld [vmem:[%s5975_s29 + $0xd00] sm:$0xf]  ;;  %595 = vst [vmem:[%s5982_s30 + $0x338] sm:$0xf] %v594_v14 }
  0x9d   : > { %597 = vst [vmem:[%s5982_s30 + $0x33c] sm:$0xf] %v596_v15  ;;  %599 = vst [vmem:[%s5982_s30 + $0x340] sm:$0xf] %v598_v16  ;;  %v600_v17 = vld [vmem:[%s5975_s29 + $0xd10] sm:$0xf] }
  0x9e   : > { %v602_v18 = vld [vmem:[%s5975_s29 + $0xd20] sm:$0xf]  ;;  %v604_v19 = vld [vmem:[%s5975_s29 + $0xd30] sm:$0xf]  ;;  %601 = vst [vmem:[%s5982_s30 + $0x344] sm:$0xf] %v600_v17 }
  0x9f   : > { %603 = vst [vmem:[%s5982_s30 + $0x348] sm:$0xf] %v602_v18  ;;  %605 = vst [vmem:[%s5982_s30 + $0x34c] sm:$0xf] %v604_v19  ;;  %v606_v20 = vld [vmem:[%s5975_s29 + $0xd40] sm:$0xf] }
  0xa0   : > { %v608_v21 = vld [vmem:[%s5975_s29 + $0xd50] sm:$0xf]  ;;  %v610_v22 = vld [vmem:[%s5975_s29 + $0xd60] sm:$0xf]  ;;  %607 = vst [vmem:[%s5982_s30 + $0x350] sm:$0xf] %v606_v20 }
  0xa1   : > { %609 = vst [vmem:[%s5982_s30 + $0x354] sm:$0xf] %v608_v21  ;;  %611 = vst [vmem:[%s5982_s30 + $0x358] sm:$0xf] %v610_v22  ;;  %v612_v23 = vld [vmem:[%s5975_s29 + $0xd70] sm:$0xf] }
  0xa2   : > { %v614_v24 = vld [vmem:[%s5975_s29 + $0xd80] sm:$0xf]  ;;  %v616_v25 = vld [vmem:[%s5975_s29 + $0xd90] sm:$0xf]  ;;  %613 = vst [vmem:[%s5982_s30 + $0x35c] sm:$0xf] %v612_v23 }
  0xa3   : > { %615 = vst [vmem:[%s5982_s30 + $0x360] sm:$0xf] %v614_v24  ;;  %617 = vst [vmem:[%s5982_s30 + $0x364] sm:$0xf] %v616_v25  ;;  %v618_v26 = vld [vmem:[%s5975_s29 + $0xda0] sm:$0xf] }
  0xa4   : > { %v620_v27 = vld [vmem:[%s5975_s29 + $0xdb0] sm:$0xf]  ;;  %v622_v28 = vld [vmem:[%s5975_s29 + $0xdc0] sm:$0xf]  ;;  %619 = vst [vmem:[%s5982_s30 + $0x368] sm:$0xf] %v618_v26 }
  0xa5   : > { %621 = vst [vmem:[%s5982_s30 + $0x36c] sm:$0xf] %v620_v27  ;;  %623 = vst [vmem:[%s5982_s30 + $0x370] sm:$0xf] %v622_v28  ;;  %v624_v29 = vld [vmem:[%s5975_s29 + $0xdd0] sm:$0xf] }
  0xa6   : > { %v626_v30 = vld [vmem:[%s5975_s29 + $0xde0] sm:$0xf]  ;;  %v628_v31 = vld [vmem:[%s5975_s29 + $0xdf0] sm:$0xf]  ;;  %625 = vst [vmem:[%s5982_s30 + $0x374] sm:$0xf] %v624_v29 }
  0xa7   : > { %627 = vst [vmem:[%s5982_s30 + $0x378] sm:$0xf] %v626_v30  ;;  %629 = vst [vmem:[%s5982_s30 + $0x37c] sm:$0xf] %v628_v31  ;;  %v630_v32 = vld [vmem:[%s5975_s29 + $0xe00] sm:$0xf] }
  0xa8   : > { %v632_v33 = vld [vmem:[%s5975_s29 + $0xe10] sm:$0xf]  ;;  %v634_v34 = vld [vmem:[%s5975_s29 + $0xe20] sm:$0xf]  ;;  %631 = vst [vmem:[%s5982_s30 + $0x380] sm:$0xf] %v630_v32 }
  0xa9   : > { %633 = vst [vmem:[%s5982_s30 + $0x384] sm:$0xf] %v632_v33  ;;  %635 = vst [vmem:[%s5982_s30 + $0x388] sm:$0xf] %v634_v34  ;;  %v636_v35 = vld [vmem:[%s5975_s29 + $0xe30] sm:$0xf] }
  0xaa   : > { %v638_v36 = vld [vmem:[%s5975_s29 + $0xe40] sm:$0xf]  ;;  %v640_v37 = vld [vmem:[%s5975_s29 + $0xe50] sm:$0xf]  ;;  %637 = vst [vmem:[%s5982_s30 + $0x38c] sm:$0xf] %v636_v35 }
  0xab   : > { %639 = vst [vmem:[%s5982_s30 + $0x390] sm:$0xf] %v638_v36  ;;  %641 = vst [vmem:[%s5982_s30 + $0x394] sm:$0xf] %v640_v37  ;;  %v642_v38 = vld [vmem:[%s5975_s29 + $0xe60] sm:$0xf] }
  0xac   : > { %v644_v39 = vld [vmem:[%s5975_s29 + $0xe70] sm:$0xf]  ;;  %v646_v40 = vld [vmem:[%s5975_s29 + $0xe80] sm:$0xf]  ;;  %643 = vst [vmem:[%s5982_s30 + $0x398] sm:$0xf] %v642_v38 }
  0xad   : > { %645 = vst [vmem:[%s5982_s30 + $0x39c] sm:$0xf] %v644_v39  ;;  %647 = vst [vmem:[%s5982_s30 + $0x3a0] sm:$0xf] %v646_v40  ;;  %v648_v41 = vld [vmem:[%s5975_s29 + $0xe90] sm:$0xf] }
  0xae   : > { %v650_v42 = vld [vmem:[%s5975_s29 + $0xea0] sm:$0xf]  ;;  %v652_v43 = vld [vmem:[%s5975_s29 + $0xeb0] sm:$0xf]  ;;  %649 = vst [vmem:[%s5982_s30 + $0x3a4] sm:$0xf] %v648_v41 }
  0xaf   : > { %651 = vst [vmem:[%s5982_s30 + $0x3a8] sm:$0xf] %v650_v42  ;;  %653 = vst [vmem:[%s5982_s30 + $0x3ac] sm:$0xf] %v652_v43  ;;  %v654_v44 = vld [vmem:[%s5975_s29 + $0xec0] sm:$0xf] }
  0xb0   : > { %v656_v45 = vld [vmem:[%s5975_s29 + $0xed0] sm:$0xf]  ;;  %v658_v46 = vld [vmem:[%s5975_s29 + $0xee0] sm:$0xf]  ;;  %655 = vst [vmem:[%s5982_s30 + $0x3b0] sm:$0xf] %v654_v44 }
  0xb1   : > { %657 = vst [vmem:[%s5982_s30 + $0x3b4] sm:$0xf] %v656_v45  ;;  %659 = vst [vmem:[%s5982_s30 + $0x3b8] sm:$0xf] %v658_v46  ;;  %v660_v47 = vld [vmem:[%s5975_s29 + $0xef0] sm:$0xf] }
  0xb2   : > { %v662_v48 = vld [vmem:[%s5975_s29 + $0xf00] sm:$0xf]  ;;  %v664_v49 = vld [vmem:[%s5975_s29 + $0xf10] sm:$0xf]  ;;  %661 = vst [vmem:[%s5982_s30 + $0x3bc] sm:$0xf] %v660_v47 }
  0xb3   : > { %663 = vst [vmem:[%s5982_s30 + $0x3c0] sm:$0xf] %v662_v48  ;;  %665 = vst [vmem:[%s5982_s30 + $0x3c4] sm:$0xf] %v664_v49  ;;  %v666_v50 = vld [vmem:[%s5975_s29 + $0xf20] sm:$0xf] }
  0xb4   : > { %v668_v51 = vld [vmem:[%s5975_s29 + $0xf30] sm:$0xf]  ;;  %v670_v52 = vld [vmem:[%s5975_s29 + $0xf40] sm:$0xf]  ;;  %667 = vst [vmem:[%s5982_s30 + $0x3c8] sm:$0xf] %v666_v50 }
  0xb5   : > { %669 = vst [vmem:[%s5982_s30 + $0x3cc] sm:$0xf] %v668_v51  ;;  %671 = vst [vmem:[%s5982_s30 + $0x3d0] sm:$0xf] %v670_v52  ;;  %v672_v53 = vld [vmem:[%s5975_s29 + $0xf50] sm:$0xf] }
  0xb6   : > { %v674_v54 = vld [vmem:[%s5975_s29 + $0xf60] sm:$0xf]  ;;  %v676_v55 = vld [vmem:[%s5975_s29 + $0xf70] sm:$0xf]  ;;  %673 = vst [vmem:[%s5982_s30 + $0x3d4] sm:$0xf] %v672_v53 }
  0xb7   : > { %675 = vst [vmem:[%s5982_s30 + $0x3d8] sm:$0xf] %v674_v54  ;;  %677 = vst [vmem:[%s5982_s30 + $0x3dc] sm:$0xf] %v676_v55  ;;  %v678_v56 = vld [vmem:[%s5975_s29 + $0xf80] sm:$0xf] }
  0xb8   : > { %v680_v57 = vld [vmem:[%s5975_s29 + $0xf90] sm:$0xf]  ;;  %v682_v58 = vld [vmem:[%s5975_s29 + $0xfa0] sm:$0xf]  ;;  %679 = vst [vmem:[%s5982_s30 + $0x3e0] sm:$0xf] %v678_v56 }
  0xb9   : > { %681 = vst [vmem:[%s5982_s30 + $0x3e4] sm:$0xf] %v680_v57  ;;  %683 = vst [vmem:[%s5982_s30 + $0x3e8] sm:$0xf] %v682_v58  ;;  %v684_v59 = vld [vmem:[%s5975_s29 + $0xfb0] sm:$0xf] }
  0xba   : > { %v686_v60 = vld [vmem:[%s5975_s29 + $0xfc0] sm:$0xf]  ;;  %v688_v61 = vld [vmem:[%s5975_s29 + $0xfd0] sm:$0xf]  ;;  %685 = vst [vmem:[%s5982_s30 + $0x3ec] sm:$0xf] %v684_v59 }
  0xbb   : > { %687 = vst [vmem:[%s5982_s30 + $0x3f0] sm:$0xf] %v686_v60  ;;  %689 = vst [vmem:[%s5982_s30 + $0x3f4] sm:$0xf] %v688_v61  ;;  %v690_v62 = vld [vmem:[%s5975_s29 + $0xfe0] sm:$0xf] }
  0xbc   : > { %v692_v63 = vld [vmem:[%s5975_s29 + $0xff0] sm:$0xf]  ;;  %v694_v0 = vld [vmem:[%s5975_s29 + $0x1000] sm:$0xf]  ;;  %691 = vst [vmem:[%s5982_s30 + $0x3f8] sm:$0xf] %v690_v62 }
  0xbd   : > { %693 = vst [vmem:[%s5982_s30 + $0x3fc] sm:$0xf] %v692_v63  ;;  %695 = vst [vmem:[%s5982_s30 + $0x400] sm:$0xf] %v694_v0  ;;  %v696_v1 = vld [vmem:[%s5975_s29 + $0x1010] sm:$0xf] }
  0xbe   : > { %v698_v2 = vld [vmem:[%s5975_s29 + $0x1020] sm:$0xf]  ;;  %v700_v3 = vld [vmem:[%s5975_s29 + $0x1030] sm:$0xf]  ;;  %697 = vst [vmem:[%s5982_s30 + $0x404] sm:$0xf] %v696_v1 }
  0xbf   : > { %699 = vst [vmem:[%s5982_s30 + $0x408] sm:$0xf] %v698_v2  ;;  %701 = vst [vmem:[%s5982_s30 + $0x40c] sm:$0xf] %v700_v3  ;;  %v702_v4 = vld [vmem:[%s5975_s29 + $0x1040] sm:$0xf] }
  0xc0   : > { %v704_v5 = vld [vmem:[%s5975_s29 + $0x1050] sm:$0xf]  ;;  %v706_v6 = vld [vmem:[%s5975_s29 + $0x1060] sm:$0xf]  ;;  %703 = vst [vmem:[%s5982_s30 + $0x410] sm:$0xf] %v702_v4 }
  0xc1   : > { %705 = vst [vmem:[%s5982_s30 + $0x414] sm:$0xf] %v704_v5  ;;  %707 = vst [vmem:[%s5982_s30 + $0x418] sm:$0xf] %v706_v6  ;;  %v708_v7 = vld [vmem:[%s5975_s29 + $0x1070] sm:$0xf] }
  0xc2   : > { %v710_v8 = vld [vmem:[%s5975_s29 + $0x1080] sm:$0xf]  ;;  %v712_v9 = vld [vmem:[%s5975_s29 + $0x1090] sm:$0xf]  ;;  %709 = vst [vmem:[%s5982_s30 + $0x41c] sm:$0xf] %v708_v7 }
  0xc3   : > { %711 = vst [vmem:[%s5982_s30 + $0x420] sm:$0xf] %v710_v8  ;;  %713 = vst [vmem:[%s5982_s30 + $0x424] sm:$0xf] %v712_v9  ;;  %v714_v10 = vld [vmem:[%s5975_s29 + $0x10a0] sm:$0xf] }
  0xc4   : > { %v716_v11 = vld [vmem:[%s5975_s29 + $0x10b0] sm:$0xf]  ;;  %v718_v12 = vld [vmem:[%s5975_s29 + $0x10c0] sm:$0xf]  ;;  %715 = vst [vmem:[%s5982_s30 + $0x428] sm:$0xf] %v714_v10 }
  0xc5   : > { %717 = vst [vmem:[%s5982_s30 + $0x42c] sm:$0xf] %v716_v11  ;;  %719 = vst [vmem:[%s5982_s30 + $0x430] sm:$0xf] %v718_v12  ;;  %v720_v13 = vld [vmem:[%s5975_s29 + $0x10d0] sm:$0xf] }
  0xc6   : > { %v722_v14 = vld [vmem:[%s5975_s29 + $0x10e0] sm:$0xf]  ;;  %v724_v15 = vld [vmem:[%s5975_s29 + $0x10f0] sm:$0xf]  ;;  %721 = vst [vmem:[%s5982_s30 + $0x434] sm:$0xf] %v720_v13 }
  0xc7   : > { %723 = vst [vmem:[%s5982_s30 + $0x438] sm:$0xf] %v722_v14  ;;  %725 = vst [vmem:[%s5982_s30 + $0x43c] sm:$0xf] %v724_v15  ;;  %v726_v16 = vld [vmem:[%s5975_s29 + $0x1100] sm:$0xf] }
  0xc8   : > { %v728_v17 = vld [vmem:[%s5975_s29 + $0x1110] sm:$0xf]  ;;  %v730_v18 = vld [vmem:[%s5975_s29 + $0x1120] sm:$0xf]  ;;  %727 = vst [vmem:[%s5982_s30 + $0x440] sm:$0xf] %v726_v16 }
  0xc9   : > { %729 = vst [vmem:[%s5982_s30 + $0x444] sm:$0xf] %v728_v17  ;;  %731 = vst [vmem:[%s5982_s30 + $0x448] sm:$0xf] %v730_v18  ;;  %v732_v19 = vld [vmem:[%s5975_s29 + $0x1130] sm:$0xf] }
  0xca   : > { %v734_v20 = vld [vmem:[%s5975_s29 + $0x1140] sm:$0xf]  ;;  %v736_v21 = vld [vmem:[%s5975_s29 + $0x1150] sm:$0xf]  ;;  %733 = vst [vmem:[%s5982_s30 + $0x44c] sm:$0xf] %v732_v19 }
  0xcb   : > { %735 = vst [vmem:[%s5982_s30 + $0x450] sm:$0xf] %v734_v20  ;;  %737 = vst [vmem:[%s5982_s30 + $0x454] sm:$0xf] %v736_v21  ;;  %v738_v22 = vld [vmem:[%s5975_s29 + $0x1160] sm:$0xf] }
  0xcc   : > { %v740_v23 = vld [vmem:[%s5975_s29 + $0x1170] sm:$0xf]  ;;  %v742_v24 = vld [vmem:[%s5975_s29 + $0x1180] sm:$0xf]  ;;  %739 = vst [vmem:[%s5982_s30 + $0x458] sm:$0xf] %v738_v22 }
  0xcd   : > { %741 = vst [vmem:[%s5982_s30 + $0x45c] sm:$0xf] %v740_v23  ;;  %743 = vst [vmem:[%s5982_s30 + $0x460] sm:$0xf] %v742_v24  ;;  %v744_v25 = vld [vmem:[%s5975_s29 + $0x1190] sm:$0xf] }
  0xce   : > { %v746_v26 = vld [vmem:[%s5975_s29 + $0x11a0] sm:$0xf]  ;;  %v748_v27 = vld [vmem:[%s5975_s29 + $0x11b0] sm:$0xf]  ;;  %745 = vst [vmem:[%s5982_s30 + $0x464] sm:$0xf] %v744_v25 }
  0xcf   : > { %747 = vst [vmem:[%s5982_s30 + $0x468] sm:$0xf] %v746_v26  ;;  %749 = vst [vmem:[%s5982_s30 + $0x46c] sm:$0xf] %v748_v27  ;;  %v750_v28 = vld [vmem:[%s5975_s29 + $0x11c0] sm:$0xf] }
  0xd0   : > { %v752_v29 = vld [vmem:[%s5975_s29 + $0x11d0] sm:$0xf]  ;;  %v754_v30 = vld [vmem:[%s5975_s29 + $0x11e0] sm:$0xf]  ;;  %751 = vst [vmem:[%s5982_s30 + $0x470] sm:$0xf] %v750_v28 }
  0xd1   : > { %753 = vst [vmem:[%s5982_s30 + $0x474] sm:$0xf] %v752_v29  ;;  %755 = vst [vmem:[%s5982_s30 + $0x478] sm:$0xf] %v754_v30  ;;  %v756_v31 = vld [vmem:[%s5975_s29 + $0x11f0] sm:$0xf] }
  0xd2   : > { %757 = vst [vmem:[%s5982_s30 + $0x47c] sm:$0xf] %v756_v31 }
  0xd3 PF: > { %p4609_p7 = scmp.ge.s32.totalorder %s5907_s17, 1  ;;  %p1368_p8 = scmp.lt.s32.totalorder %s5907_s17, 5 }
  0xd5   : > { %p1369_p9 = pnand %p4609_p7, %p1368_p8 }
  0xd6   : > { %s1375_s5 = sand.u32 (!%p1369_p9), 1, %s5899_s15   ;;  %p1405_p10 = scmp.lt.s32.totalorder (!%p1369_p9), %s5950_s18, 3 }
  0xd7   : > { %1372 = sbr.rel (%p1369_p9) target bundleno = 808 (0x328), region = 73  ;;  %s4610_s9 = sshll.u32 (!%p1369_p9), %s1375_s5, 5 }
  0xd8   : > { %s5498_s6 = smul.u32 (!%p1369_p9), 1152, %s1375_s5  ;;  %s1404_s10 = scalar_lea.vmem (!%p1369_p9), [#allocation3], %s4610_s9 }
  0xda   : > { %s6566_s11 = scalar_lea.vmem (!%p1369_p9), [#allocation2], %s5498_s6 }
  0xdc   : > { %v5541_v32 = vld [vmem:[%s7459_s0 + $0x4] ss:$72 sps:$4 sm:$0xff]   ;;  %v5523_v34 = vld [vmem:[%s6566_s11 + $0x78] sm:$0xff]   ;;  %v5525_v36 = vld [vmem:[%s6566_s11 + $0x70] sm:$0xff]   ;;  %s7431_s27 = scalar_select %p1405_p10, %s5950_s18, 3 }
  0xdd   : > { %v5544_v33 = vld [vmem:[%s7459_s0 + $0x244] ss:$72 sps:$4 sm:$0xff]   ;;  %3460 = vmatprep.mubr.bf16.mxu0 %v5541_v32  ;;  %v5524_v35 = vld [vmem:[%s6566_s11 + $0x38] sm:$0xff]   ;;  %4905 = vmatprep.subr.bf16.mxu0 %v5523_v34  ;;  %v5526_v37 = vld [vmem:[%s6566_s11 + $0x30] sm:$0xff]   ;;  %s4902_s15 = sshll.u32 (%p5965_p5), %s5950_s18, 3 }
  0xde   : > { %3492 = vmatprep.mubr.bf16.mxu1 %v5544_v33  ;;  %5481 = vmatprep.subr.bf16.mxu1 %v5523_v34  ;;  %v5527_v38 = vld [vmem:[%s6566_s11 + $0x68] sm:$0xff]   ;;  %v5529_v40 = vld [vmem:[%s6566_s11 + $0x60] sm:$0xff]   ;;  %v5531_v42 = vld [vmem:[%s6566_s11 + $0x58] sm:$0xff]   ;;  %s1407_s30 = scalar_lea.vmem %s7461_s2, %s7431_s27  ;;  %s1410_s8 = scalar_lea.vmem %s7462_s3, %s7431_s27 }
  0xdf   : > { %4906 = vmatpush3.bf16.msra.mxu0 %v5524_v35  ;;  %5489 = vmatpush3.bf16.msra.mxu1 %v5524_v35  ;;  %v5528_v39 = vld [vmem:[%s6566_s11 + $0x28] sm:$0xff]   ;;  %v5530_v41 = vld [vmem:[%s6566_s11 + $0x20] sm:$0xff]   ;;  %v5532_v43 = vld [vmem:[%s6566_s11 + $0x18] sm:$0xff]   ;;  %s4484_s13 = scalar_lea.vmem (%p5965_p5), %s7463_s4, %s4902_s15 }
  0xe0   : > { %4907 = vmatprep.subr.bf16.mxu0 %v5525_v36  ;;  %5482 = vmatprep.subr.bf16.mxu1 %v5525_v36  ;;  %v5533_v44 = vld [vmem:[%s6566_s11 + $0x50] sm:$0xff]   ;;  %v5535_v46 = vld [vmem:[%s6566_s11 + $0x48] sm:$0xff]   ;;  %v5537_v48 = vld [vmem:[%s6566_s11 + $0x40] sm:$0xff]  }
  0xe1   : > { %v5534_v45 = vld [vmem:[%s6566_s11 + $0x10] sm:$0xff]   ;;  %v5536_v47 = vld [vmem:[%s6566_s11 + $0x8] sm:$0xff]   ;;  %v5538_v49 = vld [vmem:[%s6566_s11] sm:$0xff]  }
  0xe2   : > { %v5545_v50 = vld [vmem:[%s6566_s11 + $0xf8] sm:$0xff]   ;;  %v5539_v51 = vld [vmem:[%s7459_s0] ss:$72 sps:$4 sm:$0xff]   ;;  %v5549_v56 = vld [vmem:[%s6566_s11 + $0xf0] sm:$0xff]  }
  0xe3   : > { %4908 = vmatpush3.bf16.msra.mxu0 %v5526_v37  ;;  %5490 = vmatpush3.bf16.msra.mxu1 %v5526_v37  ;;  %v5542_v52 = vld [vmem:[%s7459_s0 + $0x240] ss:$72 sps:$4 sm:$0xff]   ;;  %v5546_v53 = vld [vmem:[%s6566_s11 + $0x178] sm:$0xff]   ;;  %v5550_v58 = vld [vmem:[%s6566_s11 + $0x170] sm:$0xff]  }
  0xe4   : > { %4909 = vmatprep.subr.bf16.mxu0 %v5527_v38  ;;  %5483 = vmatprep.subr.bf16.mxu1 %v5527_v38  ;;  %v5547_v54 = vld [vmem:[%s6566_s11 + $0xb8] sm:$0xff]   ;;  %v5551_v60 = vld [vmem:[%s6566_s11 + $0xb0] sm:$0xff]   ;;  %v5559_v62 = vld [vmem:[%s6566_s11 + $0xe8] sm:$0xff]  }
  0xe5   : > { %v5548_v55 = vld [vmem:[%s6566_s11 + $0x138] sm:$0xff]   ;;  %v5552_v61 = vld [vmem:[%s6566_s11 + $0x130] sm:$0xff]   ;;  %v5560_v1 = vld [vmem:[%s6566_s11 + $0x168] sm:$0xff]  }
  0xe6   : > { %v5553_v57 = vld [vmem:[%s7459_s0 + $0x94] ss:$72 sps:$4 sm:$0xff]   ;;  %v5557_v63 = vld [vmem:[%s7459_s0 + $0x90] ss:$72 sps:$4 sm:$0xff]   ;;  %v5561_v2 = vld [vmem:[%s6566_s11 + $0xa8] sm:$0xff]  }
  0xe7   : > { %4910 = vmatpush3.bf16.msra.mxu0 %v5528_v39  ;;  %5491 = vmatpush3.bf16.msra.mxu1 %v5528_v39  ;;  %v5555_v59 = vld [vmem:[%s7459_s0 + $0x2d4] ss:$72 sps:$4 sm:$0xff]   ;;  %v5558_v0 = vld [vmem:[%s7459_s0 + $0x2d0] ss:$72 sps:$4 sm:$0xff]   ;;  %v5562_v3 = vld [vmem:[%s6566_s11 + $0x128] sm:$0xff]  }
  0xe8   : > { %4911 = vmatprep.subr.bf16.mxu0 %v5529_v40  ;;  %5484 = vmatprep.subr.bf16.mxu1 %v5529_v40  ;;  %v5563_v4 = vld [vmem:[%s6566_s11 + $0xe0] sm:$0xff]   ;;  %v5573_v10 = vld [vmem:[%s6566_s11 + $0xd8] sm:$0xff]   ;;  %v5577_v16 = vld [vmem:[%s6566_s11 + $0xd0] sm:$0xff]  }
  0xe9   : > { %v5564_v5 = vld [vmem:[%s6566_s11 + $0x160] sm:$0xff]   ;;  %v5574_v13 = vld [vmem:[%s6566_s11 + $0x158] sm:$0xff]   ;;  %v5578_v17 = vld [vmem:[%s6566_s11 + $0x150] sm:$0xff]  }
  0xea   : > { %v5567_v6 = vld [vmem:[%s7459_s0 + $0x124] ss:$72 sps:$4 sm:$0xff]   ;;  %v5571_v11 = vld [vmem:[%s7459_s0 + $0x120] ss:$72 sps:$4 sm:$0xff]   ;;  %v5575_v14 = vld [vmem:[%s6566_s11 + $0x98] sm:$0xff]  }
  0xeb   : > { %4912 = vmatpush3.bf16.msra.mxu0 %v5530_v41  ;;  %5492 = vmatpush3.bf16.msra.mxu1 %v5530_v41  ;;  %v5565_v7 = vld [vmem:[%s6566_s11 + $0xa0] sm:$0xff]   ;;  %v5576_v15 = vld [vmem:[%s6566_s11 + $0x118] sm:$0xff]   ;;  %v5579_v19 = vld [vmem:[%s6566_s11 + $0x90] sm:$0xff]  }
  0xec   : > { %4913 = vmatprep.subr.bf16.mxu0 %v5531_v42  ;;  %5485 = vmatprep.subr.bf16.mxu1 %v5531_v42  ;;  %v5569_v8 = vld [vmem:[%s7459_s0 + $0x364] ss:$72 sps:$4 sm:$0xff]   ;;  %v5572_v12 = vld [vmem:[%s7459_s0 + $0x360] ss:$72 sps:$4 sm:$0xff]   ;;  %v5581_v18 = vld [vmem:[%s7459_s0 + $0x1b4] ss:$72 sps:$4 sm:$0xff]  }
  0xed   : > { %v5566_v9 = vld [vmem:[%s6566_s11 + $0x120] sm:$0xff]   ;;  %v5583_v20 = vld [vmem:[%s7459_s0 + $0x3f4] ss:$72 sps:$4 sm:$0xff]   ;;  %v5587_v22 = vld [vmem:[%s6566_s11 + $0xc8] sm:$0xff]  }
  0xee   : > { %v5580_v21 = vld [vmem:[%s6566_s11 + $0x110] sm:$0xff]   ;;  %v5588_v25 = vld [vmem:[%s6566_s11 + $0x148] sm:$0xff]   ;;  %v5591_v28 = vld [vmem:[%s6566_s11 + $0xc0] sm:$0xff]  }
  0xef   : > { %4914 = vmatpush3.bf16.msra.mxu0 %v5532_v43  ;;  %5493 = vmatpush3.bf16.msra.mxu1 %v5532_v43  ;;  %v5585_v23 = vld [vmem:[%s7459_s0 + $0x1b0] ss:$72 sps:$4 sm:$0xff]   ;;  %v5589_v26 = vld [vmem:[%s6566_s11 + $0x88] sm:$0xff]   ;;  %v5592_v29 = vld [vmem:[%s6566_s11 + $0x140] sm:$0xff]  }
  0xf0   : > { %4915 = vmatprep.subr.bf16.mxu0 %v5533_v44  ;;  %5486 = vmatprep.subr.bf16.mxu1 %v5533_v44  ;;  %v5586_v24 = vld [vmem:[%s7459_s0 + $0x3f0] ss:$72 sps:$4 sm:$0xff]   ;;  %v5590_v27 = vld [vmem:[%s6566_s11 + $0x108] sm:$0xff]   ;;  %v5593_v31 = vld [vmem:[%s6566_s11 + $0x80] sm:$0xff]  }
  0xf1   : > { %v5597_v30 = vld [vmem:[%s7459_s0 + $0xc] ss:$72 sps:$4 sm:$0xff]   ;;  %v5594_v33 = vld [vmem:[%s6566_s11 + $0x100] sm:$0xff]   ;;  %v5601_v34 = vld [vmem:[%s6566_s11 + $0x1f8] sm:$0xff]  }
  0xf2   : > { %v5600_v32 = vld [vmem:[%s7459_s0 + $0x14] ss:$72 sps:$4 sm:$0xff]   ;;  %v5595_v35 = vld [vmem:[%s7459_s0 + $0x8] ss:$72 sps:$4 sm:$0xff]   ;;  %v5607_v41 = vld [vmem:[%s7459_s0 + $0xa4] ss:$72 sps:$4 sm:$0xff]  }
  0xf3   : > { %4916 = vmatpush3.bf16.msra.mxu0 %v5534_v45  ;;  %5494 = vmatpush3.bf16.msra.mxu1 %v5534_v45  ;;  %v5603_v36 = vld [vmem:[%s6566_s11 + $0x278] sm:$0xff]   ;;  %v5611_v42 = vld [vmem:[%s6566_s11 + $0x1f0] sm:$0xff]  }
  0xf4   : > { %4917 = vmatprep.subr.bf16.mxu0 %v5535_v46  ;;  %5487 = vmatprep.subr.bf16.mxu1 %v5535_v46  ;;  %v5598_v37 = vld [vmem:[%s7459_s0 + $0x10] ss:$72 sps:$4 sm:$0xff]   ;;  %v5605_v40 = vld [vmem:[%s7459_s0 + $0x9c] ss:$72 sps:$4 sm:$0xff]  }
  0xf5   : > { %v5602_v38 = vld [vmem:[%s6566_s11 + $0x1b8] sm:$0xff]   ;;  %v5612_v43 = vld [vmem:[%s6566_s11 + $0x1b0] sm:$0xff]  }
  0xf6   : > { %v5604_v39 = vld [vmem:[%s6566_s11 + $0x238] sm:$0xff]   ;;  %v5613_v44 = vld [vmem:[%s6566_s11 + $0x270] sm:$0xff]  }
  0xf7   : > { %4918 = vmatpush3.bf16.msra.mxu0 %v5536_v47  ;;  %5495 = vmatpush3.bf16.msra.mxu1 %v5536_v47  ;;  %v5614_v45 = vld [vmem:[%s6566_s11 + $0x230] sm:$0xff]   ;;  %v5609_v46 = vld [vmem:[%s7459_s0 + $0x98] ss:$72 sps:$4 sm:$0xff]  }
  0xf8   : > { %4919 = vmatprep.subr.bf16.mxu0 %v5537_v48  ;;  %5488 = vmatprep.subr.bf16.mxu1 %v5537_v48  ;;  %v5610_v47 = vld [vmem:[%s7459_s0 + $0xa0] ss:$72 sps:$4 sm:$0xff]   ;;  %v5615_v48 = vld [vmem:[%s7459_s0 + $0x12c] ss:$72 sps:$4 sm:$0xff]  }
  0xfb   : > { %4920 = vmatpush3.bf16.msra.mxu0 %v5538_v49  ;;  %5496 = vmatpush3.bf16.msra.mxu1 %v5538_v49  ;;  %v5617_v49 = vld [vmem:[%s7459_s0 + $0x134] ss:$72 sps:$4 sm:$0xff]  }
  0xfc   : > { %4969 = vmatprep.subr.bf16.mxu1 %v5545_v50  ;;  %5033 = vmatprep.subr.bf16.mxu0 %v5546_v53  ;;  %v5621_v50 = vld [vmem:[%s6566_s11 + $0x1e8] sm:$0xff]  }
  0xfd   : > { %v5624_v53 = vld [vmem:[%s6566_s11 + $0x228] sm:$0xff]  }
  0xfe   : > { %3461 = vmatmul.mubr.bf16.vlgmr.msra.gmra.mxu0 %v5539_v51  ;;  %3493 = vmatmul.mubr.bf16.vlgmr.msra.gmra.mxu1 %v5542_v52  ;;  %v5622_v51 = vld [vmem:[%s6566_s11 + $0x1a8] sm:$0xff]  }
  0xff   : > { %4970 = vmatpush3.bf16.msra.mxu1 %v5547_v54  ;;  %5034 = vmatpush3.bf16.msra.mxu0 %v5548_v55  ;;  %v5623_v52 = vld [vmem:[%s6566_s11 + $0x268] sm:$0xff]   ;;  %v5620_v55 = vld [vmem:[%s7459_s0 + $0x130] ss:$72 sps:$4 sm:$0xff]  }
 0x100   : > { %4971 = vmatprep.subr.bf16.mxu1 %v5549_v56  ;;  %5035 = vmatprep.subr.bf16.mxu0 %v5550_v58  ;;  %v5619_v54 = vld [vmem:[%s7459_s0 + $0x128] ss:$72 sps:$4 sm:$0xff]   ;;  %v5625_v56 = vld [vmem:[%s7459_s0 + $0x1bc] ss:$72 sps:$4 sm:$0xff]  }
 0x101   : > { %3468 = vmatprep.mubr.bf16.mxu0 %v5553_v57  ;;  %3500 = vmatprep.mubr.bf16.mxu1 %v5555_v59  ;;  %v5627_v57 = vld [vmem:[%s7459_s0 + $0x1c4] ss:$72 sps:$4 sm:$0xff]  }
 0x102   : > { %v5631_v58 = vld [vmem:[%s6566_s11 + $0x1e0] sm:$0xff]  }
 0x103   : > { %4972 = vmatpush3.bf16.msra.mxu1 %v5551_v60  ;;  %5036 = vmatpush3.bf16.msra.mxu0 %v5552_v61  ;;  %v5632_v59 = vld [vmem:[%s6566_s11 + $0x1a0] sm:$0xff]  }
 0x104   : > { %4973 = vmatprep.subr.bf16.mxu1 %v5559_v62  ;;  %5037 = vmatprep.subr.bf16.mxu0 %v5560_v1  ;;  %v5633_v60 = vld [vmem:[%s6566_s11 + $0x260] sm:$0xff]   ;;  %v5635_v1 = vld [vmem:[%s7459_s0 + $0x24c] ss:$72 sps:$4 sm:$0xff]  }
 0x105   : > { %v5634_v61 = vld [vmem:[%s6566_s11 + $0x220] sm:$0xff]  }
 0x106   : > { %3469 = vmatmul.mubr.bf16.gmra.mxu0 %v5557_v63  ;;  %3501 = vmatmul.mubr.bf16.gmra.mxu1 %v5558_v0  ;;  %v5629_v62 = vld [vmem:[%s7459_s0 + $0x1b8] ss:$72 sps:$4 sm:$0xff]  }
 0x107   : > { %4974 = vmatpush3.bf16.msra.mxu1 %v5561_v2  ;;  %5038 = vmatpush3.bf16.msra.mxu0 %v5562_v3  ;;  %v5630_v63 = vld [vmem:[%s7459_s0 + $0x1c0] ss:$72 sps:$4 sm:$0xff]   ;;  %v5641_v0 = vld [vmem:[%s6566_s11 + $0x1d8] sm:$0xff]  }
 0x108   : > { %4975 = vmatprep.subr.bf16.mxu1 %v5563_v4  ;;  %5039 = vmatprep.subr.bf16.mxu0 %v5564_v5  ;;  %v5637_v2 = vld [vmem:[%s7459_s0 + $0x254] ss:$72 sps:$4 sm:$0xff]  }
 0x109   : > { %3476 = vmatprep.mubr.bf16.mxu0 %v5567_v6  ;;  %3508 = vmatprep.mubr.bf16.mxu1 %v5569_v8  ;;  %v5642_v3 = vld [vmem:[%s6566_s11 + $0x198] sm:$0xff]   ;;  %v5651_v6 = vld [vmem:[%s6566_s11 + $0x1d0] sm:$0xff]  }
 0x10a   : > { %v5643_v4 = vld [vmem:[%s6566_s11 + $0x258] sm:$0xff]  }
 0x10b   : > { %4976 = vmatpush3.bf16.msra.mxu1 %v5565_v7  ;;  %5040 = vmatpush3.bf16.msra.mxu0 %v5566_v9  ;;  %v5644_v5 = vld [vmem:[%s6566_s11 + $0x218] sm:$0xff]   ;;  %v5639_v7 = vld [vmem:[%s7459_s0 + $0x248] ss:$72 sps:$4 sm:$0xff]  }
 0x10c   : > { %4977 = vmatprep.subr.bf16.mxu1 %v5573_v10  ;;  %5041 = vmatprep.subr.bf16.mxu0 %v5574_v13  ;;  %v5640_v8 = vld [vmem:[%s7459_s0 + $0x250] ss:$72 sps:$4 sm:$0xff]   ;;  %v5645_v10 = vld [vmem:[%s7459_s0 + $0x2dc] ss:$72 sps:$4 sm:$0xff]  }
 0x10d   : > { %v5652_v9 = vld [vmem:[%s6566_s11 + $0x190] sm:$0xff]   ;;  %v5647_v13 = vld [vmem:[%s7459_s0 + $0x2e4] ss:$72 sps:$4 sm:$0xff]  }
 0x10e   : > { %3477 = vmatmul.mubr.bf16.gmra.mxu0 %v5571_v11  ;;  %3509 = vmatmul.mubr.bf16.gmra.mxu1 %v5572_v12  ;;  %v5653_v11 = vld [vmem:[%s6566_s11 + $0x250] sm:$0xff]  }
 0x10f   : > { %4978 = vmatpush3.bf16.msra.mxu1 %v5575_v14  ;;  %5042 = vmatpush3.bf16.msra.mxu0 %v5576_v15  ;;  %v5654_v12 = vld [vmem:[%s6566_s11 + $0x210] sm:$0xff]   ;;  %v5661_v14 = vld [vmem:[%s6566_s11 + $0x1c8] sm:$0xff]  }
 0x110   : > { %4979 = vmatprep.subr.bf16.mxu1 %v5577_v16  ;;  %5043 = vmatprep.subr.bf16.mxu0 %v5578_v17  ;;  %v5662_v15 = vld [vmem:[%s6566_s11 + $0x188] sm:$0xff]   ;;  %v5649_v16 = vld [vmem:[%s7459_s0 + $0x2d8] ss:$72 sps:$4 sm:$0xff]  }
 0x111   : > { %3484 = vmatprep.mubr.bf16.mxu0 %v5581_v18  ;;  %3516 = vmatprep.mubr.bf16.mxu1 %v5583_v20  ;;  %v5663_v17 = vld [vmem:[%s6566_s11 + $0x248] sm:$0xff]  }
 0x112   : > { %v5664_v18 = vld [vmem:[%s6566_s11 + $0x208] sm:$0xff]  }
 0x113   : > { %4980 = vmatpush3.bf16.msra.mxu1 %v5579_v19  ;;  %5044 = vmatpush3.bf16.msra.mxu0 %v5580_v21  ;;  %v5650_v19 = vld [vmem:[%s7459_s0 + $0x2e0] ss:$72 sps:$4 sm:$0xff]   ;;  %v5655_v20 = vld [vmem:[%s7459_s0 + $0x36c] ss:$72 sps:$4 sm:$0xff]  }
 0x114   : > { %4981 = vmatprep.subr.bf16.mxu1 %v5587_v22  ;;  %5045 = vmatprep.subr.bf16.mxu0 %v5588_v25  ;;  %v5657_v21 = vld [vmem:[%s7459_s0 + $0x374] ss:$72 sps:$4 sm:$0xff]   ;;  %v5671_v22 = vld [vmem:[%s6566_s11 + $0x1c0] sm:$0xff]  }
 0x115   : > { %v5674_v25 = vld [vmem:[%s6566_s11 + $0x200] sm:$0xff]  }
 0x116   : > { %3485 = vmatmul.mubr.bf16.gmra.mxu0 %v5585_v23  ;;  %3517 = vmatmul.mubr.bf16.gmra.mxu1 %v5586_v24  ;;  %v5672_v23 = vld [vmem:[%s6566_s11 + $0x180] sm:$0xff]  }
 0x117   : > { %4982 = vmatpush3.bf16.msra.mxu1 %v5589_v26  ;;  %5046 = vmatpush3.bf16.msra.mxu0 %v5590_v27  ;;  %v5673_v24 = vld [vmem:[%s6566_s11 + $0x240] sm:$0xff]   ;;  %v5659_v26 = vld [vmem:[%s7459_s0 + $0x368] ss:$72 sps:$4 sm:$0xff]  }
 0x118   : > { %4983 = vmatprep.subr.bf16.mxu1 %v5591_v28  ;;  %5047 = vmatprep.subr.bf16.mxu0 %v5592_v29  ;;  %v5660_v27 = vld [vmem:[%s7459_s0 + $0x370] ss:$72 sps:$4 sm:$0xff]   ;;  %v5665_v28 = vld [vmem:[%s7459_s0 + $0x3fc] ss:$72 sps:$4 sm:$0xff]  }
 0x119   : > { %3557 = vmatprep.mubr.bf16.mxu1 %v5597_v30  ;;  %3654 = vmatprep.mubr.bf16.mxu0 %v5600_v32  ;;  %v5667_v29 = vld [vmem:[%s7459_s0 + $0x404] ss:$72 sps:$4 sm:$0xff]   ;;  %v5681_v30 = vld [vmem:[%s6566_s11 + $0x2f8] sm:$0xff]  }
 0x11a   : > { %v5669_v32 = vld [vmem:[%s7459_s0 + $0x3f8] ss:$72 sps:$4 sm:$0xff]  }
 0x11b   : > { %4984 = vmatpush3.bf16.msra.mxu1 %v5593_v31  ;;  %5048 = vmatpush3.bf16.msra.mxu0 %v5594_v33  ;;  %v5683_v31 = vld [vmem:[%s6566_s11 + $0x378] sm:$0xff]   ;;  %v5670_v33 = vld [vmem:[%s7459_s0 + $0x400] ss:$72 sps:$4 sm:$0xff]  }
 0x11c   : > { %5097 = vmatprep.subr.bf16.mxu1 %v5601_v34  ;;  %5161 = vmatprep.subr.bf16.mxu0 %v5603_v36  ;;  %v5677_v34 = vld [vmem:[%s7459_s0 + $0x1c] ss:$72 sps:$4 sm:$0xff]   ;;  %v5675_v36 = vld [vmem:[%s7459_s0 + $0x18] ss:$72 sps:$4 sm:$0xff]  }
 0x11e   : > { %3558 = vmatmul.mubr.bf16.vlgmr.msra.gmra.mxu1 %v5595_v35  ;;  %3655 = vmatmul.mubr.bf16.vlgmr.msra.gmra.mxu0 %v5598_v37  ;;  %v5680_v35 = vld [vmem:[%s7459_s0 + $0x24] ss:$72 sps:$4 sm:$0xff]   ;;  %v5678_v37 = vld [vmem:[%s7459_s0 + $0x20] ss:$72 sps:$4 sm:$0xff]  }
 0x11f   : > { %5098 = vmatpush3.bf16.msra.mxu1 %v5602_v38  ;;  %5162 = vmatpush3.bf16.msra.mxu0 %v5604_v39  ;;  %v5682_v38 = vld [vmem:[%s6566_s11 + $0x2b8] sm:$0xff]  }
 0x120   : > { %3565 = vmatprep.mubr.bf16.mxu1 %v5605_v40  ;;  %3662 = vmatprep.mubr.bf16.mxu0 %v5607_v41  ;;  %v5684_v39 = vld [vmem:[%s6566_s11 + $0x338] sm:$0xff]   ;;  %v5685_v40 = vld [vmem:[%s7459_s0 + $0xac] ss:$72 sps:$4 sm:$0xff]  }
 0x121   : > { %5099 = vmatprep.subr.bf16.mxu1 %v5611_v42  ;;  %5163 = vmatprep.subr.bf16.mxu0 %v5613_v44  ;;  %v5687_v41 = vld [vmem:[%s7459_s0 + $0xb4] ss:$72 sps:$4 sm:$0xff]  }
 0x122   : > { %v5691_v42 = vld [vmem:[%s6566_s11 + $0x2f0] sm:$0xff]  }
 0x123   : > { %5100 = vmatpush3.bf16.msra.mxu1 %v5612_v43  ;;  %5164 = vmatpush3.bf16.msra.mxu0 %v5614_v45  ;;  %v5693_v43 = vld [vmem:[%s6566_s11 + $0x370] sm:$0xff]  }
 0x124   : > { %5101 = vmatprep.subr.bf16.mxu1 %v5621_v50  ;;  %5165 = vmatprep.subr.bf16.mxu0 %v5623_v52  ;;  %v5692_v44 = vld [vmem:[%s6566_s11 + $0x2b0] sm:$0xff]   ;;  %v5695_v50 = vld [vmem:[%s7459_s0 + $0x13c] ss:$72 sps:$4 sm:$0xff]   ;;  %v5702_v52 = vld [vmem:[%s6566_s11 + $0x2a8] sm:$0xff]  }
 0x125   : > { %v5694_v45 = vld [vmem:[%s6566_s11 + $0x330] sm:$0xff]  }
 0x126   : > { %3566 = vmatmul.mubr.bf16.gmra.mxu1 %v5609_v46  ;;  %3663 = vmatmul.mubr.bf16.gmra.mxu0 %v5610_v47  ;;  %v5701_v46 = vld [vmem:[%s6566_s11 + $0x2e8] sm:$0xff]  }
 0x127   : > { %3573 = vmatprep.mubr.bf16.mxu1 %v5615_v48  ;;  %3670 = vmatprep.mubr.bf16.mxu0 %v5617_v49  ;;  %v5689_v47 = vld [vmem:[%s7459_s0 + $0xa8] ss:$72 sps:$4 sm:$0xff]  }
 0x128   : > { %5102 = vmatpush3.bf16.msra.mxu1 %v5622_v51  ;;  %5166 = vmatpush3.bf16.msra.mxu0 %v5624_v53  ;;  %v5690_v48 = vld [vmem:[%s7459_s0 + $0xb0] ss:$72 sps:$4 sm:$0xff]   ;;  %v5703_v49 = vld [vmem:[%s6566_s11 + $0x368] sm:$0xff]  }
 0x129   : > { %5103 = vmatprep.subr.bf16.mxu1 %v5631_v58  ;;  %5167 = vmatprep.subr.bf16.mxu0 %v5633_v60  ;;  %v5697_v51 = vld [vmem:[%s7459_s0 + $0x144] ss:$72 sps:$4 sm:$0xff]   ;;  %v5699_v58 = vld [vmem:[%s7459_s0 + $0x138] ss:$72 sps:$4 sm:$0xff]  }
 0x12a   : > { %v5704_v53 = vld [vmem:[%s6566_s11 + $0x328] sm:$0xff]   ;;  %v5723_v60 = vld [vmem:[%s6566_s11 + $0x358] sm:$0xff]  }
 0x12c   : > { %5104 = vmatpush3.bf16.msra.mxu1 %v5632_v59  ;;  %5168 = vmatpush3.bf16.msra.mxu0 %v5634_v61  ;;  %v5721_v59 = vld [vmem:[%s6566_s11 + $0x2d8] sm:$0xff]   ;;  %v5700_v61 = vld [vmem:[%s7459_s0 + $0x140] ss:$72 sps:$4 sm:$0xff]  }
 0x12d   : > { %5105 = vmatprep.subr.bf16.mxu1 %v5641_v0  ;;  %5169 = vmatprep.subr.bf16.mxu0 %v5643_v4  ;;  %v5722_v0 = vld [vmem:[%s6566_s11 + $0x298] sm:$0xff]   ;;  %v5732_v4 = vld [vmem:[%s6566_s11 + $0x290] sm:$0xff]  }
 0x12e   : > { %3574 = vmatmul.mubr.bf16.gmra.mxu1 %v5619_v54  ;;  %3671 = vmatmul.mubr.bf16.gmra.mxu0 %v5620_v55  ;;  %v5711_v54 = vld [vmem:[%s6566_s11 + $0x2e0] sm:$0xff]  }
 0x12f   : > { %3581 = vmatprep.mubr.bf16.mxu1 %v5625_v56  ;;  %3678 = vmatprep.mubr.bf16.mxu0 %v5627_v57  ;;  %v5713_v55 = vld [vmem:[%s6566_s11 + $0x360] sm:$0xff]  }
 0x130   : > { %5106 = vmatpush3.bf16.msra.mxu1 %v5642_v3  ;;  %5170 = vmatpush3.bf16.msra.mxu0 %v5644_v5  ;;  %v5712_v56 = vld [vmem:[%s6566_s11 + $0x2a0] sm:$0xff]   ;;  %v5733_v3 = vld [vmem:[%s6566_s11 + $0x350] sm:$0xff]  }
 0x131   : > { %5107 = vmatprep.subr.bf16.mxu1 %v5651_v6  ;;  %5171 = vmatprep.subr.bf16.mxu0 %v5653_v11  ;;  %v5714_v57 = vld [vmem:[%s6566_s11 + $0x320] sm:$0xff]   ;;  %v5709_v5 = vld [vmem:[%s7459_s0 + $0x1c8] ss:$72 sps:$4 sm:$0xff]  }
 0x132   : > { %v5734_v6 = vld [vmem:[%s6566_s11 + $0x310] sm:$0xff]   ;;  %v5742_v11 = vld [vmem:[%s6566_s11 + $0x288] sm:$0xff]  }
 0x134   : > { %5108 = vmatpush3.bf16.msra.mxu1 %v5652_v9  ;;  %5172 = vmatpush3.bf16.msra.mxu0 %v5654_v12  ;;  %v5717_v9 = vld [vmem:[%s7459_s0 + $0x264] ss:$72 sps:$4 sm:$0xff]  }
 0x135   : > { %5109 = vmatprep.subr.bf16.mxu1 %v5661_v14  ;;  %5173 = vmatprep.subr.bf16.mxu0 %v5663_v17  ;;  %v5743_v12 = vld [vmem:[%s6566_s11 + $0x348] sm:$0xff]   ;;  %v5719_v14 = vld [vmem:[%s7459_s0 + $0x258] ss:$72 sps:$4 sm:$0xff]   ;;  %v5727_v17 = vld [vmem:[%s7459_s0 + $0x2f4] ss:$72 sps:$4 sm:$0xff]  }
 0x136   : > { %3582 = vmatmul.mubr.bf16.gmra.mxu1 %v5629_v62  ;;  %3679 = vmatmul.mubr.bf16.gmra.mxu0 %v5630_v63  ;;  %v5705_v62 = vld [vmem:[%s7459_s0 + $0x1cc] ss:$72 sps:$4 sm:$0xff]  }
 0x137   : > { %3589 = vmatprep.mubr.bf16.mxu1 %v5635_v1  ;;  %3686 = vmatprep.mubr.bf16.mxu0 %v5637_v2  ;;  %v5707_v63 = vld [vmem:[%s7459_s0 + $0x1d4] ss:$72 sps:$4 sm:$0xff]  }
 0x138   : > { %5110 = vmatpush3.bf16.msra.mxu1 %v5662_v15  ;;  %5174 = vmatpush3.bf16.msra.mxu0 %v5664_v18  ;;  %v5724_v1 = vld [vmem:[%s6566_s11 + $0x318] sm:$0xff]   ;;  %v5731_v2 = vld [vmem:[%s6566_s11 + $0x2d0] sm:$0xff]   ;;  %v5720_v15 = vld [vmem:[%s7459_s0 + $0x260] ss:$72 sps:$4 sm:$0xff]  }
 0x139   : > { %5111 = vmatprep.subr.bf16.mxu1 %v5671_v22  ;;  %5175 = vmatprep.subr.bf16.mxu0 %v5673_v24  ;;  %v5751_v18 = vld [vmem:[%s6566_s11 + $0x2c0] sm:$0xff]   ;;  %v5729_v22 = vld [vmem:[%s7459_s0 + $0x2e8] ss:$72 sps:$4 sm:$0xff]   ;;  %v5761_v24 = vld [vmem:[%s6566_s11 + $0x3f8] sm:$0xff]  }
 0x13c   : > { %5112 = vmatpush3.bf16.msra.mxu1 %v5672_v23  ;;  %5176 = vmatpush3.bf16.msra.mxu0 %v5674_v25  ;;  %v5730_v23 = vld [vmem:[%s7459_s0 + $0x2f0] ss:$72 sps:$4 sm:$0xff]   ;;  %v5735_v25 = vld [vmem:[%s7459_s0 + $0x37c] ss:$72 sps:$4 sm:$0xff]  }
 0x13d   : > { %5225 = vmatprep.subr.bf16.mxu1 %v5681_v30  ;;  %5289 = vmatprep.subr.bf16.mxu0 %v5683_v31  ;;  %v5745_v30 = vld [vmem:[%s7459_s0 + $0x40c] ss:$72 sps:$4 sm:$0xff]  }
 0x13e   : > { %3590 = vmatmul.mubr.bf16.gmra.mxu1 %v5639_v7  ;;  %3687 = vmatmul.mubr.bf16.gmra.mxu0 %v5640_v8  ;;  %v5710_v7 = vld [vmem:[%s7459_s0 + $0x1d0] ss:$72 sps:$4 sm:$0xff]   ;;  %v5715_v8 = vld [vmem:[%s7459_s0 + $0x25c] ss:$72 sps:$4 sm:$0xff]  }
 0x13f   : > { %3597 = vmatprep.mubr.bf16.mxu1 %v5645_v10  ;;  %3694 = vmatprep.mubr.bf16.mxu0 %v5647_v13  ;;  %v5741_v10 = vld [vmem:[%s6566_s11 + $0x2c8] sm:$0xff]   ;;  %v5747_v31 = vld [vmem:[%s7459_s0 + $0x414] ss:$72 sps:$4 sm:$0xff]  }
 0x140   : > { %v5744_v13 = vld [vmem:[%s6566_s11 + $0x308] sm:$0xff]  }
 0x146   : > { %3598 = vmatmul.mubr.bf16.gmra.mxu1 %v5649_v16  ;;  %3695 = vmatmul.mubr.bf16.gmra.mxu0 %v5650_v19  ;;  %v5725_v16 = vld [vmem:[%s7459_s0 + $0x2ec] ss:$72 sps:$4 sm:$0xff]   ;;  %v5752_v19 = vld [vmem:[%s6566_s11 + $0x280] sm:$0xff]  }
 0x147   : > { %3605 = vmatprep.mubr.bf16.mxu1 %v5655_v20  ;;  %3702 = vmatprep.mubr.bf16.mxu0 %v5657_v21  ;;  %v5753_v20 = vld [vmem:[%s6566_s11 + $0x340] sm:$0xff]  }
 0x148   : > { %v5754_v21 = vld [vmem:[%s6566_s11 + $0x300] sm:$0xff]  }
 0x14e   : > { %3606 = vmatmul.mubr.bf16.gmra.mxu1 %v5659_v26  ;;  %3703 = vmatmul.mubr.bf16.gmra.mxu0 %v5660_v27  ;;  %v5763_v26 = vld [vmem:[%s6566_s11 + $0x478] sm:$0xff]   ;;  %v5737_v27 = vld [vmem:[%s7459_s0 + $0x384] ss:$72 sps:$4 sm:$0xff]  }
 0x14f   : > { %3613 = vmatprep.mubr.bf16.mxu1 %v5665_v28  ;;  %3710 = vmatprep.mubr.bf16.mxu0 %v5667_v29  ;;  %v5739_v28 = vld [vmem:[%s7459_s0 + $0x378] ss:$72 sps:$4 sm:$0xff]  }
 0x150   : > { %v5740_v29 = vld [vmem:[%s7459_s0 + $0x380] ss:$72 sps:$4 sm:$0xff]  }
 0x156   : > { %3614 = vmatmul.mubr.bf16.gmra.mxu1 %v5669_v32  ;;  %3711 = vmatmul.mubr.bf16.gmra.mxu0 %v5670_v33  ;;  %v5749_v32 = vld [vmem:[%s7459_s0 + $0x408] ss:$72 sps:$4 sm:$0xff]  }
 0x157   : > { %3751 = vmatprep.mubr.bf16.mxu1 %v5677_v34  ;;  %3848 = vmatprep.mubr.bf16.mxu0 %v5680_v35  ;;  %v5750_v33 = vld [vmem:[%s7459_s0 + $0x410] ss:$72 sps:$4 sm:$0xff]   ;;  %v5757_v34 = vld [vmem:[%s7459_s0 + $0x2c] ss:$72 sps:$4 sm:$0xff]  }
 0x158   : > { %v5760_v35 = vld [vmem:[%s7459_s0 + $0x34] ss:$72 sps:$4 sm:$0xff]  }
 0x15e   : > { %3752 = vmatmul.mubr.bf16.vlgmr.msra.gmra.mxu1 %v5675_v36  ;;  %3849 = vmatmul.mubr.bf16.vlgmr.msra.gmra.mxu0 %v5678_v37  ;;  %v5755_v36 = vld [vmem:[%s7459_s0 + $0x28] ss:$72 sps:$4 sm:$0xff]  }
 0x15f   : > { %5226 = vmatpush3.bf16.msra.mxu1 %v5682_v38  ;;  %5290 = vmatpush3.bf16.msra.mxu0 %v5684_v39  ;;  %v5758_v37 = vld [vmem:[%s7459_s0 + $0x30] ss:$72 sps:$4 sm:$0xff]  }
 0x160   : > { %3759 = vmatprep.mubr.bf16.mxu1 %v5685_v40  ;;  %3856 = vmatprep.mubr.bf16.mxu0 %v5687_v41  ;;  %v5762_v38 = vld [vmem:[%s6566_s11 + $0x3b8] sm:$0xff]   ;;  %v5767_v41 = vld [vmem:[%s7459_s0 + $0xc4] ss:$72 sps:$4 sm:$0xff]  }
 0x161   : > { %5227 = vmatprep.subr.bf16.mxu1 %v5691_v42  ;;  %5291 = vmatprep.subr.bf16.mxu0 %v5693_v43  ;;  %v5764_v39 = vld [vmem:[%s6566_s11 + $0x438] sm:$0xff]   ;;  %v5771_v42 = vld [vmem:[%s6566_s11 + $0x3f0] sm:$0xff]  }
 0x162   : > { %v5765_v40 = vld [vmem:[%s7459_s0 + $0xbc] ss:$72 sps:$4 sm:$0xff]   ;;  %v5773_v43 = vld [vmem:[%s6566_s11 + $0x470] sm:$0xff]  }
 0x163   : > { %5228 = vmatpush3.bf16.msra.mxu1 %v5692_v44  ;;  %5292 = vmatpush3.bf16.msra.mxu0 %v5694_v45  ;;  %v5772_v44 = vld [vmem:[%s6566_s11 + $0x3b0] sm:$0xff]  }
 0x164   : > { %5229 = vmatprep.subr.bf16.mxu1 %v5701_v46  ;;  %5293 = vmatprep.subr.bf16.mxu0 %v5703_v49  ;;  %v5774_v45 = vld [vmem:[%s6566_s11 + $0x430] sm:$0xff]   ;;  %v5769_v46 = vld [vmem:[%s7459_s0 + $0xb8] ss:$72 sps:$4 sm:$0xff]   ;;  %v5783_v49 = vld [vmem:[%s6566_s11 + $0x468] sm:$0xff]  }
 0x166   : > { %3760 = vmatmul.mubr.bf16.gmra.mxu1 %v5689_v47  ;;  %3857 = vmatmul.mubr.bf16.gmra.mxu0 %v5690_v48  ;;  %v5770_v47 = vld [vmem:[%s7459_s0 + $0xc0] ss:$72 sps:$4 sm:$0xff]  }
 0x167   : > { %3767 = vmatprep.mubr.bf16.mxu1 %v5695_v50  ;;  %3864 = vmatprep.mubr.bf16.mxu0 %v5697_v51  ;;  %v5781_v48 = vld [vmem:[%s6566_s11 + $0x3e8] sm:$0xff]   ;;  %v5777_v51 = vld [vmem:[%s7459_s0 + $0x154] ss:$72 sps:$4 sm:$0xff]  }
 0x168   : > { %5230 = vmatpush3.bf16.msra.mxu1 %v5702_v52  ;;  %5294 = vmatpush3.bf16.msra.mxu0 %v5704_v53  ;;  %v5775_v50 = vld [vmem:[%s7459_s0 + $0x14c] ss:$72 sps:$4 sm:$0xff]  }
 0x169   : > { %5231 = vmatprep.subr.bf16.mxu1 %v5711_v54  ;;  %5295 = vmatprep.subr.bf16.mxu0 %v5713_v55  ;;  %v5782_v52 = vld [vmem:[%s6566_s11 + $0x3a8] sm:$0xff]   ;;  %v5791_v54 = vld [vmem:[%s6566_s11 + $0x3e0] sm:$0xff]  }
 0x16a   : > { %v5784_v53 = vld [vmem:[%s6566_s11 + $0x428] sm:$0xff]   ;;  %v5793_v55 = vld [vmem:[%s6566_s11 + $0x460] sm:$0xff]  }
 0x16c   : > { %5232 = vmatpush3.bf16.msra.mxu1 %v5712_v56  ;;  %5296 = vmatpush3.bf16.msra.mxu0 %v5714_v57  ;;  %v5792_v56 = vld [vmem:[%s6566_s11 + $0x3a0] sm:$0xff]  }
 0x16d   : > { %5233 = vmatprep.subr.bf16.mxu1 %v5721_v59  ;;  %5297 = vmatprep.subr.bf16.mxu0 %v5723_v60  ;;  %v5794_v57 = vld [vmem:[%s6566_s11 + $0x420] sm:$0xff]   ;;  %v5780_v59 = vld [vmem:[%s7459_s0 + $0x150] ss:$72 sps:$4 sm:$0xff]  }
 0x16e   : > { %3768 = vmatmul.mubr.bf16.gmra.mxu1 %v5699_v58  ;;  %3865 = vmatmul.mubr.bf16.gmra.mxu0 %v5700_v61  ;;  %v5779_v58 = vld [vmem:[%s7459_s0 + $0x148] ss:$72 sps:$4 sm:$0xff]   ;;  %v5801_v60 = vld [vmem:[%s6566_s11 + $0x3d8] sm:$0xff]  }
 0x16f   : > { %3775 = vmatprep.mubr.bf16.mxu1 %v5705_v62  ;;  %3872 = vmatprep.mubr.bf16.mxu0 %v5707_v63  ;;  %v5785_v61 = vld [vmem:[%s7459_s0 + $0x1dc] ss:$72 sps:$4 sm:$0xff]  }
 0x170   : > { %5234 = vmatpush3.bf16.msra.mxu1 %v5722_v0  ;;  %5298 = vmatpush3.bf16.msra.mxu0 %v5724_v1  ;;  %v5787_v62 = vld [vmem:[%s7459_s0 + $0x1e4] ss:$72 sps:$4 sm:$0xff]   ;;  %v5803_v63 = vld [vmem:[%s6566_s11 + $0x458] sm:$0xff]  }
 0x171   : > { %5235 = vmatprep.subr.bf16.mxu1 %v5731_v2  ;;  %5299 = vmatprep.subr.bf16.mxu0 %v5733_v3  ;;  %v5802_v0 = vld [vmem:[%s6566_s11 + $0x398] sm:$0xff]   ;;  %v5811_v2 = vld [vmem:[%s6566_s11 + $0x3d0] sm:$0xff]  }
 0x172   : > { %v5804_v1 = vld [vmem:[%s6566_s11 + $0x418] sm:$0xff]   ;;  %v5813_v3 = vld [vmem:[%s6566_s11 + $0x450] sm:$0xff]  }
 0x174   : > { %5236 = vmatpush3.bf16.msra.mxu1 %v5732_v4  ;;  %5300 = vmatpush3.bf16.msra.mxu0 %v5734_v6  ;;  %v5812_v4 = vld [vmem:[%s6566_s11 + $0x390] sm:$0xff]   ;;  %v5789_v6 = vld [vmem:[%s7459_s0 + $0x1d8] ss:$72 sps:$4 sm:$0xff]  }
 0x175   : > { %5237 = vmatprep.subr.bf16.mxu1 %v5741_v10  ;;  %5301 = vmatprep.subr.bf16.mxu0 %v5743_v12  ;;  %v5823_v10 = vld [vmem:[%s6566_s11 + $0x448] sm:$0xff]  }
 0x176   : > { %3776 = vmatmul.mubr.bf16.gmra.mxu1 %v5709_v5  ;;  %3873 = vmatmul.mubr.bf16.gmra.mxu0 %v5710_v7  ;;  %v5814_v5 = vld [vmem:[%s6566_s11 + $0x410] sm:$0xff]   ;;  %v5790_v7 = vld [vmem:[%s7459_s0 + $0x1e0] ss:$72 sps:$4 sm:$0xff]  }
 0x177   : > { %3783 = vmatprep.mubr.bf16.mxu1 %v5715_v8  ;;  %3880 = vmatprep.mubr.bf16.mxu0 %v5717_v9  ;;  %v5821_v8 = vld [vmem:[%s6566_s11 + $0x3c8] sm:$0xff]  }
 0x178   : > { %5238 = vmatpush3.bf16.msra.mxu1 %v5742_v11  ;;  %5302 = vmatpush3.bf16.msra.mxu0 %v5744_v13  ;;  %v5795_v9 = vld [vmem:[%s7459_s0 + $0x26c] ss:$72 sps:$4 sm:$0xff]  }
 0x179   : > { %5239 = vmatprep.subr.bf16.mxu1 %v5751_v18  ;;  %5303 = vmatprep.subr.bf16.mxu0 %v5753_v20  ;;  %v5797_v11 = vld [vmem:[%s7459_s0 + $0x274] ss:$72 sps:$4 sm:$0xff]   ;;  %v5822_v12 = vld [vmem:[%s6566_s11 + $0x388] sm:$0xff]  }
 0x17a   : > { %v5824_v13 = vld [vmem:[%s6566_s11 + $0x408] sm:$0xff]   ;;  %v5805_v20 = vld [vmem:[%s7459_s0 + $0x2fc] ss:$72 sps:$4 sm:$0xff]  }
 0x17b   : > { %v5799_v18 = vld [vmem:[%s7459_s0 + $0x268] ss:$72 sps:$4 sm:$0xff]  }
 0x17c   : > { %5240 = vmatpush3.bf16.msra.mxu1 %v5752_v19  ;;  %5304 = vmatpush3.bf16.msra.mxu0 %v5754_v21  ;;  %v5800_v19 = vld [vmem:[%s7459_s0 + $0x270] ss:$72 sps:$4 sm:$0xff]   ;;  %v5807_v21 = vld [vmem:[%s7459_s0 + $0x304] ss:$72 sps:$4 sm:$0xff]  }
 0x17d   : > { %5353 = vmatprep.subr.bf16.mxu1 %v5761_v24  ;;  %5417 = vmatprep.subr.bf16.mxu0 %v5763_v26 }
 0x17e   : > { %3784 = vmatmul.mubr.bf16.gmra.mxu1 %v5719_v14  ;;  %3881 = vmatmul.mubr.bf16.gmra.mxu0 %v5720_v15  ;;  %v5831_v14 = vld [vmem:[%s6566_s11 + $0x3c0] sm:$0xff]  }
 0x17f   : > { %3791 = vmatprep.mubr.bf16.mxu1 %v5725_v16  ;;  %3888 = vmatprep.mubr.bf16.mxu0 %v5727_v17  ;;  %v5833_v15 = vld [vmem:[%s6566_s11 + $0x440] sm:$0xff]  }
 0x180   : > { %v5832_v16 = vld [vmem:[%s6566_s11 + $0x380] sm:$0xff]  }
 0x181   : > { %v5834_v17 = vld [vmem:[%s6566_s11 + $0x400] sm:$0xff]  }
 0x186   : > { %3792 = vmatmul.mubr.bf16.gmra.mxu1 %v5729_v22  ;;  %3889 = vmatmul.mubr.bf16.gmra.mxu0 %v5730_v23 }
 0x187   : > { %3799 = vmatprep.mubr.bf16.mxu1 %v5735_v25  ;;  %3896 = vmatprep.mubr.bf16.mxu0 %v5737_v27 }
 0x18e   : > { %3800 = vmatmul.mubr.bf16.gmra.mxu1 %v5739_v28  ;;  %3897 = vmatmul.mubr.bf16.gmra.mxu0 %v5740_v29 }
 0x18f   : > { %3807 = vmatprep.mubr.bf16.mxu1 %v5745_v30  ;;  %3904 = vmatprep.mubr.bf16.mxu0 %v5747_v31  ;;  %v5809_v30 = vld [vmem:[%s7459_s0 + $0x2f8] ss:$72 sps:$4 sm:$0xff]  }
 0x190   : > { %v5810_v31 = vld [vmem:[%s7459_s0 + $0x300] ss:$72 sps:$4 sm:$0xff]  }
 0x196   : > { %3808 = vmatmul.mubr.bf16.gmra.mxu1 %v5749_v32  ;;  %3905 = vmatmul.mubr.bf16.gmra.mxu0 %v5750_v33  ;;  %v5815_v32 = vld [vmem:[%s7459_s0 + $0x38c] ss:$72 sps:$4 sm:$0xff]  }
 0x197   : > { %3945 = vmatprep.mubr.bf16.mxu1 %v5757_v34  ;;  %4042 = vmatprep.mubr.bf16.mxu0 %v5760_v35  ;;  %v5817_v33 = vld [vmem:[%s7459_s0 + $0x394] ss:$72 sps:$4 sm:$0xff]  }
 0x19e   : > { %3946 = vmatmul.mubr.bf16.vlgmr.msra.gmra.mxu1 %v5755_v36  ;;  %4043 = vmatmul.mubr.bf16.vlgmr.msra.gmra.mxu0 %v5758_v37 }
 0x19f   : > { %5354 = vmatpush3.bf16.msra.mxu1 %v5762_v38  ;;  %5418 = vmatpush3.bf16.msra.mxu0 %v5764_v39 }
 0x1a0   : > { %3953 = vmatprep.mubr.bf16.mxu1 %v5765_v40  ;;  %4050 = vmatprep.mubr.bf16.mxu0 %v5767_v41 }
 0x1a1   : > { %5355 = vmatprep.subr.bf16.mxu1 %v5771_v42  ;;  %5419 = vmatprep.subr.bf16.mxu0 %v5773_v43 }
 0x1a3   : > { %5356 = vmatpush3.bf16.msra.mxu1 %v5772_v44  ;;  %5420 = vmatpush3.bf16.msra.mxu0 %v5774_v45 }
 0x1a4   : > { %5357 = vmatprep.subr.bf16.mxu1 %v5781_v48  ;;  %5421 = vmatprep.subr.bf16.mxu0 %v5783_v49  ;;  %v5825_v48 = vld [vmem:[%s7459_s0 + $0x41c] ss:$72 sps:$4 sm:$0xff]  }
 0x1a5   : > { %v5827_v49 = vld [vmem:[%s7459_s0 + $0x424] ss:$72 sps:$4 sm:$0xff]  }
 0x1a6   : > { %3954 = vmatmul.mubr.bf16.gmra.mxu1 %v5769_v46  ;;  %4051 = vmatmul.mubr.bf16.gmra.mxu0 %v5770_v47  ;;  %v5819_v46 = vld [vmem:[%s7459_s0 + $0x388] ss:$72 sps:$4 sm:$0xff]  }
 0x1a7   : > { %3961 = vmatprep.mubr.bf16.mxu1 %v5775_v50  ;;  %4058 = vmatprep.mubr.bf16.mxu0 %v5777_v51  ;;  %v5820_v47 = vld [vmem:[%s7459_s0 + $0x390] ss:$72 sps:$4 sm:$0xff]  }
 0x1a8   : > { %5358 = vmatpush3.bf16.msra.mxu1 %v5782_v52  ;;  %5422 = vmatpush3.bf16.msra.mxu0 %v5784_v53 }
 0x1a9   : > { %5359 = vmatprep.subr.bf16.mxu1 %v5791_v54  ;;  %5423 = vmatprep.subr.bf16.mxu0 %v5793_v55 }
 0x1ac   : > { %5360 = vmatpush3.bf16.msra.mxu1 %v5792_v56  ;;  %5424 = vmatpush3.bf16.msra.mxu0 %v5794_v57 }
 0x1ad   : > { %5361 = vmatprep.subr.bf16.mxu1 %v5801_v60  ;;  %5425 = vmatprep.subr.bf16.mxu0 %v5803_v63  ;;  %v5830_v63 = vld [vmem:[%s7459_s0 + $0x420] ss:$72 sps:$4 sm:$0xff]  }
 0x1ae   : > { %3962 = vmatmul.mubr.bf16.gmra.mxu1 %v5779_v58  ;;  %4059 = vmatmul.mubr.bf16.gmra.mxu0 %v5780_v59 }
 0x1af   : > { %3969 = vmatprep.mubr.bf16.mxu1 %v5785_v61  ;;  %4066 = vmatprep.mubr.bf16.mxu0 %v5787_v62  ;;  %v5829_v62 = vld [vmem:[%s7459_s0 + $0x418] ss:$72 sps:$4 sm:$0xff]  }
 0x1b0   : > { %5362 = vmatpush3.bf16.msra.mxu1 %v5802_v0  ;;  %5426 = vmatpush3.bf16.msra.mxu0 %v5804_v1  ;;  %v5837_v0 = vld [vmem:[%s7459_s0 + $0x3c] ss:$72 sps:$4 sm:$0xff]  }
 0x1b1   : > { %5363 = vmatprep.subr.bf16.mxu1 %v5811_v2  ;;  %5427 = vmatprep.subr.bf16.mxu0 %v5813_v3  ;;  %v5840_v1 = vld [vmem:[%s7459_s0 + $0x44] ss:$72 sps:$4 sm:$0xff]  }
 0x1b4   : > { %5364 = vmatpush3.bf16.msra.mxu1 %v5812_v4  ;;  %5428 = vmatpush3.bf16.msra.mxu0 %v5814_v5 }
 0x1b5   : > { %5365 = vmatprep.subr.bf16.mxu1 %v5821_v8  ;;  %5429 = vmatprep.subr.bf16.mxu0 %v5823_v10 }
 0x1b6   : > { %3970 = vmatmul.mubr.bf16.gmra.mxu1 %v5789_v6  ;;  %4067 = vmatmul.mubr.bf16.gmra.mxu0 %v5790_v7 }
 0x1b7   : > { %3977 = vmatprep.mubr.bf16.mxu1 %v5795_v9  ;;  %4074 = vmatprep.mubr.bf16.mxu0 %v5797_v11 }
 0x1b8   : > { %5366 = vmatpush3.bf16.msra.mxu1 %v5822_v12  ;;  %5430 = vmatpush3.bf16.msra.mxu0 %v5824_v13 }
 0x1b9   : > { %5367 = vmatprep.subr.bf16.mxu1 %v5831_v14  ;;  %5431 = vmatprep.subr.bf16.mxu0 %v5833_v15  ;;  %v5835_v14 = vld [vmem:[%s7459_s0 + $0x38] ss:$72 sps:$4 sm:$0xff]  }
 0x1ba   : > { %v5838_v15 = vld [vmem:[%s7459_s0 + $0x40] ss:$72 sps:$4 sm:$0xff]  }
 0x1bc   : > { %5368 = vmatpush3.bf16.msra.mxu1 %v5832_v16  ;;  %5432 = vmatpush3.bf16.msra.mxu0 %v5834_v17  ;;  %v5843_v16 = vld [vmem:[%s7459_s0 + $0xcc] ss:$72 sps:$4 sm:$0xff]  }
 0x1bd   : > { %v5846_v17 = vld [vmem:[%s7459_s0 + $0xd4] ss:$72 sps:$4 sm:$0xff]  }
 0x1be   : > { %v4921_v22 = vpop.f32.mrf.mxu0  ;;  %v4945_v23 = vpop.f32.mrf.mxu1  ;;  %3978 = vmatmul.mubr.bf16.gmra.mxu1 %v5799_v18  ;;  %4075 = vmatmul.mubr.bf16.gmra.mxu0 %v5800_v19 }
 0x1bf   : > { %3985 = vmatprep.mubr.bf16.mxu1 %v5805_v20  ;;  %4082 = vmatprep.mubr.bf16.mxu0 %v5807_v21 }
 0x1c0   : > { %v4922_v24 = vpop.f32.mrf.mxu0  ;;  %v4946_v25 = vpop.f32.mrf.mxu1 }
 0x1c1   : > { %v7012_v26 = vadd.f32 %v4922_v24, %v4921_v22  ;;  %v7014_v27 = vadd.f32 %v4946_v25, %v4945_v23 }
 0x1c2   : > { %v4924_v28 = vpop.f32.mrf.mxu0  ;;  %v4948_v29 = vpop.f32.mrf.mxu1 }
 0x1c4   : > { %v4925_v34 = vpop.f32.mrf.mxu0  ;;  %v4949_v35 = vpop.f32.mrf.mxu1 }
 0x1c5   : > { %v7028_v36 = vadd.f32 %v4925_v34, %v4924_v28  ;;  %v7030_v37 = vadd.f32 %v4949_v35, %v4948_v29  ;;  %v5849_v35 = vld [vmem:[%s7459_s0 + $0x15c] ss:$72 sps:$4 sm:$0xff]  }
 0x1c6   : > { %v4927_v38 = vpop.f32.mrf.mxu0  ;;  %v4951_v39 = vpop.f32.mrf.mxu1  ;;  %3986 = vmatmul.mubr.bf16.gmra.mxu1 %v5809_v30  ;;  %4083 = vmatmul.mubr.bf16.gmra.mxu0 %v5810_v31 }
 0x1c7   : > { %3993 = vmatprep.mubr.bf16.mxu1 %v5815_v32  ;;  %4090 = vmatprep.mubr.bf16.mxu0 %v5817_v33  ;;  %v5841_v32 = vld [vmem:[%s7459_s0 + $0xc8] ss:$72 sps:$4 sm:$0xff]  }
 0x1c8   : > { %v4928_v40 = vpop.f32.mrf.mxu0  ;;  %v4952_v41 = vpop.f32.mrf.mxu1  ;;  %v5844_v33 = vld [vmem:[%s7459_s0 + $0xd0] ss:$72 sps:$4 sm:$0xff]  }
 0x1c9   : > { %v7032_v42 = vadd.f32 %v4928_v40, %v4927_v38  ;;  %v7034_v43 = vadd.f32 %v4952_v41, %v4951_v39  ;;  %v5852_v38 = vld [vmem:[%s7459_s0 + $0x164] ss:$72 sps:$4 sm:$0xff]  }
 0x1ca   : > { %v4930_v44 = vpop.f32.mrf.mxu0  ;;  %v4954_v45 = vpop.f32.mrf.mxu1 }
 0x1cc   : > { %v4931_v50 = vpop.f32.mrf.mxu0  ;;  %v4955_v51 = vpop.f32.mrf.mxu1 }
 0x1cd   : > { %v7048_v52 = vadd.f32 %v4931_v50, %v4930_v44  ;;  %v7050_v53 = vadd.f32 %v4955_v51, %v4954_v45 }
 0x1ce   : > { %v4933_v54 = vpop.f32.mrf.mxu0  ;;  %v4957_v55 = vpop.f32.mrf.mxu1  ;;  %3994 = vmatmul.mubr.bf16.gmra.mxu1 %v5819_v46  ;;  %4091 = vmatmul.mubr.bf16.gmra.mxu0 %v5820_v47 }
 0x1cf   : > { %4001 = vmatprep.mubr.bf16.mxu1 %v5825_v48  ;;  %4098 = vmatprep.mubr.bf16.mxu0 %v5827_v49 }
 0x1d0   : > { %v4934_v56 = vpop.f32.mrf.mxu0  ;;  %v4958_v57 = vpop.f32.mrf.mxu1 }
 0x1d1   : > { %v7052_v58 = vadd.f32 %v4934_v56, %v4933_v54  ;;  %v7054_v59 = vadd.f32 %v4958_v57, %v4957_v55  ;;  %v5847_v57 = vld [vmem:[%s7459_s0 + $0x158] ss:$72 sps:$4 sm:$0xff]  }
 0x1d2   : > { %v4936_v60 = vpop.f32.mrf.mxu0  ;;  %v4960_v61 = vpop.f32.mrf.mxu1 }
 0x1d4   : > { %v4937_v2 = vpop.f32.mrf.mxu0  ;;  %v4961_v3 = vpop.f32.mrf.mxu1 }
 0x1d5   : > { %v7068_v4 = vadd.f32 %v4937_v2, %v4936_v60  ;;  %v7070_v5 = vadd.f32 %v4961_v3, %v4960_v61  ;;  %v5850_v60 = vld [vmem:[%s7459_s0 + $0x160] ss:$72 sps:$4 sm:$0xff]   ;;  %v5855_v61 = vld [vmem:[%s7459_s0 + $0x1ec] ss:$72 sps:$4 sm:$0xff]  }
 0x1d6   : > { %v4939_v6 = vpop.f32.mrf.mxu0  ;;  %v4963_v7 = vpop.f32.mrf.mxu1  ;;  %4002 = vmatmul.mubr.bf16.gmra.mxu1 %v5829_v62  ;;  %4099 = vmatmul.mubr.bf16.gmra.mxu0 %v5830_v63  ;;  %v5858_v62 = vld [vmem:[%s7459_s0 + $0x1f4] ss:$72 sps:$4 sm:$0xff]  }
 0x1d7   : > { %4139 = vmatprep.mubr.bf16.mxu1 %v5837_v0  ;;  %4236 = vmatprep.mubr.bf16.mxu0 %v5840_v1 }
 0x1d8   : > { %v4940_v8 = vpop.f32.mrf.mxu0  ;;  %v4964_v9 = vpop.f32.mrf.mxu1 }
 0x1d9   : > { %v7072_v10 = vadd.f32 %v4940_v8, %v4939_v6  ;;  %v7074_v11 = vadd.f32 %v4964_v9, %v4963_v7 }
 0x1da   : > { %v4942_v12 = vpop.f32.mrf.mxu0  ;;  %v4966_v13 = vpop.f32.mrf.mxu1 }
 0x1dc   : > { %v4943_v18 = vpop.f32.mrf.mxu0  ;;  %v4967_v19 = vpop.f32.mrf.mxu1 }
 0x1dd   : > { %v7088_v20 = vadd.f32 %v4943_v18, %v4942_v12  ;;  %v7090_v21 = vadd.f32 %v4967_v19, %v4966_v13  ;;  %v5856_v18 = vld [vmem:[%s7459_s0 + $0x1f0] ss:$72 sps:$4 sm:$0xff]   ;;  %v5861_v19 = vld [vmem:[%s7459_s0 + $0x27c] ss:$72 sps:$4 sm:$0xff]  }
 0x1de   : > { %v4985_v22 = vpop.f32.mrf.mxu1  ;;  %v5049_v23 = vpop.f32.mrf.mxu0  ;;  %4140 = vmatmul.mubr.bf16.vlgmr.msra.gmra.mxu1 %v5835_v14  ;;  %4237 = vmatmul.mubr.bf16.vlgmr.msra.gmra.mxu0 %v5838_v15 }
 0x1df   : > { %4147 = vmatprep.mubr.bf16.mxu1 %v5843_v16  ;;  %4244 = vmatprep.mubr.bf16.mxu0 %v5846_v17  ;;  %v5853_v17 = vld [vmem:[%s7459_s0 + $0x1e8] ss:$72 sps:$4 sm:$0xff]  }
 0x1e0   : > { %v4986_v24 = vpop.f32.mrf.mxu1  ;;  %v5050_v25 = vpop.f32.mrf.mxu0 }
 0x1e1   : > { %v4987_v28 = vadd.f32 %v4986_v24, %v4985_v22  ;;  %v5051_v29 = vadd.f32 %v5050_v25, %v5049_v23  ;;  %v5864_v22 = vld [vmem:[%s7459_s0 + $0x284] ss:$72 sps:$4 sm:$0xff]  }
 0x1e2   : > { %v4988_v30 = vpop.f32.mrf.mxu1  ;;  %v5052_v31 = vpop.f32.mrf.mxu0 }
 0x1e3   : > { %v3560_v34 = vadd.f32 %v4987_v28, %v7012_v26 }
 0x1e4   : > { %v4989_v39 = vpop.f32.mrf.mxu1  ;;  %v5053_v40 = vpop.f32.mrf.mxu0 }
 0x1e5   : > { %v7105_v41 = vadd.f32 %v5051_v29, %v3560_v34  ;;  %v4990_v44 = vadd.f32 %v4989_v39, %v4988_v30  ;;  %v5054_v45 = vadd.f32 %v5053_v40, %v5052_v31 }
 0x1e6   : > { %v4991_v46 = vpop.f32.mrf.mxu1  ;;  %v5055_v47 = vpop.f32.mrf.mxu0  ;;  %4148 = vmatmul.mubr.bf16.gmra.mxu1 %v5841_v32  ;;  %4245 = vmatmul.mubr.bf16.gmra.mxu0 %v5844_v33 }
 0x1e7   : > { %v3563_v26 = vadd.f32 %v4990_v44, %v7028_v36  ;;  %4155 = vmatprep.mubr.bf16.mxu1 %v5849_v35  ;;  %4252 = vmatprep.mubr.bf16.mxu0 %v5852_v38  ;;  %v5859_v44 = vld [vmem:[%s7459_s0 + $0x278] ss:$72 sps:$4 sm:$0xff]  }
 0x1e8   : > { %v4992_v48 = vpop.f32.mrf.mxu1  ;;  %v5056_v49 = vpop.f32.mrf.mxu0 }
 0x1e9   : > { %v7108_v50 = vadd.f32 %v5054_v45, %v3563_v26  ;;  %v4993_v51 = vadd.f32 %v4992_v48, %v4991_v46  ;;  %v5057_v54 = vadd.f32 %v5056_v49, %v5055_v47  ;;  %v5862_v45 = vld [vmem:[%s7459_s0 + $0x280] ss:$72 sps:$4 sm:$0xff]   ;;  %v5867_v46 = vld [vmem:[%s7459_s0 + $0x30c] ss:$72 sps:$4 sm:$0xff]  }
 0x1ea   : > { %v4994_v55 = vpop.f32.mrf.mxu1  ;;  %v5058_v56 = vpop.f32.mrf.mxu0  ;;  %v5870_v47 = vld [vmem:[%s7459_s0 + $0x314] ss:$72 sps:$4 sm:$0xff]  }
 0x1eb   : > { %v3568_v36 = vadd.f32 %v4993_v51, %v7032_v42 }
 0x1ec   : > { %v4995_v63 = vpop.f32.mrf.mxu1  ;;  %v5059_v0 = vpop.f32.mrf.mxu0 }
 0x1ed   : > { %v7123_v1 = vadd.f32 %v5057_v54, %v3568_v36  ;;  %v4996_v2 = vadd.f32 %v4995_v63, %v4994_v55  ;;  %v5060_v3 = vadd.f32 %v5059_v0, %v5058_v56 }
 0x1ee   : > { %v4997_v6 = vpop.f32.mrf.mxu1  ;;  %v5061_v7 = vpop.f32.mrf.mxu0  ;;  %4156 = vmatmul.mubr.bf16.gmra.mxu1 %v5847_v57  ;;  %4253 = vmatmul.mubr.bf16.gmra.mxu0 %v5850_v60 }
 0x1ef   : > { %v3571_v42 = vadd.f32 %v4996_v2, %v7048_v52  ;;  %4163 = vmatprep.mubr.bf16.mxu1 %v5855_v61  ;;  %4260 = vmatprep.mubr.bf16.mxu0 %v5858_v62  ;;  %v5865_v2 = vld [vmem:[%s7459_s0 + $0x308] ss:$72 sps:$4 sm:$0xff]  }
 0x1f0   : > { %v4998_v8 = vpop.f32.mrf.mxu1  ;;  %v5062_v9 = vpop.f32.mrf.mxu0 }
 0x1f1   : > { %v7126_v12 = vadd.f32 %v5060_v3, %v3571_v42  ;;  %v4999_v13 = vadd.f32 %v4998_v8, %v4997_v6  ;;  %v5063_v14 = vadd.f32 %v5062_v9, %v5061_v7  ;;  %v5868_v3 = vld [vmem:[%s7459_s0 + $0x310] ss:$72 sps:$4 sm:$0xff]   ;;  %v5873_v6 = vld [vmem:[%s7459_s0 + $0x39c] ss:$72 sps:$4 sm:$0xff]  }
 0x1f2   : > { %v5000_v15 = vpop.f32.mrf.mxu1  ;;  %v5064_v16 = vpop.f32.mrf.mxu0  ;;  %v5876_v7 = vld [vmem:[%s7459_s0 + $0x3a4] ss:$72 sps:$4 sm:$0xff]  }
 0x1f3   : > { %v3576_v52 = vadd.f32 %v4999_v13, %v7052_v58 }
 0x1f4   : > { %v5001_v23 = vpop.f32.mrf.mxu1  ;;  %v5065_v24 = vpop.f32.mrf.mxu0 }
 0x1f5   : > { %v7141_v25 = vadd.f32 %v5063_v14, %v3576_v52  ;;  %v5002_v28 = vadd.f32 %v5001_v23, %v5000_v15  ;;  %v5066_v29 = vadd.f32 %v5065_v24, %v5064_v16 }
 0x1f6   : > { %v5003_v30 = vpop.f32.mrf.mxu1  ;;  %v5067_v31 = vpop.f32.mrf.mxu0  ;;  %4164 = vmatmul.mubr.bf16.gmra.mxu1 %v5853_v17  ;;  %4261 = vmatmul.mubr.bf16.gmra.mxu0 %v5856_v18 }
 0x1f7   : > { %v3579_v58 = vadd.f32 %v5002_v28, %v7068_v4  ;;  %4171 = vmatprep.mubr.bf16.mxu1 %v5861_v19  ;;  %4268 = vmatprep.mubr.bf16.mxu0 %v5864_v22  ;;  %v5871_v28 = vld [vmem:[%s7459_s0 + $0x398] ss:$72 sps:$4 sm:$0xff]  }
 0x1f8   : > { %v5004_v32 = vpop.f32.mrf.mxu1  ;;  %v5068_v33 = vpop.f32.mrf.mxu0 }
 0x1f9   : > { %v7144_v34 = vadd.f32 %v5066_v29, %v3579_v58  ;;  %v5005_v35 = vadd.f32 %v5004_v32, %v5003_v30  ;;  %v5069_v38 = vadd.f32 %v5068_v33, %v5067_v31  ;;  %v5874_v29 = vld [vmem:[%s7459_s0 + $0x3a0] ss:$72 sps:$4 sm:$0xff]   ;;  %v5879_v30 = vld [vmem:[%s7459_s0 + $0x42c] ss:$72 sps:$4 sm:$0xff]  }
 0x1fa   : > { %v5006_v39 = vpop.f32.mrf.mxu1  ;;  %v5070_v40 = vpop.f32.mrf.mxu0  ;;  %v5882_v31 = vld [vmem:[%s7459_s0 + $0x434] ss:$72 sps:$4 sm:$0xff]  }
 0x1fb   : > { %v3584_v4 = vadd.f32 %v5005_v35, %v7072_v10 }
 0x1fc   : > { %v5007_v26 = vpop.f32.mrf.mxu1  ;;  %v5071_v48 = vpop.f32.mrf.mxu0 }
 0x1fd   : > { %v7159_v49 = vadd.f32 %v5069_v38, %v3584_v4  ;;  %v5008_v51 = vadd.f32 %v5007_v26, %v5006_v39  ;;  %v5072_v54 = vadd.f32 %v5071_v48, %v5070_v40 }
 0x1fe   : > { %v5009_v55 = vpop.f32.mrf.mxu1  ;;  %v5073_v56 = vpop.f32.mrf.mxu0  ;;  %4172 = vmatmul.mubr.bf16.gmra.mxu1 %v5859_v44  ;;  %4269 = vmatmul.mubr.bf16.gmra.mxu0 %v5862_v45 }
 0x1ff   : > { %v3587_v10 = vadd.f32 %v5008_v51, %v7088_v20  ;;  %4179 = vmatprep.mubr.bf16.mxu1 %v5867_v46  ;;  %4276 = vmatprep.mubr.bf16.mxu0 %v5870_v47  ;;  %v5877_v51 = vld [vmem:[%s7459_s0 + $0x428] ss:$72 sps:$4 sm:$0xff]  }
 0x200   : > { %v5010_v57 = vpop.f32.mrf.mxu1  ;;  %v5074_v60 = vpop.f32.mrf.mxu0 }
 0x201   : > { %v7162_v36 = vadd.f32 %v5072_v54, %v3587_v10  ;;  %v5011_v61 = vadd.f32 %v5010_v57, %v5009_v55  ;;  %v5075_v62 = vadd.f32 %v5074_v60, %v5073_v56  ;;  %v5880_v54 = vld [vmem:[%s7459_s0 + $0x430] ss:$72 sps:$4 sm:$0xff]  }
 0x202   : > { %v5012_v63 = vpop.f32.mrf.mxu1  ;;  %v5076_v0 = vpop.f32.mrf.mxu0 }
 0x203   : > { %v3592_v20 = vadd.f32 %v5011_v61, %v7014_v27 }
 0x204   : > { %v5013_v42 = vpop.f32.mrf.mxu1  ;;  %v5077_v8 = vpop.f32.mrf.mxu0 }
 0x205   : > { %v7177_v9 = vadd.f32 %v5075_v62, %v3592_v20  ;;  %v5014_v13 = vadd.f32 %v5013_v42, %v5012_v63  ;;  %v5078_v14 = vadd.f32 %v5077_v8, %v5076_v0 }
 0x206   : > { %v5015_v15 = vpop.f32.mrf.mxu1  ;;  %v5079_v16 = vpop.f32.mrf.mxu0  ;;  %4180 = vmatmul.mubr.bf16.gmra.mxu1 %v5865_v2  ;;  %4277 = vmatmul.mubr.bf16.gmra.mxu0 %v5868_v3 }
 0x207   : > { %v3595_v27 = vadd.f32 %v5014_v13, %v7030_v37  ;;  %4187 = vmatprep.mubr.bf16.mxu1 %v5873_v6  ;;  %4284 = vmatprep.mubr.bf16.mxu0 %v5876_v7 }
 0x208   : > { %v5016_v17 = vpop.f32.mrf.mxu1  ;;  %v5080_v18 = vpop.f32.mrf.mxu0 }
 0x209   : > { %v7180_v52 = vadd.f32 %v5078_v14, %v3595_v27  ;;  %v5017_v19 = vadd.f32 %v5016_v17, %v5015_v15  ;;  %v5081_v22 = vadd.f32 %v5080_v18, %v5079_v16 }
 0x20a   : > { %v5018_v23 = vpop.f32.mrf.mxu1  ;;  %v5082_v24 = vpop.f32.mrf.mxu0 }
 0x20b   : > { %v3600_v37 = vadd.f32 %v5017_v19, %v7034_v43 }
 0x20c   : > { %v5019_v58 = vpop.f32.mrf.mxu1  ;;  %v5083_v32 = vpop.f32.mrf.mxu0 }
 0x20d   : > { %v7195_v33 = vadd.f32 %v5081_v22, %v3600_v37  ;;  %v5020_v35 = vadd.f32 %v5019_v58, %v5018_v23  ;;  %v5084_v38 = vadd.f32 %v5083_v32, %v5082_v24 }
 0x20e   : > { %v5021_v39 = vpop.f32.mrf.mxu1  ;;  %v5085_v40 = vpop.f32.mrf.mxu0  ;;  %4188 = vmatmul.mubr.bf16.gmra.mxu1 %v5871_v28  ;;  %4285 = vmatmul.mubr.bf16.gmra.mxu0 %v5874_v29 }
 0x20f   : > { %v3603_v43 = vadd.f32 %v5020_v35, %v7050_v53  ;;  %4195 = vmatprep.mubr.bf16.mxu1 %v5879_v30  ;;  %4292 = vmatprep.mubr.bf16.mxu0 %v5882_v31 }
 0x210   : > { %v5022_v44 = vpop.f32.mrf.mxu1  ;;  %v5086_v45 = vpop.f32.mrf.mxu0 }
 0x211   : > { %v7198_v4 = vadd.f32 %v5084_v38, %v3603_v43  ;;  %v5023_v46 = vadd.f32 %v5022_v44, %v5021_v39  ;;  %v5087_v47 = vadd.f32 %v5086_v45, %v5085_v40 }
 0x212   : > { %v5024_v26 = vpop.f32.mrf.mxu1  ;;  %v5088_v48 = vpop.f32.mrf.mxu0 }
 0x213   : > { %v3608_v53 = vadd.f32 %v5023_v46, %v7054_v59 }
 0x214   : > { %v5025_v55 = vpop.f32.mrf.mxu1  ;;  %v5089_v56 = vpop.f32.mrf.mxu0 }
 0x215   : > { %v7207_v10 = vadd.f32 %v5087_v47, %v3608_v53  ;;  %v5026_v57 = vadd.f32 %v5025_v55, %v5024_v26  ;;  %v5090_v60 = vadd.f32 %v5089_v56, %v5088_v48 }
 0x216   : > { %v5027_v61 = vpop.f32.mrf.mxu1  ;;  %v5091_v62 = vpop.f32.mrf.mxu0  ;;  %4196 = vmatmul.mubr.bf16.gmra.mxu1 %v5877_v51  ;;  %4293 = vmatmul.mubr.bf16.gmra.mxu0 %v5880_v54 }
 0x217   : > { %v3611_v63 = vadd.f32 %v5026_v57, %v7070_v5 }
 0x218   : > { %v5028_v0 = vpop.f32.mrf.mxu1  ;;  %v5092_v2 = vpop.f32.mrf.mxu0 }
 0x219   : > { %v7210_v3 = vadd.f32 %v5090_v60, %v3611_v63  ;;  %v5029_v20 = vadd.f32 %v5028_v0, %v5027_v61  ;;  %v5093_v6 = vadd.f32 %v5092_v2, %v5091_v62 }
 0x21a   : > { %v5030_v7 = vpop.f32.mrf.mxu1  ;;  %v5094_v59 = vpop.f32.mrf.mxu0 }
 0x21b   : > { %v3616_v42 = vadd.f32 %v5029_v20, %v7074_v11 }
 0x21c   : > { %v5031_v8 = vpop.f32.mrf.mxu1  ;;  %v5095_v13 = vpop.f32.mrf.mxu0 }
 0x21d   : > { %v7213_v14 = vadd.f32 %v5093_v6, %v3616_v42  ;;  %v5032_v15 = vadd.f32 %v5031_v8, %v5030_v7  ;;  %v5096_v16 = vadd.f32 %v5095_v13, %v5094_v59 }
 0x21e   : > { %v5113_v27 = vpop.f32.mrf.mxu1  ;;  %v5177_v17 = vpop.f32.mrf.mxu0 }
 0x21f   : > { %v3619_v5 = vadd.f32 %v5032_v15, %v7090_v21 }
 0x220   : > { %v5114_v18 = vpop.f32.mrf.mxu1  ;;  %v5178_v19 = vpop.f32.mrf.mxu0 }
 0x221   : > { %v7216_v22 = vadd.f32 %v5096_v16, %v3619_v5  ;;  %v5115_v23 = vadd.f32 %v5114_v18, %v5113_v27  ;;  %v5179_v24 = vadd.f32 %v5178_v19, %v5177_v17 }
 0x222   : > { %v5116_v28 = vpop.f32.mrf.mxu1  ;;  %v5180_v29 = vpop.f32.mrf.mxu0 }
 0x223   : > { %v3754_v11 = vadd.f32 %v5115_v23, %v7105_v41 }
 0x224   : > { %v5117_v37 = vpop.f32.mrf.mxu1  ;;  %v5181_v30 = vpop.f32.mrf.mxu0 }
 0x225   : > { %v7219_v31 = vadd.f32 %v5179_v24, %v3754_v11  ;;  %v5118_v58 = vadd.f32 %v5117_v37, %v5116_v28  ;;  %v5182_v32 = vadd.f32 %v5181_v30, %v5180_v29 }
 0x226   : > { %v5119_v35 = vpop.f32.mrf.mxu1  ;;  %v5183_v38 = vpop.f32.mrf.mxu0 }
 0x227   : > { %v3757_v21 = vadd.f32 %v5118_v58, %v7108_v50 }
 0x228   : > { %v5120_v39 = vpop.f32.mrf.mxu1  ;;  %v5184_v40 = vpop.f32.mrf.mxu0 }
 0x229   : > { %v7222_v43 = vadd.f32 %v5182_v32, %v3757_v21  ;;  %v5121_v44 = vadd.f32 %v5120_v39, %v5119_v35  ;;  %v5185_v45 = vadd.f32 %v5184_v40, %v5183_v38 }
 0x22a   : > { %v5122_v46 = vpop.f32.mrf.mxu1  ;;  %v5186_v47 = vpop.f32.mrf.mxu0 }
 0x22b   : > { %v3762_v41 = vadd.f32 %v5121_v44, %v7123_v1 }
 0x22c   : > { %v5123_v26 = vpop.f32.mrf.mxu1  ;;  %v5187_v48 = vpop.f32.mrf.mxu0 }
 0x22d   : > { %v7225_v51 = vadd.f32 %v5185_v45, %v3762_v41  ;;  %v5124_v54 = vadd.f32 %v5123_v26, %v5122_v46  ;;  %v5188_v53 = vadd.f32 %v5187_v48, %v5186_v47 }
 0x22e   : > { %v5125_v55 = vpop.f32.mrf.mxu1  ;;  %v5189_v56 = vpop.f32.mrf.mxu0 }
 0x22f   : > { %v3765_v50 = vadd.f32 %v5124_v54, %v7126_v12 }
 0x230   : > { %v5126_v57 = vpop.f32.mrf.mxu1  ;;  %v5190_v60 = vpop.f32.mrf.mxu0 }
 0x231   : > { %v7228_v61 = vadd.f32 %v5188_v53, %v3765_v50  ;;  %v5127_v62 = vadd.f32 %v5126_v57, %v5125_v55  ;;  %v5191_v63 = vadd.f32 %v5190_v60, %v5189_v56 }
 0x232   : > { %v5128_v0 = vpop.f32.mrf.mxu1  ;;  %v5192_v2 = vpop.f32.mrf.mxu0 }
 0x233   : > { %v3770_v1 = vadd.f32 %v5127_v62, %v7141_v25 }
 0x234   : > { %v5129_v20 = vpop.f32.mrf.mxu1  ;;  %v5193_v6 = vpop.f32.mrf.mxu0 }
 0x235   : > { %v7231_v7 = vadd.f32 %v5191_v63, %v3770_v1  ;;  %v5130_v59 = vadd.f32 %v5129_v20, %v5128_v0  ;;  %v5194_v42 = vadd.f32 %v5193_v6, %v5192_v2 }
 0x236   : > { %v5131_v8 = vpop.f32.mrf.mxu1  ;;  %v5195_v13 = vpop.f32.mrf.mxu0 }
 0x237   : > { %v3773_v12 = vadd.f32 %v5130_v59, %v7144_v34 }
 0x238   : > { %v5132_v15 = vpop.f32.mrf.mxu1  ;;  %v5196_v16 = vpop.f32.mrf.mxu0 }
 0x239   : > { %v7234_v27 = vadd.f32 %v5194_v42, %v3773_v12  ;;  %v5133_v17 = vadd.f32 %v5132_v15, %v5131_v8  ;;  %v5197_v5 = vadd.f32 %v5196_v16, %v5195_v13 }
 0x23a   : > { %v5134_v18 = vpop.f32.mrf.mxu1  ;;  %v5198_v19 = vpop.f32.mrf.mxu0 }
 0x23b   : > { %v3778_v25 = vadd.f32 %v5133_v17, %v7159_v49 }
 0x23c   : > { %v5135_v23 = vpop.f32.mrf.mxu1  ;;  %v5199_v24 = vpop.f32.mrf.mxu0 }
 0x23d   : > { %v7237_v28 = vadd.f32 %v5197_v5, %v3778_v25  ;;  %v5136_v29 = vadd.f32 %v5135_v23, %v5134_v18  ;;  %v5200_v11 = vadd.f32 %v5199_v24, %v5198_v19 }
 0x23e   : > { %v5137_v37 = vpop.f32.mrf.mxu1  ;;  %v5201_v30 = vpop.f32.mrf.mxu0 }
 0x23f   : > { %v3781_v34 = vadd.f32 %v5136_v29, %v7162_v36 }
 0x240   : > { %v5138_v58 = vpop.f32.mrf.mxu1  ;;  %v5202_v32 = vpop.f32.mrf.mxu0 }
 0x241   : > { %v7240_v35 = vadd.f32 %v5200_v11, %v3781_v34  ;;  %v5139_v38 = vadd.f32 %v5138_v58, %v5137_v37  ;;  %v5203_v21 = vadd.f32 %v5202_v32, %v5201_v30 }
 0x242   : > { %v5140_v39 = vpop.f32.mrf.mxu1  ;;  %v5204_v40 = vpop.f32.mrf.mxu0 }
 0x243   : > { %v3786_v49 = vadd.f32 %v5139_v38, %v7177_v9 }
 0x244   : > { %v5141_v44 = vpop.f32.mrf.mxu1  ;;  %v5205_v45 = vpop.f32.mrf.mxu0 }
 0x245   : > { %v7243_v46 = vadd.f32 %v5203_v21, %v3786_v49  ;;  %v5142_v47 = vadd.f32 %v5141_v44, %v5140_v39  ;;  %v5206_v41 = vadd.f32 %v5205_v45, %v5204_v40 }
 0x246   : > { %v5143_v26 = vpop.f32.mrf.mxu1  ;;  %v5207_v48 = vpop.f32.mrf.mxu0 }
 0x247   : > { %v3789_v36 = vadd.f32 %v5142_v47, %v7180_v52 }
 0x248   : > { %v5144_v54 = vpop.f32.mrf.mxu1  ;;  %v5208_v53 = vpop.f32.mrf.mxu0 }
 0x249   : > { %v7246_v55 = vadd.f32 %v5206_v41, %v3789_v36  ;;  %v5145_v56 = vadd.f32 %v5144_v54, %v5143_v26  ;;  %v5209_v50 = vadd.f32 %v5208_v53, %v5207_v48 }
 0x24a   : > { %v5146_v57 = vpop.f32.mrf.mxu1  ;;  %v5210_v60 = vpop.f32.mrf.mxu0 }
 0x24b   : > { %v3794_v9 = vadd.f32 %v5145_v56, %v7195_v33 }
 0x24c   : > { %v5147_v62 = vpop.f32.mrf.mxu1  ;;  %v5211_v63 = vpop.f32.mrf.mxu0 }
 0x24d   : > { %v7249_v0 = vadd.f32 %v5209_v50, %v3794_v9  ;;  %v5148_v2 = vadd.f32 %v5147_v62, %v5146_v57  ;;  %v5212_v1 = vadd.f32 %v5211_v63, %v5210_v60 }
 0x24e   : > { %v5149_v20 = vpop.f32.mrf.mxu1  ;;  %v5213_v6 = vpop.f32.mrf.mxu0 }
 0x24f   : > { %v3797_v52 = vadd.f32 %v5148_v2, %v7198_v4 }
 0x250   : > { %v5150_v59 = vpop.f32.mrf.mxu1  ;;  %v5214_v42 = vpop.f32.mrf.mxu0 }
 0x251   : > { %v7252_v8 = vadd.f32 %v5212_v1, %v3797_v52  ;;  %v5151_v13 = vadd.f32 %v5150_v59, %v5149_v20  ;;  %v5215_v12 = vadd.f32 %v5214_v42, %v5213_v6 }
 0x252   : > { %v5152_v15 = vpop.f32.mrf.mxu1  ;;  %v5216_v16 = vpop.f32.mrf.mxu0 }
 0x253   : > { %v3802_v33 = vadd.f32 %v5151_v13, %v7207_v10 }
 0x254   : > { %v5153_v17 = vpop.f32.mrf.mxu1  ;;  %v5217_v5 = vpop.f32.mrf.mxu0 }
 0x255   : > { %v7255_v18 = vadd.f32 %v5215_v12, %v3802_v33  ;;  %v5154_v19 = vadd.f32 %v5153_v17, %v5152_v15  ;;  %v5218_v25 = vadd.f32 %v5217_v5, %v5216_v16 }
 0x256   : > { %v5155_v23 = vpop.f32.mrf.mxu1  ;;  %v5219_v24 = vpop.f32.mrf.mxu0 }
 0x257   : > { %v3805_v4 = vadd.f32 %v5154_v19, %v7210_v3 }
 0x258   : > { %v5156_v29 = vpop.f32.mrf.mxu1  ;;  %v5220_v11 = vpop.f32.mrf.mxu0 }
 0x259   : > { %v7258_v37 = vadd.f32 %v5218_v25, %v3805_v4  ;;  %v5157_v30 = vadd.f32 %v5156_v29, %v5155_v23  ;;  %v5221_v34 = vadd.f32 %v5220_v11, %v5219_v24 }
 0x25a   : > { %v5158_v58 = vpop.f32.mrf.mxu1  ;;  %v5222_v32 = vpop.f32.mrf.mxu0 }
 0x25b   : > { %v3810_v10 = vadd.f32 %v5157_v30, %v7213_v14 }
 0x25c   : > { %v5159_v38 = vpop.f32.mrf.mxu1  ;;  %v5223_v21 = vpop.f32.mrf.mxu0 }
 0x25d   : > { %v7261_v39 = vadd.f32 %v5221_v34, %v3810_v10  ;;  %v5160_v40 = vadd.f32 %v5159_v38, %v5158_v58  ;;  %v5224_v49 = vadd.f32 %v5223_v21, %v5222_v32 }
 0x25e   : > { %v5241_v44 = vpop.f32.mrf.mxu1  ;;  %v5305_v45 = vpop.f32.mrf.mxu0 }
 0x25f   : > { %v3813_v3 = vadd.f32 %v5160_v40, %v7216_v22 }
 0x260   : > { %v5242_v47 = vpop.f32.mrf.mxu1  ;;  %v5306_v41 = vpop.f32.mrf.mxu0 }
 0x261   : > { %v7264_v26 = vadd.f32 %v5224_v49, %v3813_v3  ;;  %v5243_v48 = vadd.f32 %v5242_v47, %v5241_v44  ;;  %v5307_v36 = vadd.f32 %v5306_v41, %v5305_v45 }
 0x262   : > { %v5244_v54 = vpop.f32.mrf.mxu1  ;;  %v5308_v53 = vpop.f32.mrf.mxu0 }
 0x263   : > { %v3948_v14 = vadd.f32 %v5243_v48, %v7219_v31 }
 0x264   : > { %v5245_v56 = vpop.f32.mrf.mxu1  ;;  %v5309_v50 = vpop.f32.mrf.mxu0 }
 0x265   : > { %v7267_v57 = vadd.f32 %v5307_v36, %v3948_v14  ;;  %v5246_v60 = vadd.f32 %v5245_v56, %v5244_v54  ;;  %v5310_v9 = vadd.f32 %v5309_v50, %v5308_v53 }
 0x266   : > { %v5247_v62 = vpop.f32.mrf.mxu1  ;;  %v5311_v63 = vpop.f32.mrf.mxu0 }
 0x267   : > { %v3951_v22 = vadd.f32 %v5246_v60, %v7222_v43 }
 0x268   : > { %v5248_v2 = vpop.f32.mrf.mxu1  ;;  %v5312_v1 = vpop.f32.mrf.mxu0 }
 0x269   : > { %v7270_v20 = vadd.f32 %v5310_v9, %v3951_v22  ;;  %v5249_v6 = vadd.f32 %v5248_v2, %v5247_v62  ;;  %v5313_v52 = vadd.f32 %v5312_v1, %v5311_v63 }
 0x26a   : > { %v5250_v59 = vpop.f32.mrf.mxu1  ;;  %v5314_v42 = vpop.f32.mrf.mxu0 }
 0x26b   : > { %v3956_v31 = vadd.f32 %v5249_v6, %v7225_v51 }
 0x26c   : > { %v5251_v13 = vpop.f32.mrf.mxu1  ;;  %v5315_v12 = vpop.f32.mrf.mxu0 }
 0x26d   : > { %v7273_v15 = vadd.f32 %v5313_v52, %v3956_v31  ;;  %v5252_v16 = vadd.f32 %v5251_v13, %v5250_v59  ;;  %v5316_v33 = vadd.f32 %v5315_v12, %v5314_v42 }
 0x26e   : > { %v5253_v17 = vpop.f32.mrf.mxu1  ;;  %v5317_v5 = vpop.f32.mrf.mxu0 }
 0x26f   : > { %v3959_v43 = vadd.f32 %v5252_v16, %v7228_v61 }
 0x270   : > { %v5254_v19 = vpop.f32.mrf.mxu1  ;;  %v5318_v25 = vpop.f32.mrf.mxu0 }
 0x271   : > { %v7276_v23 = vadd.f32 %v5316_v33, %v3959_v43  ;;  %v5255_v24 = vadd.f32 %v5254_v19, %v5253_v17  ;;  %v5319_v4 = vadd.f32 %v5318_v25, %v5317_v5 }
 0x272   : > { %v5256_v29 = vpop.f32.mrf.mxu1  ;;  %v5320_v11 = vpop.f32.mrf.mxu0 }
 0x273   : > { %v3964_v51 = vadd.f32 %v5255_v24, %v7231_v7 }
 0x274   : > { %v5257_v30 = vpop.f32.mrf.mxu1  ;;  %v5321_v34 = vpop.f32.mrf.mxu0 }
 0x275   : > { %v7279_v58 = vadd.f32 %v5319_v4, %v3964_v51  ;;  %v5258_v32 = vadd.f32 %v5257_v30, %v5256_v29  ;;  %v5322_v10 = vadd.f32 %v5321_v34, %v5320_v11 }
 0x276   : > { %v5259_v38 = vpop.f32.mrf.mxu1  ;;  %v5323_v21 = vpop.f32.mrf.mxu0 }
 0x277   : > { %v3967_v61 = vadd.f32 %v5258_v32, %v7234_v27 }
 0x278   : > { %v5260_v40 = vpop.f32.mrf.mxu1  ;;  %v5324_v49 = vpop.f32.mrf.mxu0 }
 0x279   : > { %v7282_v44 = vadd.f32 %v5322_v10, %v3967_v61  ;;  %v5261_v45 = vadd.f32 %v5260_v40, %v5259_v38  ;;  %v5325_v3 = vadd.f32 %v5324_v49, %v5323_v21 }
 0x27a   : > { %v5262_v47 = vpop.f32.mrf.mxu1  ;;  %v5326_v41 = vpop.f32.mrf.mxu0 }
 0x27b   : > { %v3972_v7 = vadd.f32 %v5261_v45, %v7237_v28 }
 0x27c   : > { %v5263_v48 = vpop.f32.mrf.mxu1  ;;  %v5327_v36 = vpop.f32.mrf.mxu0 }
 0x27d   : > { %v7285_v54 = vadd.f32 %v5325_v3, %v3972_v7  ;;  %v5264_v53 = vadd.f32 %v5263_v48, %v5262_v47  ;;  %v5328_v14 = vadd.f32 %v5327_v36, %v5326_v41 }
 0x27e   : > { %v5265_v56 = vpop.f32.mrf.mxu1  ;;  %v5329_v50 = vpop.f32.mrf.mxu0 }
 0x27f   : > { %v3975_v27 = vadd.f32 %v5264_v53, %v7240_v35 }
 0x280   : > { %v5266_v60 = vpop.f32.mrf.mxu1  ;;  %v5330_v9 = vpop.f32.mrf.mxu0 }
 0x281   : > { %v7288_v62 = vadd.f32 %v5328_v14, %v3975_v27  ;;  %v5267_v63 = vadd.f32 %v5266_v60, %v5265_v56  ;;  %v5331_v22 = vadd.f32 %v5330_v9, %v5329_v50 }
 0x282   : > { %v5268_v2 = vpop.f32.mrf.mxu1  ;;  %v5332_v1 = vpop.f32.mrf.mxu0 }
 0x283   : > { %v3980_v28 = vadd.f32 %v5267_v63, %v7243_v46 }
 0x284   : > { %v5269_v6 = vpop.f32.mrf.mxu1  ;;  %v5333_v52 = vpop.f32.mrf.mxu0 }
 0x285   : > { %v7291_v59 = vadd.f32 %v5331_v22, %v3980_v28  ;;  %v5270_v42 = vadd.f32 %v5269_v6, %v5268_v2  ;;  %v5334_v31 = vadd.f32 %v5333_v52, %v5332_v1 }
 0x286   : > { %v5271_v13 = vpop.f32.mrf.mxu1  ;;  %v5335_v12 = vpop.f32.mrf.mxu0 }
 0x287   : > { %v3983_v35 = vadd.f32 %v5270_v42, %v7246_v55 }
 0x288   : > { %v5272_v16 = vpop.f32.mrf.mxu1  ;;  %v5336_v33 = vpop.f32.mrf.mxu0 }
 0x289   : > { %v7294_v17 = vadd.f32 %v5334_v31, %v3983_v35  ;;  %v5273_v5 = vadd.f32 %v5272_v16, %v5271_v13  ;;  %v5337_v43 = vadd.f32 %v5336_v33, %v5335_v12 }
 0x28a   : > { %v5274_v19 = vpop.f32.mrf.mxu1  ;;  %v5338_v25 = vpop.f32.mrf.mxu0 }
 0x28b   : > { %v3988_v46 = vadd.f32 %v5273_v5, %v7249_v0 }
 0x28c   : > { %v5275_v24 = vpop.f32.mrf.mxu1  ;;  %v5339_v4 = vpop.f32.mrf.mxu0 }
 0x28d   : > { %v7297_v29 = vadd.f32 %v5337_v43, %v3988_v46  ;;  %v5276_v11 = vadd.f32 %v5275_v24, %v5274_v19  ;;  %v5340_v51 = vadd.f32 %v5339_v4, %v5338_v25 }
 0x28e   : > { %v5277_v30 = vpop.f32.mrf.mxu1  ;;  %v5341_v34 = vpop.f32.mrf.mxu0 }
 0x28f   : > { %v3991_v55 = vadd.f32 %v5276_v11, %v7252_v8 }
 0x290   : > { %v5278_v32 = vpop.f32.mrf.mxu1  ;;  %v5342_v10 = vpop.f32.mrf.mxu0 }
 0x291   : > { %v7300_v38 = vadd.f32 %v5340_v51, %v3991_v55  ;;  %v5279_v21 = vadd.f32 %v5278_v32, %v5277_v30  ;;  %v5343_v61 = vadd.f32 %v5342_v10, %v5341_v34 }
 0x292   : > { %v5280_v40 = vpop.f32.mrf.mxu1  ;;  %v5344_v49 = vpop.f32.mrf.mxu0 }
 0x293   : > { %v3996_v0 = vadd.f32 %v5279_v21, %v7255_v18 }
 0x294   : > { %v5281_v45 = vpop.f32.mrf.mxu1  ;;  %v5345_v3 = vpop.f32.mrf.mxu0 }
 0x295   : > { %v7303_v47 = vadd.f32 %v5343_v61, %v3996_v0  ;;  %v5282_v41 = vadd.f32 %v5281_v45, %v5280_v40  ;;  %v5346_v7 = vadd.f32 %v5345_v3, %v5344_v49 }
 0x296   : > { %v5283_v48 = vpop.f32.mrf.mxu1  ;;  %v5347_v36 = vpop.f32.mrf.mxu0 }
 0x297   : > { %v3999_v8 = vadd.f32 %v5282_v41, %v7258_v37 }
 0x298   : > { %v5284_v53 = vpop.f32.mrf.mxu1  ;;  %v5348_v14 = vpop.f32.mrf.mxu0 }
 0x299   : > { %v7306_v56 = vadd.f32 %v5346_v7, %v3999_v8  ;;  %v5285_v50 = vadd.f32 %v5284_v53, %v5283_v48  ;;  %v5349_v9 = vadd.f32 %v5348_v14, %v5347_v36 }
 0x29a   : > { %v7308_v27 = vpop.f32.mrf.mxu1  ;;  %v7310_v60 = vpop.f32.mrf.mxu0 }
 0x29b   : > { %v4004_v18 = vadd.f32 %v5285_v50, %v7261_v39 }
 0x29c   : > { %v7313_v63 = vpop.f32.mrf.mxu1  ;;  %v7315_v22 = vpop.f32.mrf.mxu0 }
 0x29d   : > { %v7317_v2 = vadd.f32 %v5349_v9, %v4004_v18 }
 0x29e   : > { %v5369_v1 = vpop.f32.mrf.mxu1  ;;  %v5433_v37 = vpop.f32.mrf.mxu0 }
 0x2a0   : > { %v5370_v28 = vpop.f32.mrf.mxu1  ;;  %v5434_v6 = vpop.f32.mrf.mxu0 }
 0x2a1   : > { %v5371_v52 = vadd.f32 %v5370_v28, %v5369_v1  ;;  %v5435_v12 = vadd.f32 %v5434_v6, %v5433_v37 }
 0x2a2   : > { %v5372_v42 = vpop.f32.mrf.mxu1  ;;  %v5436_v31 = vpop.f32.mrf.mxu0 }
 0x2a3   : > { %v4142_v13 = vadd.f32 %v5371_v52, %v7267_v57 }
 0x2a4   : > { %v5373_v35 = vpop.f32.mrf.mxu1  ;;  %v5437_v16 = vpop.f32.mrf.mxu0 }
 0x2a5   : > { %v5374_v39 = vadd.f32 %v5373_v35, %v5372_v42  ;;  %v7320_v33 = vadd.f32 %v5435_v12, %v4142_v13  ;;  %v5438_v25 = vadd.f32 %v5437_v16, %v5436_v31 }
 0x2a6   : > { %v5375_v5 = vpop.f32.mrf.mxu1  ;;  %v5439_v43 = vpop.f32.mrf.mxu0 }
 0x2a7   : > { %v4145_v19 = vadd.f32 %v5374_v39, %v7270_v20  ;;  %v4322_v51 = vmul.f32 %v7320_v33, %v7320_v33 }
 0x2a8   : > { %v5376_v46 = vpop.f32.mrf.mxu1  ;;  %v5440_v24 = vpop.f32.mrf.mxu0 }
 0x2a9   : > { %v7323_v4 = vadd.f32 %v5438_v25, %v4145_v19  ;;  %v5377_v11 = vadd.f32 %v5376_v46, %v5375_v5  ;;  %v5441_v20 = vadd.f32 %v5440_v24, %v5439_v43 }
 0x2aa   : > { %v5378_v57 = vpop.f32.mrf.mxu1  ;;  %v5442_v30 = vpop.f32.mrf.mxu0 }
 0x2ab   : > { %v4301_v34 = vadd.f32 %v7323_v4, %v7320_v33  ;;  %v4323_v55 = vmul.f32 %v7323_v4, %v7323_v4  ;;  %v4150_v32 = vadd.f32 %v5377_v11, %v7273_v15 }
 0x2ac   : > { %v5379_v10 = vpop.f32.mrf.mxu1  ;;  %v5443_v21 = vpop.f32.mrf.mxu0 }
 0x2ad   : > { %v4338_v61 = vadd.f32 %v4323_v55, %v4322_v51  ;;  %v7332_v40 = vadd.f32 %v5441_v20, %v4150_v32  ;;  %v5380_v49 = vadd.f32 %v5379_v10, %v5378_v57  ;;  %v5444_v48 = vadd.f32 %v5443_v21, %v5442_v30 }
 0x2ae   : > { %v5381_v0 = vpop.f32.mrf.mxu1  ;;  %v5445_v45 = vpop.f32.mrf.mxu0 }
 0x2af   : > { %v4302_v3 = vadd.f32 %v4301_v34, %v7332_v40  ;;  %v4324_v41 = vmul.f32 %v7332_v40, %v7332_v40  ;;  %v4153_v7 = vadd.f32 %v5380_v49, %v7276_v23 }
 0x2b0   : > { %v5382_v36 = vpop.f32.mrf.mxu1  ;;  %v5446_v8 = vpop.f32.mrf.mxu0 }
 0x2b1   : > { %v4339_v15 = vadd.f32 %v4338_v61, %v4324_v41  ;;  %v7338_v53 = vadd.f32 %v5444_v48, %v4153_v7  ;;  %v5383_v14 = vadd.f32 %v5382_v36, %v5381_v0  ;;  %v5447_v28 = vadd.f32 %v5446_v8, %v5445_v45 }
 0x2b2   : > { %v5384_v50 = vpop.f32.mrf.mxu1  ;;  %v5448_v18 = vpop.f32.mrf.mxu0 }
 0x2b3   : > { %v4303_v9 = vadd.f32 %v4302_v3, %v7338_v53  ;;  %v4325_v1 = vmul.f32 %v7338_v53, %v7338_v53  ;;  %v4158_v37 = vadd.f32 %v5383_v14, %v7279_v58 }
 0x2b4   : > { %v5385_v6 = vpop.f32.mrf.mxu1  ;;  %v5449_v52 = vpop.f32.mrf.mxu0 }
 0x2b5   : > { %v4340_v23 = vadd.f32 %v4339_v15, %v4325_v1  ;;  %v7344_v42 = vadd.f32 %v5447_v28, %v4158_v37  ;;  %v5386_v31 = vadd.f32 %v5385_v6, %v5384_v50  ;;  %v5450_v5 = vadd.f32 %v5449_v52, %v5448_v18 }
 0x2b6   : > { %v5387_v13 = vpop.f32.mrf.mxu1  ;;  %v5451_v12 = vpop.f32.mrf.mxu0 }
 0x2b7   : > { %v4304_v35 = vadd.f32 %v4303_v9, %v7344_v42  ;;  %v4326_v16 = vmul.f32 %v7344_v42, %v7344_v42  ;;  %v4161_v39 = vadd.f32 %v5386_v31, %v7282_v44 }
 0x2b8   : > { %v5388_v43 = vpop.f32.mrf.mxu1  ;;  %v5452_v19 = vpop.f32.mrf.mxu0 }
 0x2b9   : > { %v4341_v58 = vadd.f32 %v4340_v23, %v4326_v16  ;;  %v7350_v25 = vadd.f32 %v5450_v5, %v4161_v39  ;;  %v5389_v46 = vadd.f32 %v5388_v43, %v5387_v13  ;;  %v5453_v34 = vadd.f32 %v5452_v19, %v5451_v12 }
 0x2ba   : > { %v5390_v24 = vpop.f32.mrf.mxu1  ;;  %v5454_v11 = vpop.f32.mrf.mxu0 }
 0x2bb   : > { %v4305_v51 = vadd.f32 %v4304_v35, %v7350_v25  ;;  %v4327_v57 = vmul.f32 %v7350_v25, %v7350_v25  ;;  %v4166_v30 = vadd.f32 %v5389_v46, %v7285_v54 }
 0x2bc   : > { %v5391_v55 = vpop.f32.mrf.mxu1  ;;  %v5455_v32 = vpop.f32.mrf.mxu0 }
 0x2bd   : > { %v4342_v44 = vadd.f32 %v4341_v58, %v4327_v57  ;;  %v7356_v20 = vadd.f32 %v5453_v34, %v4166_v30  ;;  %v5392_v10 = vadd.f32 %v5391_v55, %v5390_v24  ;;  %v5456_v3 = vadd.f32 %v5455_v32, %v5454_v11 }
 0x2be   : > { %v5393_v21 = vpop.f32.mrf.mxu1  ;;  %v5457_v61 = vpop.f32.mrf.mxu0 }
 0x2bf   : > { %v4306_v49 = vadd.f32 %v4305_v51, %v7356_v20  ;;  %v4328_v0 = vmul.f32 %v7356_v20, %v7356_v20  ;;  %v4169_v45 = vadd.f32 %v5392_v10, %v7288_v62 }
 0x2c0   : > { %v5394_v41 = vpop.f32.mrf.mxu1  ;;  %v5458_v7 = vpop.f32.mrf.mxu0 }
 0x2c1   : > { %v4343_v54 = vadd.f32 %v4342_v44, %v4328_v0  ;;  %v7362_v48 = vadd.f32 %v5456_v3, %v4169_v45  ;;  %v5395_v36 = vadd.f32 %v5394_v41, %v5393_v21  ;;  %v5459_v9 = vadd.f32 %v5458_v7, %v5457_v61 }
 0x2c2   : > { %v5396_v8 = vpop.f32.mrf.mxu1  ;;  %v5460_v15 = vpop.f32.mrf.mxu0 }
 0x2c3   : > { %v4307_v14 = vadd.f32 %v4306_v49, %v7362_v48  ;;  %v4329_v50 = vmul.f32 %v7362_v48, %v7362_v48  ;;  %v4174_v18 = vadd.f32 %v5395_v36, %v7291_v59 }
 0x2c4   : > { %v5397_v1 = vpop.f32.mrf.mxu1  ;;  %v5461_v37 = vpop.f32.mrf.mxu0 }
 0x2c5   : > { %v4344_v62 = vadd.f32 %v4343_v54, %v4329_v50  ;;  %v7368_v28 = vadd.f32 %v5459_v9, %v4174_v18  ;;  %v5398_v6 = vadd.f32 %v5397_v1, %v5396_v8  ;;  %v5462_v35 = vadd.f32 %v5461_v37, %v5460_v15 }
 0x2c6   : > { %v5399_v52 = vpop.f32.mrf.mxu1  ;;  %v5463_v23 = vpop.f32.mrf.mxu0 }
 0x2c7   : > { %v4308_v31 = vadd.f32 %v4307_v14, %v7368_v28  ;;  %v4330_v13 = vmul.f32 %v7368_v28, %v7368_v28  ;;  %v4177_v12 = vadd.f32 %v5398_v6, %v7294_v17 }
 0x2c8   : > { %v5400_v16 = vpop.f32.mrf.mxu1  ;;  %v5464_v39 = vpop.f32.mrf.mxu0 }
 0x2c9   : > { %v4345_v59 = vadd.f32 %v4344_v62, %v4330_v13  ;;  %v7374_v5 = vadd.f32 %v5462_v35, %v4177_v12  ;;  %v5401_v43 = vadd.f32 %v5400_v16, %v5399_v52  ;;  %v5465_v51 = vadd.f32 %v5464_v39, %v5463_v23 }
 0x2ca   : > { %v5402_v19 = vpop.f32.mrf.mxu1  ;;  %v5466_v58 = vpop.f32.mrf.mxu0  ;;  %v5352_v39 = vadd.f32 %v7315_v22, %v7310_v60 }
 0x2cb   : > { %v4309_v46 = vadd.f32 %v4308_v31, %v7374_v5  ;;  %v4331_v24 = vmul.f32 %v7374_v5, %v7374_v5  ;;  %v4182_v11 = vadd.f32 %v5401_v43, %v7297_v29 }
 0x2cc   : > { %v5403_v57 = vpop.f32.mrf.mxu1  ;;  %v5467_v30 = vpop.f32.mrf.mxu0 }
 0x2cd   : > { %v4346_v17 = vadd.f32 %v4345_v59, %v4331_v24  ;;  %v7380_v34 = vadd.f32 %v5465_v51, %v4182_v11  ;;  %v5404_v55 = vadd.f32 %v5403_v57, %v5402_v19  ;;  %v5468_v49 = vadd.f32 %v5467_v30, %v5466_v58 }
 0x2ce   : > { %v5405_v32 = vpop.f32.mrf.mxu1  ;;  %v5469_v44 = vpop.f32.mrf.mxu0 }
 0x2cf   : > { %v4310_v10 = vadd.f32 %v4309_v46, %v7380_v34  ;;  %v4332_v21 = vmul.f32 %v7380_v34, %v7380_v34  ;;  %v4185_v61 = vadd.f32 %v5404_v55, %v7300_v38  ;;  %v5288_v38 = vadd.f32 %v7313_v63, %v7308_v27 }
 0x2d0   : > { %v5406_v0 = vpop.f32.mrf.mxu1  ;;  %v5470_v45 = vpop.f32.mrf.mxu0 }
 0x2d1   : > { %v4347_v29 = vadd.f32 %v4346_v17, %v4332_v21  ;;  %v7386_v3 = vadd.f32 %v5468_v49, %v4185_v61  ;;  %v5407_v41 = vadd.f32 %v5406_v0, %v5405_v32  ;;  %v5471_v14 = vadd.f32 %v5470_v45, %v5469_v44 }
 0x2d2   : > { %v5408_v7 = vpop.f32.mrf.mxu1  ;;  %v5472_v54 = vpop.f32.mrf.mxu0  ;;  %v4007_v35 = vadd.f32 %v5288_v38, %v7264_v26 }
 0x2d3   : > { %v4311_v36 = vadd.f32 %v4310_v10, %v7386_v3  ;;  %v4333_v8 = vmul.f32 %v7386_v3, %v7386_v3  ;;  %v4190_v15 = vadd.f32 %v5407_v41, %v7303_v47 }
 0x2d4   : > { %v5409_v50 = vpop.f32.mrf.mxu1  ;;  %v5473_v18 = vpop.f32.mrf.mxu0  ;;  %v4104_v26 = vadd.f32 %v5352_v39, %v4007_v35 }
 0x2d5   : > { %v4348_v9 = vadd.f32 %v4347_v29, %v4333_v8  ;;  %v7394_v1 = vadd.f32 %v5471_v14, %v4190_v15  ;;  %v5410_v37 = vadd.f32 %v5409_v50, %v5408_v7  ;;  %v5474_v47 = vadd.f32 %v5473_v18, %v5472_v54 }
 0x2d6   : > { %v5411_v62 = vpop.f32.mrf.mxu1  ;;  %v5475_v6 = vpop.f32.mrf.mxu0 }
 0x2d7   : > { %v4312_v52 = vadd.f32 %v4311_v36, %v7394_v1  ;;  %v4334_v23 = vmul.f32 %v7394_v1, %v7394_v1  ;;  %v4193_v31 = vadd.f32 %v5410_v37, %v7306_v56 }
 0x2d8   : > { %v5412_v13 = vpop.f32.mrf.mxu1  ;;  %v5476_v12 = vpop.f32.mrf.mxu0 }
 0x2d9   : > { %v4349_v16 = vadd.f32 %v4348_v9, %v4334_v23  ;;  %v7401_v27 = vadd.f32 %v5474_v47, %v4193_v31  ;;  %v5413_v63 = vadd.f32 %v5412_v13, %v5411_v62  ;;  %v5477_v46 = vadd.f32 %v5476_v12, %v5475_v6 }
 0x2da   : > { %v5414_v59 = vpop.f32.mrf.mxu1  ;;  %v5478_v43 = vpop.f32.mrf.mxu0 }
 0x2db   : > { %v4313_v19 = vadd.f32 %v4312_v52, %v7401_v27  ;;  %v4335_v58 = vmul.f32 %v7401_v27, %v7401_v27  ;;  %v4198_v56 = vadd.f32 %v5413_v63, %v7317_v2 }
 0x2dc   : > { %v5415_v24 = vpop.f32.mrf.mxu1  ;;  %v5479_v11 = vpop.f32.mrf.mxu0 }
 0x2dd   : > { %v4350_v51 = vadd.f32 %v4349_v16, %v4335_v58  ;;  %v7409_v57 = vadd.f32 %v5477_v46, %v4198_v56  ;;  %v5416_v30 = vadd.f32 %v5415_v24, %v5414_v59  ;;  %v5480_v55 = vadd.f32 %v5479_v11, %v5478_v43  ;;  %v4899_v59 = vld [vmem:[%s1407_s30] ss:$0 sm:$0xff] }
 0x2df   : > { %v4314_v17 = vadd.f32 %v4313_v19, %v7409_v57  ;;  %v4336_v60 = vmul.f32 %v7409_v57, %v7409_v57  ;;  %v4201_v22 = vadd.f32 %v5416_v30, %v4104_v26 }
 0x2e1   : > { %v4351_v32 = vadd.f32 %v4350_v51, %v4336_v60  ;;  %v4298_v44 = vadd.f32 %v5480_v55, %v4201_v22 }
 0x2e3   : > { %v4315_v10 = vadd.f32 %v4314_v17, %v4298_v44  ;;  %v4337_v21 = vmul.f32 %v4298_v44, %v4298_v44 }
 0x2e5   : > { %v4316_v2 = vrot.slane %v4315_v10, 4  ;;  %v4352_v61 = vadd.f32 %v4351_v32, %v4337_v21 }
 0x2e7   : > { %v4317_v49 = vadd.f32 %v4316_v2, %v4315_v10  ;;  %v4353_v0 = vrot.slane %v4352_v61, 4 }
 0x2e9   : > { %v4318_v45 = vrot.slane %v4317_v49, 2  ;;  %v4354_v29 = vadd.f32 %v4353_v0, %v4352_v61 }
 0x2eb   : > { %v4319_v41 = vadd.f32 %v4318_v45, %v4317_v49  ;;  %v4355_v7 = vrot.slane %v4354_v29, 2 }
 0x2ed   : > { %v4320_v54 = vrot.slane %v4319_v41, 1  ;;  %v4356_v36 = vadd.f32 %v4355_v7, %v4354_v29 }
 0x2ef   : > { %v4321_v8 = vadd.f32 %v4320_v54, %v4319_v41  ;;  %v4357_v15 = vrot.slane %v4356_v36, 1 }
 0x2f1   : > { %v4358_v14 = vadd.f32 %v4357_v15, %v4356_v36  ;;  %v4359_v50 = vmul.f32 0.0078125, %v4321_v8 }
 0x2f3   : > { %v4360_v18 = vmul.f32 0.0078125, %v4358_v14  ;;  %v4361_v38 = vmul.f32 %v4359_v50, %v4359_v50  ;;  %v4364_v9 = vsub.f32 %v7320_v33, %v4359_v50  ;;  %v4365_v37 = vsub.f32 %v7323_v4, %v4359_v50 }
 0x2f4   : > { %v4366_v62 = vsub.f32 %v7332_v40, %v4359_v50  ;;  %v4367_v6 = vsub.f32 %v7338_v53, %v4359_v50  ;;  %v4368_v52 = vsub.f32 %v7344_v42, %v4359_v50  ;;  %v4369_v23 = vsub.f32 %v7350_v25, %v4359_v50 }
 0x2f5   : > { %v4362_v31 = vsub.f32 %v4360_v18, %v4361_v38  ;;  %v4370_v47 = vsub.f32 %v7356_v20, %v4359_v50  ;;  %v4371_v13 = vsub.f32 %v7362_v48, %v4359_v50  ;;  %v4372_v12 = vsub.f32 %v7368_v28, %v4359_v50 }
 0x2f6   : > { %v4373_v33 = vsub.f32 %v7374_v5, %v4359_v50  ;;  %v4374_v4 = vsub.f32 %v7380_v34, %v4359_v50  ;;  %v4375_v40 = vsub.f32 %v7386_v3, %v4359_v50  ;;  %v4376_v53 = vsub.f32 %v7394_v1, %v4359_v50 }
 0x2f7   : > { %v4363_v42 = vmax.f32 %v4362_v31, 0.0  ;;  %v4377_v35 = vsub.f32 %v7401_v27, %v4359_v50  ;;  %v4378_v25 = vsub.f32 %v7409_v57, %v4359_v50  ;;  %v4379_v16 = vsub.f32 %v4298_v44, %v4359_v50  ;;  %v4900_v44 = vld [vmem:[%s1410_s8] ss:$0 sm:$0xff] }
 0x2f9   : > { %v4380_v63 = vadd.f32 1e-05, %v4363_v42 }
 0x2fb   : > { %5883 = vrsqrt.f32 %v4380_v63 }
 0x308   : > { %v5884_v20 = vpop.eup %5883 }
 0x309   : > { %v4382_v48 = vmul.f32 %v5884_v20, %v4364_v9  ;;  %v4383_v28 = vmul.f32 %v5884_v20, %v4365_v37  ;;  %v4384_v5 = vmul.f32 %v5884_v20, %v4366_v62  ;;  %v4385_v34 = vmul.f32 %v5884_v20, %v4367_v6 }
 0x30a   : > { %v4386_v3 = vmul.f32 %v5884_v20, %v4368_v52  ;;  %v4387_v1 = vmul.f32 %v5884_v20, %v4369_v23  ;;  %v4388_v27 = vmul.f32 %v5884_v20, %v4370_v47  ;;  %v4389_v39 = vmul.f32 %v5884_v20, %v4371_v13 }
 0x30b   : > { %v4390_v43 = vmul.f32 %v5884_v20, %v4372_v12  ;;  %v4391_v19 = vmul.f32 %v5884_v20, %v4373_v33  ;;  %v4392_v58 = vmul.f32 %v5884_v20, %v4374_v4  ;;  %v4393_v56 = vmul.f32 %v5884_v20, %v4375_v40 }
 0x30c   : > { %v4394_v46 = vmul.f32 %v5884_v20, %v4376_v53  ;;  %v4395_v24 = vmul.f32 %v5884_v20, %v4377_v35  ;;  %v4396_v11 = vmul.f32 %v5884_v20, %v4378_v25  ;;  %v4397_v26 = vmul.f32 %v5884_v20, %v4379_v16 }
 0x30d   : > { %v4405_v51 = vmul.f32 %v4899_v59, %v4382_v48  ;;  %v4406_v57 = vmul.f32 %v4899_v59, %v4383_v28  ;;  %v4407_v30 = vmul.f32 %v4899_v59, %v4384_v5  ;;  %v4408_v17 = vmul.f32 %v4899_v59, %v4385_v34 }
 0x30e   : > { %v4409_v60 = vmul.f32 %v4899_v59, %v4386_v3  ;;  %v4410_v22 = vmul.f32 %v4899_v59, %v4387_v1  ;;  %v4411_v55 = vmul.f32 %v4899_v59, %v4388_v27  ;;  %v4412_v32 = vmul.f32 %v4899_v59, %v4389_v39 }
 0x30f   : > { %v4413_v10 = vmul.f32 %v4899_v59, %v4390_v43  ;;  %v4414_v21 = vmul.f32 %v4899_v59, %v4391_v19  ;;  %v4415_v2 = vmul.f32 %v4899_v59, %v4392_v58  ;;  %v4416_v61 = vmul.f32 %v4899_v59, %v4393_v56 }
 0x310   : > { %v4417_v49 = vmul.f32 %v4899_v59, %v4394_v46  ;;  %v4418_v0 = vmul.f32 %v4899_v59, %v4395_v24  ;;  %v4419_v45 = vmul.f32 %v4899_v59, %v4396_v11  ;;  %v4420_v29 = vmul.f32 %v4899_v59, %v4397_v26 }
 0x311   : > { %v4428_v41 = vadd.f32 %v4900_v44, %v4405_v51  ;;  %v4429_v7 = vadd.f32 %v4900_v44, %v4406_v57  ;;  %v4430_v54 = vadd.f32 %v4900_v44, %v4407_v30  ;;  %v4431_v36 = vadd.f32 %v4900_v44, %v4408_v17 }
 0x312   : > { %v4432_v8 = vadd.f32 %v4900_v44, %v4409_v60  ;;  %v4433_v15 = vadd.f32 %v4900_v44, %v4410_v22  ;;  %v4434_v14 = vadd.f32 %v4900_v44, %v4411_v55  ;;  %v4435_v50 = vadd.f32 %v4900_v44, %v4412_v32 }
 0x313   : > { %v4436_v18 = vadd.f32 %v4900_v44, %v4413_v10  ;;  %v4437_v38 = vadd.f32 %v4900_v44, %v4414_v21  ;;  %v4438_v9 = vadd.f32 %v4900_v44, %v4415_v2  ;;  %v4439_v37 = vadd.f32 %v4900_v44, %v4416_v61 }
 0x314   : > { %v4440_v62 = vadd.f32 %v4900_v44, %v4417_v49  ;;  %v4441_v6 = vadd.f32 %v4900_v44, %v4418_v0  ;;  %v4442_v52 = vadd.f32 %v4900_v44, %v4419_v45  ;;  %v4443_v23 = vadd.f32 %v4900_v44, %v4420_v29 }
 0x315   : > { %v4444_v31 = vmax.f32 %v4428_v41, 0.0  ;;  %v4445_v47 = vmax.f32 %v4429_v7, 0.0  ;;  %v4446_v13 = vmax.f32 %v4430_v54, 0.0  ;;  %v4447_v12 = vmax.f32 %v4431_v36, 0.0 }
 0x316   : > { %v4448_v33 = vmax.f32 %v4432_v8, 0.0  ;;  %v4449_v4 = vmax.f32 %v4433_v15, 0.0  ;;  %v4450_v40 = vmax.f32 %v4434_v14, 0.0  ;;  %v4451_v53 = vmax.f32 %v4435_v50, 0.0 }
 0x317   : > { %v4452_v42 = vmax.f32 %v4436_v18, 0.0  ;;  %v4453_v35 = vmax.f32 %v4437_v38, 0.0  ;;  %v4454_v25 = vmax.f32 %v4438_v9, 0.0  ;;  %v4455_v16 = vmax.f32 %v4439_v37, 0.0 }
 0x318   : > { %v4456_v63 = vmax.f32 %v4440_v62, 0.0  ;;  %v4457_v20 = vmax.f32 %v4441_v6, 0.0  ;;  %v4458_v48 = vmax.f32 %v4442_v52, 0.0  ;;  %v4459_v28 = vmax.f32 %v4443_v23, 0.0 }
 0x319   : > { %v4460_v5 = vmax.f32 %v4444_v31, %v4448_v33  ;;  %v4461_v34 = vmax.f32 %v4445_v47, %v4449_v4  ;;  %v4462_v3 = vmax.f32 %v4446_v13, %v4450_v40  ;;  %v4463_v1 = vmax.f32 %v4447_v12, %v4451_v53 }
 0x31a   : > { %v4464_v27 = vmax.f32 %v4452_v42, %v4456_v63  ;;  %v4465_v39 = vmax.f32 %v4453_v35, %v4457_v20  ;;  %v4466_v59 = vmax.f32 %v4454_v25, %v4458_v48  ;;  %v4467_v43 = vmax.f32 %v4455_v16, %v4459_v28 }
 0x31b   : > { %4482 = sbr.rel (!%p5965_p5) target bundleno = 808 (0x328), region = 81 }
 0x31c   : > { %v4468_v19 = vmax.f32 %v4460_v5, %v4464_v27  ;;  %v4469_v58 = vmax.f32 %v4461_v34, %v4465_v39  ;;  %v4470_v56 = vmax.f32 %v4462_v3, %v4466_v59  ;;  %v4471_v46 = vmax.f32 %v4463_v1, %v4467_v43 }
 0x31e   : > { %4472 = vst [vmem:[%s1404_s10] sm:$0xff] %v4468_v19  ;;  %4473 = vst [vmem:[%s1404_s10 + $0x8] sm:$0xff] %v4469_v58 }
 0x31f   : > { %4474 = vst [vmem:[%s1404_s10 + $0x10] sm:$0xff] %v4470_v56  ;;  %4475 = vst [vmem:[%s1404_s10 + $0x18] sm:$0xff] %v4471_v46 }
 0x325   : > { %v4519_v24 = vld [vmem:[%s1404_s10] sm:$0xff]  ;;  %v4521_v11 = vld [vmem:[%s1404_s10 + $0x8] sm:$0xff] }
 0x326   : > { %v4523_v26 = vld [vmem:[%s1404_s10 + $0x10] sm:$0xff]  ;;  %v4525_v51 = vld [vmem:[%s1404_s10 + $0x18] sm:$0xff]  ;;  %4520 = vst [vmem:[%s4484_s13] sm:$0xff] %v4519_v24  ;;  %4522 = vst [vmem:[%s4484_s13 + $0x20] sm:$0xff] %v4521_v11 }
 0x327   : > { %4524 = vst [vmem:[%s4484_s13 + $0x40] sm:$0xff] %v4523_v26  ;;  %4526 = vst [vmem:[%s4484_s13 + $0x60] sm:$0xff] %v4525_v51 }
 0x328 PF: > { %p11_p11 = scmp.ge.s32.totalorder %s5953_s19, 6   ;;  %s7465_s15 = smov %s5903_s16 }
 0x329   : > { %s7466_s16 = smov %s5963_s22  ;;  %s7467_s17 = smov %s5953_s19 }
 0x32a   :  { %13 = sbr.rel (!%p11_p11) target bundleno = 2 (0x2), region = 156 }

</bundles_post_ra>
